<compile_context>
chip_gen: v5e
topology: v5e:2x2
jax: 0.10.0
libtpu: 0.0.40
codegen_flags: <defaults>
</compile_context>

<pallas_src>
import jax
import jax.numpy as jnp
from jax.experimental import pallas as pl
from jax.experimental.pallas import tpu as pltpu

_LN_EPS = 1e-5  # nn.LayerNorm default


# ----------------------------------------------------------------------------
# in-kernel math helpers (f32)
# ----------------------------------------------------------------------------
def _gelu(x):
    # tanh-approx GELU: transcendental goes to the EUP slot instead of a long
    # VALU polynomial (small deviation vs PyTorch's exact-erf nn.GELU()).
    c = 0.7978845608028654  # sqrt(2/pi)
    return 0.5 * x * (1.0 + jnp.tanh(c * (x + 0.044715 * x * x * x)))


def _layernorm(x, gamma, beta):
    mu = jnp.mean(x, axis=-1, keepdims=True)
    xc = x - mu
    var = jnp.mean(xc * xc, axis=-1, keepdims=True)
    return xc * jax.lax.rsqrt(var + _LN_EPS) * gamma + beta


# ----------------------------------------------------------------------------
# fused kernel: LN1 + in-kernel rearranges + permute-MLP + residual
#               + LN2 + channel MLP + residual
# ----------------------------------------------------------------------------
def _make_fused_kernel(H, W, C):
    N = H * W
    dh = C // H
    dw = C // W

    def kernel(x_ref,
               ln1g_ref, ln1b_ref,
               wh_ref, wc_ref,
               wp1_ref, bp1_ref, wp2_ref, bp2_ref,
               wo_ref, bo_ref,
               ln2g_ref, ln2b_ref,
               wf1_ref, bf1_ref, wf2_ref, bf2_ref,
               o_ref,
               hw_scr):
        f32 = jnp.float32
        bf16 = jnp.bfloat16
        bt = x_ref.shape[0]
        M = bt * N

        x4 = x_ref[...]                                       # (bt, H, W, C) f32
        x2 = x4.reshape(M, C)

        # --- LN1 in-kernel (VPU/EUP work, hides under the MXU matmuls) ----------
        xn2 = _layernorm(x2, ln1g_ref[...], ln1b_ref[...])    # (M, C) f32
        xn4 = xn2.reshape(bt, H, W, C)

        # --- einops rearranges via static sub-block copies into a stacked scratch
        #   rows [0 : bt)   : 'b (p d) h w -> b (h d) p w'  (input of x_h conv)
        #   rows [bt : 2bt) : 'b (p d) h w -> b (w d) h p'  (input of x_w conv)
        for p_ in range(H):
            for a_ in range(H):
                hw_scr[0:bt, p_:p_ + 1, :, a_ * dh:(a_ + 1) * dh] = \
                    xn4[:, a_:a_ + 1, :, p_ * dh:(p_ + 1) * dh]
        for p_ in range(W):
            for a_ in range(W):
                hw_scr[bt:2 * bt, :, p_:p_ + 1, a_ * dw:(a_ + 1) * dw] = \
                    xn4[:, :, a_:a_ + 1, p_ * dw:(p_ + 1) * dw]

        # --- one MXU weight push for W_H over stacked [xh; xw] ------------------
        # (module quirk: self.H applied to BOTH x_h and x_w; self.W is unused)
        lhs_hw = hw_scr[...].reshape(2 * M, C).astype(bf16)
        hw = jnp.dot(lhs_hw, wh_ref[...], preferred_element_type=f32)   # (2M, C)
        x_c = jnp.dot(xn2.astype(bf16), wc_ref[...],
                      preferred_element_type=f32)                        # (M, C)
        x_h = hw[:M]
        x_w = hw[M:]

        # --- weight_proj: spatial mean of branch sum -> tiny MLP -> 3-way softmax
        s_mean = jnp.mean((x_h + x_w + x_c).reshape(bt, N, C), axis=1)   # (bt, C)
        hmid = _gelu(jnp.dot(s_mean.astype(bf16), wp1_ref[...],
                             preferred_element_type=f32) + bp1_ref[...])
        logits = (jnp.dot(hmid.astype(bf16), wp2_ref[...],
                          preferred_element_type=f32) + bp2_ref[...])    # (bt, 3C)
        lg_h = logits[:, :C]
        lg_w = logits[:, C:2 * C]
        lg_c = logits[:, 2 * C:]
        mx = jnp.maximum(jnp.maximum(lg_h, lg_w), lg_c)
        e_h = jnp.exp(lg_h - mx)
        e_w = jnp.exp(lg_w - mx)
        e_c = jnp.exp(lg_c - mx)
        inv = pl.reciprocal(e_h + e_w + e_c, approx=True)   # softmax denom on EUP
        a_h = (e_h * inv)[:, None, :]
        a_w = (e_w * inv)[:, None, :]
        a_c = (e_c * inv)[:, None, :]

        # TODO(synk): at realistic sizes store x_h/x_w/x_c in bf16 and upcast
        # per-term here to halve the live f32 footprint.
        x_mix = (a_h * x_h.reshape(bt, N, C)
                 + a_w * x_w.reshape(bt, N, C)
                 + a_c * x_c.reshape(bt, N, C))                          # f32

        out1 = (jnp.dot(x_mix.reshape(M, C).astype(bf16), wo_ref[...],
                        preferred_element_type=f32) + bo_ref[...])
        y1 = x2 + out1                                      # residual (path-drop p=0)

        # --- channel branch fused in (no HBM round trip for y1) -----------------
        z = _layernorm(y1, ln2g_ref[...], ln2b_ref[...])
        h1 = _gelu(jnp.dot(z.astype(bf16), wf1_ref[...],
                           preferred_element_type=f32) + bf1_ref[...]).astype(bf16)
        out2 = (jnp.dot(h1, wf2_ref[...],
                        preferred_element_type=f32) + bf2_ref[...])
        o_ref[...] = (y1 + out2).reshape(bt, H, W, C)

    return kernel


def fused_permutator_block(x4, p):
    """x4: (B, H, W, C) f32 channel-last; returns (B, H, W, C) f32."""
    B, H, W, C = x4.shape
    N = H * W
    CHP = p["wp1"].shape[1]
    HID = p["w_ff1"].shape[1]

    # batch tile: target ~1024 MXU rows per block (long accumulate runs on v6e),
    # but keep the parallel grid axis >= 2 steps when B >= 2 so both v7x
    # TensorCores get work; then round down to a divisor of B.
    bt = max(1, min(B, max(1, 1024 // N)))
    if B >= 2:
        bt = min(bt, B // 2)
    while B % bt:
        bt -= 1
    grid = (B // bt,)
    # TODO(synk): for realistic ViP sizes also tile N (two-pass spatial mean).

    def act_spec():
        return pl.BlockSpec((bt, H, W, C), lambda i: (i, 0, 0, 0))

    def w_spec(shape):
        return pl.BlockSpec(shape, lambda i: (0, 0))

    kernel = _make_fused_kernel(H, W, C)

    return pl.pallas_call(
        kernel,
        out_shape=jax.ShapeDtypeStruct((B, H, W, C), jnp.float32),
        grid_spec=pltpu.PrefetchScalarGridSpec(
            num_scalar_prefetch=0, grid=grid,
            in_specs=[act_spec(),
                      w_spec((1, C)), w_spec((1, C)),
                      w_spec((C, C)), w_spec((C, C)),
                      w_spec((C, CHP)), w_spec((1, CHP)),
                      w_spec((CHP, 3 * C)), w_spec((1, 3 * C)),
                      w_spec((C, C)), w_spec((1, C)),
                      w_spec((1, C)), w_spec((1, C)),
                      w_spec((C, HID)), w_spec((1, HID)),
                      w_spec((HID, C)), w_spec((1, C))],
            out_specs=act_spec(),
            scratch_shapes=[pltpu.VMEM((2 * bt, H, W, C), jnp.float32)]),
        compiler_params=pltpu.CompilerParams(
            dimension_semantics=("parallel",),
            vmem_limit_bytes=64 * 1024 * 1024),
    )(x4,
      p["ln1_g"], p["ln1_b"],
      p["w_H"], p["w_C"],
      p["wp1"], p["bp1"], p["wp2"], p["bp2"],
      p["w_out"], p["b_out"],
      p["ln2_g"], p["ln2_b"],
      p["w_ff1"], p["b_ff1"], p["w_ff2"], p["b_ff2"])


# ----------------------------------------------------------------------------
# full Permutator forward (wrapper is just NCHW <-> channel-last plumbing)
# ----------------------------------------------------------------------------
def permutator_forward(x_nchw, dev_params):
    B, C, H, W = x_nchw.shape
    assert C % H == 0 and C % W == 0, "dim must be divisible by H and W"
    x4 = jnp.transpose(x_nchw, (0, 2, 3, 1))          # (B, H, W, C)
    y4 = fused_permutator_block(x4, dev_params)
    return jnp.transpose(y4, (0, 3, 1, 2))            # back to NCHW


# ----------------------------------------------------------------------------
# deterministic synthetic parameters (shapes from the module's __init__)
# ----------------------------------------------------------------------------
def init_params(key, dim):
    keys = jax.random.split(key, 16)
    ch = max(1, int(dim * 0.25))   # weight_proj hidden (ff_expand_scale=0.25)
    hidden = int(dim * 3)          # channel_block hidden (ff_expand_scale=3)

    def w(k, shape, scale=0.05):
        return scale * jax.random.normal(k, shape, jnp.float32)

    # all matmul weights stored pre-transposed as (C_in, C_out), f32 canonical
    return {
        "ln1_g": jnp.ones((1, dim), jnp.float32),
        "ln1_b": jnp.zeros((1, dim), jnp.float32),
        "w_H_t": w(keys[0], (dim, dim)),       # Conv2d H (1x1, no bias)
        "w_W_t": w(keys[1], (dim, dim)),       # Conv2d W -- created but unused (module quirk)
        "w_C_t": w(keys[2], (dim, dim)),       # Conv2d C (1x1, no bias)
        "wp1_t": w(keys[3], (dim, ch)),        # weight_proj Linear 1
        "bp1": w(keys[4], (1, ch), 0.02),
        "wp2_t": w(keys[5], (ch, 3 * dim)),    # weight_proj Linear 2 (fused 3 heads)
        "bp2": w(keys[12], (1, 3 * dim), 0.02),
        "w_out_t": w(keys[6], (dim, dim)),     # out_linear (1x1, bias)
        "b_out": w(keys[7], (1, dim), 0.02),
        "ln2_g": jnp.ones((1, dim), jnp.float32),
        "ln2_b": jnp.zeros((1, dim), jnp.float32),
        "w_ff1_t": w(keys[8], (dim, hidden)),  # channel_block Conv2d 1 (1x1, bias)
        "b_ff1": w(keys[9], (1, hidden), 0.02),
        "w_ff2_t": w(keys[10], (hidden, dim)),  # channel_block Conv2d 2 (1x1, bias)
        "b_ff2": w(keys[11], (1, dim), 0.02),
    }


def prepare_device_params(p, dim):
    """bf16 matmul weights, f32 biases/LN params, lane-dense padded weight_proj."""
    ch = p["wp1_t"].shape[1]
    chp = ((max(ch, 128) + 127) // 128) * 128
    bf = jnp.bfloat16
    wp1_pad = jnp.zeros((dim, chp), jnp.float32).at[:, :ch].set(p["wp1_t"])
    bp1_pad = jnp.zeros((1, chp), jnp.float32).at[:, :ch].set(p["bp1"])
    wp2_pad = jnp.zeros((chp, 3 * dim), jnp.float32).at[:ch, :].set(p["wp2_t"])
    return {
        "ln1_g": p["ln1_g"], "ln1_b": p["ln1_b"],
        "w_H": p["w_H_t"].astype(bf), "w_C": p["w_C_t"].astype(bf),
        "wp1": wp1_pad.astype(bf), "bp1": bp1_pad,
        "wp2": wp2_pad.astype(bf), "bp2": p["bp2"],
        "w_out": p["w_out_t"].astype(bf), "b_out": p["b_out"],
        "ln2_g": p["ln2_g"], "ln2_b": p["ln2_b"],
        "w_ff1": p["w_ff1_t"].astype(bf), "b_ff1": p["b_ff1"],
        "w_ff2": p["w_ff2_t"].astype(bf), "b_ff2": p["b_ff2"],
    }


# ----------------------------------------------------------------------------
# pure-JAX f32 reference (NCHW, exact-erf GELU) for a sanity check
# ----------------------------------------------------------------------------
def reference_forward(x, p):
    B, C, H, W = x.shape
    dh, dw = C // H, C // W

    def ln_cf(t, g, b):
        mu = jnp.mean(t, axis=1, keepdims=True)
        var = jnp.mean((t - mu) ** 2, axis=1, keepdims=True)
        return ((t - mu) * jax.lax.rsqrt(var + _LN_EPS)
                * g.reshape(1, C, 1, 1) + b.reshape(1, C, 1, 1))

    def conv1x1(t, w_t, bias=None):  # w_t: (C_in, C_out)
        y = jnp.einsum('bchw,cd->bdhw', t, w_t)
        return y if bias is None else y + bias.reshape(1, -1, 1, 1)

    gelu = lambda t: jax.nn.gelu(t, approximate=False)

    xn = ln_cf(x, p["ln1_g"], p["ln1_b"])
    # 'b (p d) h w -> b (h d) p w', p=H
    x_h = jnp.transpose(xn.reshape(B, H, dh, H, W), (0, 3, 2, 1, 4)).reshape(B, C, H, W)
    # 'b (p d) h w -> b (w d) h p', p=W
    x_w = jnp.transpose(xn.reshape(B, W, dw, H, W), (0, 4, 2, 3, 1)).reshape(B, C, H, W)
    x_h = conv1x1(x_h, p["w_H_t"])   # module quirk: self.H on both
    x_w = conv1x1(x_w, p["w_H_t"])
    x_c = conv1x1(xn, p["w_C_t"])
    s = x_h + x_w + x_c
    wmean = jnp.mean(s, axis=(2, 3))                           # (B, C)
    hmid = gelu(wmean @ p["wp1_t"] + p["bp1"])
    logits = hmid @ p["wp2_t"] + p["bp2"]                      # (B, 3C)
    wts = jax.nn.softmax(logits.reshape(B, 3, C), axis=1)
    mix = (wts[:, 0][:, :, None, None] * x_h
           + wts[:, 1][:, :, None, None] * x_w
           + wts[:, 2][:, :, None, None] * x_c)
    y1 = x + conv1x1(mix, p["w_out_t"], p["b_out"])
    z = ln_cf(y1, p["ln2_g"], p["ln2_b"])
    h1 = gelu(conv1x1(z, p["w_ff1_t"], p["b_ff1"]))
    return y1 + conv1x1(h1, p["w_ff2_t"], p["b_ff2"])


if __name__ == "__main__":
    # dim must be divisible by both H and W (requirement of the einops rearrange)
    B, C, H, W = 2, 128, 8, 8
    x = jax.random.normal(jax.random.PRNGKey(0), (B, C, H, W), jnp.float32)
    params_f32 = init_params(jax.random.PRNGKey(1), C)
    dev_params = prepare_device_params(params_f32, C)

    fwd = jax.jit(permutator_forward)
    y = fwd(x, dev_params)
    jax.block_until_ready(y)

    assert y.shape == (B, C, H, W) and y.dtype == jnp.float32
    assert bool(jnp.all(jnp.isfinite(y)))

    # sanity check against the f32 reference (bf16 matmuls + tanh-GELU => loose tol)
    y_ref = reference_forward(x, params_f32)
    err = float(jnp.max(jnp.abs(y - y_ref)))
    assert err < 0.1, f"max abs error vs reference too large: {err}"

    print("KERNEL_OK")
</pallas_src>

<mosaic_0001>
module attributes {stable_mosaic.version = 11 : i64} {
  func.func @kernel(%arg0: i32, %arg1: memref<1x8x8x128xf32, #tpu.memory_space<vmem>>, %arg2: memref<1x128xf32, #tpu.memory_space<vmem>>, %arg3: memref<1x128xf32, #tpu.memory_space<vmem>>, %arg4: memref<128x128xbf16, #tpu.memory_space<vmem>>, %arg5: memref<128x128xbf16, #tpu.memory_space<vmem>>, %arg6: memref<128x128xbf16, #tpu.memory_space<vmem>>, %arg7: memref<1x128xf32, #tpu.memory_space<vmem>>, %arg8: memref<128x384xbf16, #tpu.memory_space<vmem>>, %arg9: memref<1x384xf32, #tpu.memory_space<vmem>>, %arg10: memref<128x128xbf16, #tpu.memory_space<vmem>>, %arg11: memref<1x128xf32, #tpu.memory_space<vmem>>, %arg12: memref<1x128xf32, #tpu.memory_space<vmem>>, %arg13: memref<1x128xf32, #tpu.memory_space<vmem>>, %arg14: memref<128x384xbf16, #tpu.memory_space<vmem>>, %arg15: memref<1x384xf32, #tpu.memory_space<vmem>>, %arg16: memref<384x128xbf16, #tpu.memory_space<vmem>>, %arg17: memref<1x128xf32, #tpu.memory_space<vmem>>, %arg18: memref<1x8x8x128xf32, #tpu.memory_space<vmem>>, %arg19: memref<2x8x8x128xf32, #tpu.memory_space<vmem>>) attributes {dimension_semantics = [#tpu.dimension_semantics<parallel>], iteration_bounds = array<i64: 2>, scalar_prefetch = 0 : i64, scratch_operands = 1 : i64, tpu.core_type = #tpu.core_type<tc>, window_params = [{transform_indices = @transform_0, window_bounds = array<i64: 1, 8, 8, 128>}, {pipeline_mode = #tpu.pipeline_mode<synchronous>, transform_indices = @transform_1, window_bounds = array<i64: 1, 128>}, {pipeline_mode = #tpu.pipeline_mode<synchronous>, transform_indices = @transform_2, window_bounds = array<i64: 1, 128>}, {pipeline_mode = #tpu.pipeline_mode<synchronous>, transform_indices = @transform_3, window_bounds = array<i64: 128, 128>}, {pipeline_mode = #tpu.pipeline_mode<synchronous>, transform_indices = @transform_4, window_bounds = array<i64: 128, 128>}, {pipeline_mode = #tpu.pipeline_mode<synchronous>, transform_indices = @transform_5, window_bounds = array<i64: 128, 128>}, {pipeline_mode = #tpu.pipeline_mode<synchronous>, transform_indices = @transform_6, window_bounds = array<i64: 1, 128>}, {pipeline_mode = #tpu.pipeline_mode<synchronous>, transform_indices = @transform_7, window_bounds = array<i64: 128, 384>}, {pipeline_mode = #tpu.pipeline_mode<synchronous>, transform_indices = @transform_8, window_bounds = array<i64: 1, 384>}, {pipeline_mode = #tpu.pipeline_mode<synchronous>, transform_indices = @transform_9, window_bounds = array<i64: 128, 128>}, {pipeline_mode = #tpu.pipeline_mode<synchronous>, transform_indices = @transform_10, window_bounds = array<i64: 1, 128>}, {pipeline_mode = #tpu.pipeline_mode<synchronous>, transform_indices = @transform_11, window_bounds = array<i64: 1, 128>}, {pipeline_mode = #tpu.pipeline_mode<synchronous>, transform_indices = @transform_12, window_bounds = array<i64: 1, 128>}, {pipeline_mode = #tpu.pipeline_mode<synchronous>, transform_indices = @transform_13, window_bounds = array<i64: 128, 384>}, {pipeline_mode = #tpu.pipeline_mode<synchronous>, transform_indices = @transform_14, window_bounds = array<i64: 1, 384>}, {pipeline_mode = #tpu.pipeline_mode<synchronous>, transform_indices = @transform_15, window_bounds = array<i64: 384, 128>}, {pipeline_mode = #tpu.pipeline_mode<synchronous>, transform_indices = @transform_16, window_bounds = array<i64: 1, 128>}, {transform_indices = @transform_17, window_bounds = array<i64: 1, 8, 8, 128>}]} {
    %c0 = arith.constant 0 : index
    %c0_0 = arith.constant 0 : index
    %c0_1 = arith.constant 0 : index
    %c0_2 = arith.constant 0 : index
    %0 = vector.load %arg1[%c0, %c0_0, %c0_1, %c0_2] : memref<1x8x8x128xf32, #tpu.memory_space<vmem>>, vector<1x8x8x128xf32>
    %1 = vector.shape_cast %0 : vector<1x8x8x128xf32> to vector<64x128xf32>
    %c0_3 = arith.constant 0 : index
    %c0_4 = arith.constant 0 : index
    %2 = vector.load %arg2[%c0_3, %c0_4] : memref<1x128xf32, #tpu.memory_space<vmem>>, vector<1x128xf32>
    %c0_5 = arith.constant 0 : index
    %c0_6 = arith.constant 0 : index
    %3 = vector.load %arg3[%c0_5, %c0_6] : memref<1x128xf32, #tpu.memory_space<vmem>>, vector<1x128xf32>
    %cst = arith.constant dense<0.000000e+00> : vector<64xf32>
    %4 = vector.multi_reduction <add>, %1, %cst [1] : vector<64x128xf32> to vector<64xf32>
    %5 = vector.shape_cast %4 : vector<64xf32> to vector<64x1xf32>
    %cst_7 = arith.constant 1.280000e+02 : f32
    %6 = vector.broadcast %cst_7 : f32 to vector<64x1xf32>
    %7 = arith.divf %5, %6 : vector<64x1xf32>
    %8 = vector.broadcast %7 : vector<64x1xf32> to vector<64x128xf32>
    %9 = arith.subf %1, %8 : vector<64x128xf32>
    %10 = arith.mulf %9, %9 : vector<64x128xf32>
    %cst_8 = arith.constant dense<0.000000e+00> : vector<64xf32>
    %11 = vector.multi_reduction <add>, %10, %cst_8 [1] : vector<64x128xf32> to vector<64xf32>
    %12 = vector.shape_cast %11 : vector<64xf32> to vector<64x1xf32>
    %cst_9 = arith.constant 1.280000e+02 : f32
    %13 = vector.broadcast %cst_9 : f32 to vector<64x1xf32>
    %14 = arith.divf %12, %13 : vector<64x1xf32>
    %cst_10 = arith.constant 9.99999974E-6 : f32
    %15 = vector.broadcast %cst_10 : f32 to vector<64x1xf32>
    %16 = arith.addf %14, %15 : vector<64x1xf32>
    %17 = math.rsqrt %16 : vector<64x1xf32>
    %18 = vector.broadcast %17 : vector<64x1xf32> to vector<64x128xf32>
    %19 = arith.mulf %9, %18 : vector<64x128xf32>
    %20 = vector.broadcast %2 : vector<1x128xf32> to vector<64x128xf32>
    %21 = arith.mulf %19, %20 : vector<64x128xf32>
    %22 = vector.broadcast %3 : vector<1x128xf32> to vector<64x128xf32>
    %23 = arith.addf %21, %22 : vector<64x128xf32>
    %24 = vector.shape_cast %23 : vector<64x128xf32> to vector<1x8x8x128xf32>
    %25 = vector.extract_strided_slice %24 {offsets = [0, 0, 0, 0], sizes = [1, 1, 8, 16], strides = [1, 1, 1, 1]} : vector<1x8x8x128xf32> to vector<1x1x8x16xf32>
    %c0_11 = arith.constant 0 : index
    %c0_12 = arith.constant 0 : index
    %c0_13 = arith.constant 0 : index
    %c0_14 = arith.constant 0 : index
    %26 = vector.load %arg19[%c0_11, %c0_12, %c0_13, %c0_14] : memref<2x8x8x128xf32, #tpu.memory_space<vmem>>, vector<1x1x8x16xf32>
    tpu.vector_store %arg19[%c0_11, %c0_12, %c0_13, %c0_14], %25 {strides = array<i32>} : memref<2x8x8x128xf32, #tpu.memory_space<vmem>>, vector<1x1x8x16xf32>,
    %27 = vector.extract_strided_slice %24 {offsets = [0, 1, 0, 0], sizes = [1, 1, 8, 16], strides = [1, 1, 1, 1]} : vector<1x8x8x128xf32> to vector<1x1x8x16xf32>
    %c0_15 = arith.constant 0 : index
    %c0_16 = arith.constant 0 : index
    %c0_17 = arith.constant 0 : index
    %c16 = arith.constant 16 : index
    %28 = vector.load %arg19[%c0_15, %c0_16, %c0_17, %c16] : memref<2x8x8x128xf32, #tpu.memory_space<vmem>>, vector<1x1x8x16xf32>
    tpu.vector_store %arg19[%c0_15, %c0_16, %c0_17, %c16], %27 {strides = array<i32>} : memref<2x8x8x128xf32, #tpu.memory_space<vmem>>, vector<1x1x8x16xf32>,
    %29 = vector.extract_strided_slice %24 {offsets = [0, 2, 0, 0], sizes = [1, 1, 8, 16], strides = [1, 1, 1, 1]} : vector<1x8x8x128xf32> to vector<1x1x8x16xf32>
    %c0_18 = arith.constant 0 : index
    %c0_19 = arith.constant 0 : index
    %c0_20 = arith.constant 0 : index
    %c32 = arith.constant 32 : index
    %30 = vector.load %arg19[%c0_18, %c0_19, %c0_20, %c32] : memref<2x8x8x128xf32, #tpu.memory_space<vmem>>, vector<1x1x8x16xf32>
    tpu.vector_store %arg19[%c0_18, %c0_19, %c0_20, %c32], %29 {strides = array<i32>} : memref<2x8x8x128xf32, #tpu.memory_space<vmem>>, vector<1x1x8x16xf32>,
    %31 = vector.extract_strided_slice %24 {offsets = [0, 3, 0, 0], sizes = [1, 1, 8, 16], strides = [1, 1, 1, 1]} : vector<1x8x8x128xf32> to vector<1x1x8x16xf32>
    %c0_21 = arith.constant 0 : index
    %c0_22 = arith.constant 0 : index
    %c0_23 = arith.constant 0 : index
    %c48 = arith.constant 48 : index
    %32 = vector.load %arg19[%c0_21, %c0_22, %c0_23, %c48] : memref<2x8x8x128xf32, #tpu.memory_space<vmem>>, vector<1x1x8x16xf32>
    tpu.vector_store %arg19[%c0_21, %c0_22, %c0_23, %c48], %31 {strides = array<i32>} : memref<2x8x8x128xf32, #tpu.memory_space<vmem>>, vector<1x1x8x16xf32>,
    %33 = vector.extract_strided_slice %24 {offsets = [0, 4, 0, 0], sizes = [1, 1, 8, 16], strides = [1, 1, 1, 1]} : vector<1x8x8x128xf32> to vector<1x1x8x16xf32>
    %c0_24 = arith.constant 0 : index
    %c0_25 = arith.constant 0 : index
    %c0_26 = arith.constant 0 : index
    %c64 = arith.constant 64 : index
    %34 = vector.load %arg19[%c0_24, %c0_25, %c0_26, %c64] : memref<2x8x8x128xf32, #tpu.memory_space<vmem>>, vector<1x1x8x16xf32>
    tpu.vector_store %arg19[%c0_24, %c0_25, %c0_26, %c64], %33 {strides = array<i32>} : memref<2x8x8x128xf32, #tpu.memory_space<vmem>>, vector<1x1x8x16xf32>,
    %35 = vector.extract_strided_slice %24 {offsets = [0, 5, 0, 0], sizes = [1, 1, 8, 16], strides = [1, 1, 1, 1]} : vector<1x8x8x128xf32> to vector<1x1x8x16xf32>
    %c0_27 = arith.constant 0 : index
    %c0_28 = arith.constant 0 : index
    %c0_29 = arith.constant 0 : index
    %c80 = arith.constant 80 : index
    %36 = vector.load %arg19[%c0_27, %c0_28, %c0_29, %c80] : memref<2x8x8x128xf32, #tpu.memory_space<vmem>>, vector<1x1x8x16xf32>
    tpu.vector_store %arg19[%c0_27, %c0_28, %c0_29, %c80], %35 {strides = array<i32>} : memref<2x8x8x128xf32, #tpu.memory_space<vmem>>, vector<1x1x8x16xf32>,
    %37 = vector.extract_strided_slice %24 {offsets = [0, 6, 0, 0], sizes = [1, 1, 8, 16], strides = [1, 1, 1, 1]} : vector<1x8x8x128xf32> to vector<1x1x8x16xf32>
    %c0_30 = arith.constant 0 : index
    %c0_31 = arith.constant 0 : index
    %c0_32 = arith.constant 0 : index
    %c96 = arith.constant 96 : index
    %38 = vector.load %arg19[%c0_30, %c0_31, %c0_32, %c96] : memref<2x8x8x128xf32, #tpu.memory_space<vmem>>, vector<1x1x8x16xf32>
    tpu.vector_store %arg19[%c0_30, %c0_31, %c0_32, %c96], %37 {strides = array<i32>} : memref<2x8x8x128xf32, #tpu.memory_space<vmem>>, vector<1x1x8x16xf32>,
    %39 = vector.extract_strided_slice %24 {offsets = [0, 7, 0, 0], sizes = [1, 1, 8, 16], strides = [1, 1, 1, 1]} : vector<1x8x8x128xf32> to vector<1x1x8x16xf32>
    %c0_33 = arith.constant 0 : index
    %c0_34 = arith.constant 0 : index
    %c0_35 = arith.constant 0 : index
    %c112 = arith.constant 112 : index
    %40 = vector.load %arg19[%c0_33, %c0_34, %c0_35, %c112] : memref<2x8x8x128xf32, #tpu.memory_space<vmem>>, vector<1x1x8x16xf32>
    tpu.vector_store %arg19[%c0_33, %c0_34, %c0_35, %c112], %39 {strides = array<i32>} : memref<2x8x8x128xf32, #tpu.memory_space<vmem>>, vector<1x1x8x16xf32>,
    %41 = vector.extract_strided_slice %24 {offsets = [0, 0, 0, 16], sizes = [1, 1, 8, 16], strides = [1, 1, 1, 1]} : vector<1x8x8x128xf32> to vector<1x1x8x16xf32>
    %c0_36 = arith.constant 0 : index
    %c1 = arith.constant 1 : index
    %c0_37 = arith.constant 0 : index
    %c0_38 = arith.constant 0 : index
    %42 = vector.load %arg19[%c0_36, %c1, %c0_37, %c0_38] : memref<2x8x8x128xf32, #tpu.memory_space<vmem>>, vector<1x1x8x16xf32>
    tpu.vector_store %arg19[%c0_36, %c1, %c0_37, %c0_38], %41 {strides = array<i32>} : memref<2x8x8x128xf32, #tpu.memory_space<vmem>>, vector<1x1x8x16xf32>,
    %43 = vector.extract_strided_slice %24 {offsets = [0, 1, 0, 16], sizes = [1, 1, 8, 16], strides = [1, 1, 1, 1]} : vector<1x8x8x128xf32> to vector<1x1x8x16xf32>
    %c0_39 = arith.constant 0 : index
    %c1_40 = arith.constant 1 : index
    %c0_41 = arith.constant 0 : index
    %c16_42 = arith.constant 16 : index
    %44 = vector.load %arg19[%c0_39, %c1_40, %c0_41, %c16_42] : memref<2x8x8x128xf32, #tpu.memory_space<vmem>>, vector<1x1x8x16xf32>
    tpu.vector_store %arg19[%c0_39, %c1_40, %c0_41, %c16_42], %43 {strides = array<i32>} : memref<2x8x8x128xf32, #tpu.memory_space<vmem>>, vector<1x1x8x16xf32>,
    %45 = vector.extract_strided_slice %24 {offsets = [0, 2, 0, 16], sizes = [1, 1, 8, 16], strides = [1, 1, 1, 1]} : vector<1x8x8x128xf32> to vector<1x1x8x16xf32>
    %c0_43 = arith.constant 0 : index
    %c1_44 = arith.constant 1 : index
    %c0_45 = arith.constant 0 : index
    %c32_46 = arith.constant 32 : index
    %46 = vector.load %arg19[%c0_43, %c1_44, %c0_45, %c32_46] : memref<2x8x8x128xf32, #tpu.memory_space<vmem>>, vector<1x1x8x16xf32>
    tpu.vector_store %arg19[%c0_43, %c1_44, %c0_45, %c32_46], %45 {strides = array<i32>} : memref<2x8x8x128xf32, #tpu.memory_space<vmem>>, vector<1x1x8x16xf32>,
    %47 = vector.extract_strided_slice %24 {offsets = [0, 3, 0, 16], sizes = [1, 1, 8, 16], strides = [1, 1, 1, 1]} : vector<1x8x8x128xf32> to vector<1x1x8x16xf32>
    %c0_47 = arith.constant 0 : index
    %c1_48 = arith.constant 1 : index
    %c0_49 = arith.constant 0 : index
    %c48_50 = arith.constant 48 : index
    %48 = vector.load %arg19[%c0_47, %c1_48, %c0_49, %c48_50] : memref<2x8x8x128xf32, #tpu.memory_space<vmem>>, vector<1x1x8x16xf32>
    tpu.vector_store %arg19[%c0_47, %c1_48, %c0_49, %c48_50], %47 {strides = array<i32>} : memref<2x8x8x128xf32, #tpu.memory_space<vmem>>, vector<1x1x8x16xf32>,
    %49 = vector.extract_strided_slice %24 {offsets = [0, 4, 0, 16], sizes = [1, 1, 8, 16], strides = [1, 1, 1, 1]} : vector<1x8x8x128xf32> to vector<1x1x8x16xf32>
    %c0_51 = arith.constant 0 : index
    %c1_52 = arith.constant 1 : index
    %c0_53 = arith.constant 0 : index
    %c64_54 = arith.constant 64 : index
    %50 = vector.load %arg19[%c0_51, %c1_52, %c0_53, %c64_54] : memref<2x8x8x128xf32, #tpu.memory_space<vmem>>, vector<1x1x8x16xf32>
    tpu.vector_store %arg19[%c0_51, %c1_52, %c0_53, %c64_54], %49 {strides = array<i32>} : memref<2x8x8x128xf32, #tpu.memory_space<vmem>>, vector<1x1x8x16xf32>,
    %51 = vector.extract_strided_slice %24 {offsets = [0, 5, 0, 16], sizes = [1, 1, 8, 16], strides = [1, 1, 1, 1]} : vector<1x8x8x128xf32> to vector<1x1x8x16xf32>
    %c0_55 = arith.constant 0 : index
    %c1_56 = arith.constant 1 : index
    %c0_57 = arith.constant 0 : index
    %c80_58 = arith.constant 80 : index
    %52 = vector.load %arg19[%c0_55, %c1_56, %c0_57, %c80_58] : memref<2x8x8x128xf32, #tpu.memory_space<vmem>>, vector<1x1x8x16xf32>
    tpu.vector_store %arg19[%c0_55, %c1_56, %c0_57, %c80_58], %51 {strides = array<i32>} : memref<2x8x8x128xf32, #tpu.memory_space<vmem>>, vector<1x1x8x16xf32>,
    %53 = vector.extract_strided_slice %24 {offsets = [0, 6, 0, 16], sizes = [1, 1, 8, 16], strides = [1, 1, 1, 1]} : vector<1x8x8x128xf32> to vector<1x1x8x16xf32>
    %c0_59 = arith.constant 0 : index
    %c1_60 = arith.constant 1 : index
    %c0_61 = arith.constant 0 : index
    %c96_62 = arith.constant 96 : index
    %54 = vector.load %arg19[%c0_59, %c1_60, %c0_61, %c96_62] : memref<2x8x8x128xf32, #tpu.memory_space<vmem>>, vector<1x1x8x16xf32>
    tpu.vector_store %arg19[%c0_59, %c1_60, %c0_61, %c96_62], %53 {strides = array<i32>} : memref<2x8x8x128xf32, #tpu.memory_space<vmem>>, vector<1x1x8x16xf32>,
    %55 = vector.extract_strided_slice %24 {offsets = [0, 7, 0, 16], sizes = [1, 1, 8, 16], strides = [1, 1, 1, 1]} : vector<1x8x8x128xf32> to vector<1x1x8x16xf32>
    %c0_63 = arith.constant 0 : index
    %c1_64 = arith.constant 1 : index
    %c0_65 = arith.constant 0 : index
    %c112_66 = arith.constant 112 : index
    %56 = vector.load %arg19[%c0_63, %c1_64, %c0_65, %c112_66] : memref<2x8x8x128xf32, #tpu.memory_space<vmem>>, vector<1x1x8x16xf32>
    tpu.vector_store %arg19[%c0_63, %c1_64, %c0_65, %c112_66], %55 {strides = array<i32>} : memref<2x8x8x128xf32, #tpu.memory_space<vmem>>, vector<1x1x8x16xf32>,
    %57 = vector.extract_strided_slice %24 {offsets = [0, 0, 0, 32], sizes = [1, 1, 8, 16], strides = [1, 1, 1, 1]} : vector<1x8x8x128xf32> to vector<1x1x8x16xf32>
    %c0_67 = arith.constant 0 : index
    %c2 = arith.constant 2 : index
    %c0_68 = arith.constant 0 : index
    %c0_69 = arith.constant 0 : index
    %58 = vector.load %arg19[%c0_67, %c2, %c0_68, %c0_69] : memref<2x8x8x128xf32, #tpu.memory_space<vmem>>, vector<1x1x8x16xf32>
    tpu.vector_store %arg19[%c0_67, %c2, %c0_68, %c0_69], %57 {strides = array<i32>} : memref<2x8x8x128xf32, #tpu.memory_space<vmem>>, vector<1x1x8x16xf32>,
    %59 = vector.extract_strided_slice %24 {offsets = [0, 1, 0, 32], sizes = [1, 1, 8, 16], strides = [1, 1, 1, 1]} : vector<1x8x8x128xf32> to vector<1x1x8x16xf32>
    %c0_70 = arith.constant 0 : index
    %c2_71 = arith.constant 2 : index
    %c0_72 = arith.constant 0 : index
    %c16_73 = arith.constant 16 : index
    %60 = vector.load %arg19[%c0_70, %c2_71, %c0_72, %c16_73] : memref<2x8x8x128xf32, #tpu.memory_space<vmem>>, vector<1x1x8x16xf32>
    tpu.vector_store %arg19[%c0_70, %c2_71, %c0_72, %c16_73], %59 {strides = array<i32>} : memref<2x8x8x128xf32, #tpu.memory_space<vmem>>, vector<1x1x8x16xf32>,
    %61 = vector.extract_strided_slice %24 {offsets = [0, 2, 0, 32], sizes = [1, 1, 8, 16], strides = [1, 1, 1, 1]} : vector<1x8x8x128xf32> to vector<1x1x8x16xf32>
    %c0_74 = arith.constant 0 : index
    %c2_75 = arith.constant 2 : index
    %c0_76 = arith.constant 0 : index
    %c32_77 = arith.constant 32 : index
    %62 = vector.load %arg19[%c0_74, %c2_75, %c0_76, %c32_77] : memref<2x8x8x128xf32, #tpu.memory_space<vmem>>, vector<1x1x8x16xf32>
    tpu.vector_store %arg19[%c0_74, %c2_75, %c0_76, %c32_77], %61 {strides = array<i32>} : memref<2x8x8x128xf32, #tpu.memory_space<vmem>>, vector<1x1x8x16xf32>,
    %63 = vector.extract_strided_slice %24 {offsets = [0, 3, 0, 32], sizes = [1, 1, 8, 16], strides = [1, 1, 1, 1]} : vector<1x8x8x128xf32> to vector<1x1x8x16xf32>
    %c0_78 = arith.constant 0 : index
    %c2_79 = arith.constant 2 : index
    %c0_80 = arith.constant 0 : index
    %c48_81 = arith.constant 48 : index
    %64 = vector.load %arg19[%c0_78, %c2_79, %c0_80, %c48_81] : memref<2x8x8x128xf32, #tpu.memory_space<vmem>>, vector<1x1x8x16xf32>
    tpu.vector_store %arg19[%c0_78, %c2_79, %c0_80, %c48_81], %63 {strides = array<i32>} : memref<2x8x8x128xf32, #tpu.memory_space<vmem>>, vector<1x1x8x16xf32>,
    %65 = vector.extract_strided_slice %24 {offsets = [0, 4, 0, 32], sizes = [1, 1, 8, 16], strides = [1, 1, 1, 1]} : vector<1x8x8x128xf32> to vector<1x1x8x16xf32>
    %c0_82 = arith.constant 0 : index
    %c2_83 = arith.constant 2 : index
    %c0_84 = arith.constant 0 : index
    %c64_85 = arith.constant 64 : index
    %66 = vector.load %arg19[%c0_82, %c2_83, %c0_84, %c64_85] : memref<2x8x8x128xf32, #tpu.memory_space<vmem>>, vector<1x1x8x16xf32>
    tpu.vector_store %arg19[%c0_82, %c2_83, %c0_84, %c64_85], %65 {strides = array<i32>} : memref<2x8x8x128xf32, #tpu.memory_space<vmem>>, vector<1x1x8x16xf32>,
    %67 = vector.extract_strided_slice %24 {offsets = [0, 5, 0, 32], sizes = [1, 1, 8, 16], strides = [1, 1, 1, 1]} : vector<1x8x8x128xf32> to vector<1x1x8x16xf32>
    %c0_86 = arith.constant 0 : index
    %c2_87 = arith.constant 2 : index
    %c0_88 = arith.constant 0 : index
    %c80_89 = arith.constant 80 : index
    %68 = vector.load %arg19[%c0_86, %c2_87, %c0_88, %c80_89] : memref<2x8x8x128xf32, #tpu.memory_space<vmem>>, vector<1x1x8x16xf32>
    tpu.vector_store %arg19[%c0_86, %c2_87, %c0_88, %c80_89], %67 {strides = array<i32>} : memref<2x8x8x128xf32, #tpu.memory_space<vmem>>, vector<1x1x8x16xf32>,
    %69 = vector.extract_strided_slice %24 {offsets = [0, 6, 0, 32], sizes = [1, 1, 8, 16], strides = [1, 1, 1, 1]} : vector<1x8x8x128xf32> to vector<1x1x8x16xf32>
    %c0_90 = arith.constant 0 : index
    %c2_91 = arith.constant 2 : index
    %c0_92 = arith.constant 0 : index
    %c96_93 = arith.constant 96 : index
    %70 = vector.load %arg19[%c0_90, %c2_91, %c0_92, %c96_93] : memref<2x8x8x128xf32, #tpu.memory_space<vmem>>, vector<1x1x8x16xf32>
    tpu.vector_store %arg19[%c0_90, %c2_91, %c0_92, %c96_93], %69 {strides = array<i32>} : memref<2x8x8x128xf32, #tpu.memory_space<vmem>>, vector<1x1x8x16xf32>,
    %71 = vector.extract_strided_slice %24 {offsets = [0, 7, 0, 32], sizes = [1, 1, 8, 16], strides = [1, 1, 1, 1]} : vector<1x8x8x128xf32> to vector<1x1x8x16xf32>
    %c0_94 = arith.constant 0 : index
    %c2_95 = arith.constant 2 : index
    %c0_96 = arith.constant 0 : index
    %c112_97 = arith.constant 112 : index
    %72 = vector.load %arg19[%c0_94, %c2_95, %c0_96, %c112_97] : memref<2x8x8x128xf32, #tpu.memory_space<vmem>>, vector<1x1x8x16xf32>
    tpu.vector_store %arg19[%c0_94, %c2_95, %c0_96, %c112_97], %71 {strides = array<i32>} : memref<2x8x8x128xf32, #tpu.memory_space<vmem>>, vector<1x1x8x16xf32>,
    %73 = vector.extract_strided_slice %24 {offsets = [0, 0, 0, 48], sizes = [1, 1, 8, 16], strides = [1, 1, 1, 1]} : vector<1x8x8x128xf32> to vector<1x1x8x16xf32>
    %c0_98 = arith.constant 0 : index
    %c3 = arith.constant 3 : index
    %c0_99 = arith.constant 0 : index
    %c0_100 = arith.constant 0 : index
    %74 = vector.load %arg19[%c0_98, %c3, %c0_99, %c0_100] : memref<2x8x8x128xf32, #tpu.memory_space<vmem>>, vector<1x1x8x16xf32>
    tpu.vector_store %arg19[%c0_98, %c3, %c0_99, %c0_100], %73 {strides = array<i32>} : memref<2x8x8x128xf32, #tpu.memory_space<vmem>>, vector<1x1x8x16xf32>,
    %75 = vector.extract_strided_slice %24 {offsets = [0, 1, 0, 48], sizes = [1, 1, 8, 16], strides = [1, 1, 1, 1]} : vector<1x8x8x128xf32> to vector<1x1x8x16xf32>
    %c0_101 = arith.constant 0 : index
    %c3_102 = arith.constant 3 : index
    %c0_103 = arith.constant 0 : index
    %c16_104 = arith.constant 16 : index
    %76 = vector.load %arg19[%c0_101, %c3_102, %c0_103, %c16_104] : memref<2x8x8x128xf32, #tpu.memory_space<vmem>>, vector<1x1x8x16xf32>
    tpu.vector_store %arg19[%c0_101, %c3_102, %c0_103, %c16_104], %75 {strides = array<i32>} : memref<2x8x8x128xf32, #tpu.memory_space<vmem>>, vector<1x1x8x16xf32>,
    %77 = vector.extract_strided_slice %24 {offsets = [0, 2, 0, 48], sizes = [1, 1, 8, 16], strides = [1, 1, 1, 1]} : vector<1x8x8x128xf32> to vector<1x1x8x16xf32>
    %c0_105 = arith.constant 0 : index
    %c3_106 = arith.constant 3 : index
    %c0_107 = arith.constant 0 : index
    %c32_108 = arith.constant 32 : index
    %78 = vector.load %arg19[%c0_105, %c3_106, %c0_107, %c32_108] : memref<2x8x8x128xf32, #tpu.memory_space<vmem>>, vector<1x1x8x16xf32>
    tpu.vector_store %arg19[%c0_105, %c3_106, %c0_107, %c32_108], %77 {strides = array<i32>} : memref<2x8x8x128xf32, #tpu.memory_space<vmem>>, vector<1x1x8x16xf32>,
    %79 = vector.extract_strided_slice %24 {offsets = [0, 3, 0, 48], sizes = [1, 1, 8, 16], strides = [1, 1, 1, 1]} : vector<1x8x8x128xf32> to vector<1x1x8x16xf32>
    %c0_109 = arith.constant 0 : index
    %c3_110 = arith.constant 3 : index
    %c0_111 = arith.constant 0 : index
    %c48_112 = arith.constant 48 : index
    %80 = vector.load %arg19[%c0_109, %c3_110, %c0_111, %c48_112] : memref<2x8x8x128xf32, #tpu.memory_space<vmem>>, vector<1x1x8x16xf32>
    tpu.vector_store %arg19[%c0_109, %c3_110, %c0_111, %c48_112], %79 {strides = array<i32>} : memref<2x8x8x128xf32, #tpu.memory_space<vmem>>, vector<1x1x8x16xf32>,
    %81 = vector.extract_strided_slice %24 {offsets = [0, 4, 0, 48], sizes = [1, 1, 8, 16], strides = [1, 1, 1, 1]} : vector<1x8x8x128xf32> to vector<1x1x8x16xf32>
    %c0_113 = arith.constant 0 : index
    %c3_114 = arith.constant 3 : index
    %c0_115 = arith.constant 0 : index
    %c64_116 = arith.constant 64 : index
    %82 = vector.load %arg19[%c0_113, %c3_114, %c0_115, %c64_116] : memref<2x8x8x128xf32, #tpu.memory_space<vmem>>, vector<1x1x8x16xf32>
    tpu.vector_store %arg19[%c0_113, %c3_114, %c0_115, %c64_116], %81 {strides = array<i32>} : memref<2x8x8x128xf32, #tpu.memory_space<vmem>>, vector<1x1x8x16xf32>,
    %83 = vector.extract_strided_slice %24 {offsets = [0, 5, 0, 48], sizes = [1, 1, 8, 16], strides = [1, 1, 1, 1]} : vector<1x8x8x128xf32> to vector<1x1x8x16xf32>
    %c0_117 = arith.constant 0 : index
    %c3_118 = arith.constant 3 : index
    %c0_119 = arith.constant 0 : index
    %c80_120 = arith.constant 80 : index
    %84 = vector.load %arg19[%c0_117, %c3_118, %c0_119, %c80_120] : memref<2x8x8x128xf32, #tpu.memory_space<vmem>>, vector<1x1x8x16xf32>
    tpu.vector_store %arg19[%c0_117, %c3_118, %c0_119, %c80_120], %83 {strides = array<i32>} : memref<2x8x8x128xf32, #tpu.memory_space<vmem>>, vector<1x1x8x16xf32>,
    %85 = vector.extract_strided_slice %24 {offsets = [0, 6, 0, 48], sizes = [1, 1, 8, 16], strides = [1, 1, 1, 1]} : vector<1x8x8x128xf32> to vector<1x1x8x16xf32>
    %c0_121 = arith.constant 0 : index
    %c3_122 = arith.constant 3 : index
    %c0_123 = arith.constant 0 : index
    %c96_124 = arith.constant 96 : index
    %86 = vector.load %arg19[%c0_121, %c3_122, %c0_123, %c96_124] : memref<2x8x8x128xf32, #tpu.memory_space<vmem>>, vector<1x1x8x16xf32>
    tpu.vector_store %arg19[%c0_121, %c3_122, %c0_123, %c96_124], %85 {strides = array<i32>} : memref<2x8x8x128xf32, #tpu.memory_space<vmem>>, vector<1x1x8x16xf32>,
    %87 = vector.extract_strided_slice %24 {offsets = [0, 7, 0, 48], sizes = [1, 1, 8, 16], strides = [1, 1, 1, 1]} : vector<1x8x8x128xf32> to vector<1x1x8x16xf32>
    %c0_125 = arith.constant 0 : index
    %c3_126 = arith.constant 3 : index
    %c0_127 = arith.constant 0 : index
    %c112_128 = arith.constant 112 : index
    %88 = vector.load %arg19[%c0_125, %c3_126, %c0_127, %c112_128] : memref<2x8x8x128xf32, #tpu.memory_space<vmem>>, vector<1x1x8x16xf32>
    tpu.vector_store %arg19[%c0_125, %c3_126, %c0_127, %c112_128], %87 {strides = array<i32>} : memref<2x8x8x128xf32, #tpu.memory_space<vmem>>, vector<1x1x8x16xf32>,
    %89 = vector.extract_strided_slice %24 {offsets = [0, 0, 0, 64], sizes = [1, 1, 8, 16], strides = [1, 1, 1, 1]} : vector<1x8x8x128xf32> to vector<1x1x8x16xf32>
    %c0_129 = arith.constant 0 : index
    %c4 = arith.constant 4 : index
    %c0_130 = arith.constant 0 : index
    %c0_131 = arith.constant 0 : index
    %90 = vector.load %arg19[%c0_129, %c4, %c0_130, %c0_131] : memref<2x8x8x128xf32, #tpu.memory_space<vmem>>, vector<1x1x8x16xf32>
    tpu.vector_store %arg19[%c0_129, %c4, %c0_130, %c0_131], %89 {strides = array<i32>} : memref<2x8x8x128xf32, #tpu.memory_space<vmem>>, vector<1x1x8x16xf32>,
    %91 = vector.extract_strided_slice %24 {offsets = [0, 1, 0, 64], sizes = [1, 1, 8, 16], strides = [1, 1, 1, 1]} : vector<1x8x8x128xf32> to vector<1x1x8x16xf32>
    %c0_132 = arith.constant 0 : index
    %c4_133 = arith.constant 4 : index
    %c0_134 = arith.constant 0 : index
    %c16_135 = arith.constant 16 : index
    %92 = vector.load %arg19[%c0_132, %c4_133, %c0_134, %c16_135] : memref<2x8x8x128xf32, #tpu.memory_space<vmem>>, vector<1x1x8x16xf32>
    tpu.vector_store %arg19[%c0_132, %c4_133, %c0_134, %c16_135], %91 {strides = array<i32>} : memref<2x8x8x128xf32, #tpu.memory_space<vmem>>, vector<1x1x8x16xf32>,
    %93 = vector.extract_strided_slice %24 {offsets = [0, 2, 0, 64], sizes = [1, 1, 8, 16], strides = [1, 1, 1, 1]} : vector<1x8x8x128xf32> to vector<1x1x8x16xf32>
    %c0_136 = arith.constant 0 : index
    %c4_137 = arith.constant 4 : index
    %c0_138 = arith.constant 0 : index
    %c32_139 = arith.constant 32 : index
    %94 = vector.load %arg19[%c0_136, %c4_137, %c0_138, %c32_139] : memref<2x8x8x128xf32, #tpu.memory_space<vmem>>, vector<1x1x8x16xf32>
    tpu.vector_store %arg19[%c0_136, %c4_137, %c0_138, %c32_139], %93 {strides = array<i32>} : memref<2x8x8x128xf32, #tpu.memory_space<vmem>>, vector<1x1x8x16xf32>,
    %95 = vector.extract_strided_slice %24 {offsets = [0, 3, 0, 64], sizes = [1, 1, 8, 16], strides = [1, 1, 1, 1]} : vector<1x8x8x128xf32> to vector<1x1x8x16xf32>
    %c0_140 = arith.constant 0 : index
    %c4_141 = arith.constant 4 : index
    %c0_142 = arith.constant 0 : index
    %c48_143 = arith.constant 48 : index
    %96 = vector.load %arg19[%c0_140, %c4_141, %c0_142, %c48_143] : memref<2x8x8x128xf32, #tpu.memory_space<vmem>>, vector<1x1x8x16xf32>
    tpu.vector_store %arg19[%c0_140, %c4_141, %c0_142, %c48_143], %95 {strides = array<i32>} : memref<2x8x8x128xf32, #tpu.memory_space<vmem>>, vector<1x1x8x16xf32>,
    %97 = vector.extract_strided_slice %24 {offsets = [0, 4, 0, 64], sizes = [1, 1, 8, 16], strides = [1, 1, 1, 1]} : vector<1x8x8x128xf32> to vector<1x1x8x16xf32>
    %c0_144 = arith.constant 0 : index
    %c4_145 = arith.constant 4 : index
    %c0_146 = arith.constant 0 : index
    %c64_147 = arith.constant 64 : index
    %98 = vector.load %arg19[%c0_144, %c4_145, %c0_146, %c64_147] : memref<2x8x8x128xf32, #tpu.memory_space<vmem>>, vector<1x1x8x16xf32>
    tpu.vector_store %arg19[%c0_144, %c4_145, %c0_146, %c64_147], %97 {strides = array<i32>} : memref<2x8x8x128xf32, #tpu.memory_space<vmem>>, vector<1x1x8x16xf32>,
    %99 = vector.extract_strided_slice %24 {offsets = [0, 5, 0, 64], sizes = [1, 1, 8, 16], strides = [1, 1, 1, 1]} : vector<1x8x8x128xf32> to vector<1x1x8x16xf32>
    %c0_148 = arith.constant 0 : index
    %c4_149 = arith.constant 4 : index
    %c0_150 = arith.constant 0 : index
    %c80_151 = arith.constant 80 : index
    %100 = vector.load %arg19[%c0_148, %c4_149, %c0_150, %c80_151] : memref<2x8x8x128xf32, #tpu.memory_space<vmem>>, vector<1x1x8x16xf32>
    tpu.vector_store %arg19[%c0_148, %c4_149, %c0_150, %c80_151], %99 {strides = array<i32>} : memref<2x8x8x128xf32, #tpu.memory_space<vmem>>, vector<1x1x8x16xf32>,
    %101 = vector.extract_strided_slice %24 {offsets = [0, 6, 0, 64], sizes = [1, 1, 8, 16], strides = [1, 1, 1, 1]} : vector<1x8x8x128xf32> to vector<1x1x8x16xf32>
    %c0_152 = arith.constant 0 : index
    %c4_153 = arith.constant 4 : index
    %c0_154 = arith.constant 0 : index
    %c96_155 = arith.constant 96 : index
    %102 = vector.load %arg19[%c0_152, %c4_153, %c0_154, %c96_155] : memref<2x8x8x128xf32, #tpu.memory_space<vmem>>, vector<1x1x8x16xf32>
    tpu.vector_store %arg19[%c0_152, %c4_153, %c0_154, %c96_155], %101 {strides = array<i32>} : memref<2x8x8x128xf32, #tpu.memory_space<vmem>>, vector<1x1x8x16xf32>,
    %103 = vector.extract_strided_slice %24 {offsets = [0, 7, 0, 64], sizes = [1, 1, 8, 16], strides = [1, 1, 1, 1]} : vector<1x8x8x128xf32> to vector<1x1x8x16xf32>
    %c0_156 = arith.constant 0 : index
    %c4_157 = arith.constant 4 : index
    %c0_158 = arith.constant 0 : index
    %c112_159 = arith.constant 112 : index
    %104 = vector.load %arg19[%c0_156, %c4_157, %c0_158, %c112_159] : memref<2x8x8x128xf32, #tpu.memory_space<vmem>>, vector<1x1x8x16xf32>
    tpu.vector_store %arg19[%c0_156, %c4_157, %c0_158, %c112_159], %103 {strides = array<i32>} : memref<2x8x8x128xf32, #tpu.memory_space<vmem>>, vector<1x1x8x16xf32>,
    %105 = vector.extract_strided_slice %24 {offsets = [0, 0, 0, 80], sizes = [1, 1, 8, 16], strides = [1, 1, 1, 1]} : vector<1x8x8x128xf32> to vector<1x1x8x16xf32>
    %c0_160 = arith.constant 0 : index
    %c5 = arith.constant 5 : index
    %c0_161 = arith.constant 0 : index
    %c0_162 = arith.constant 0 : index
    %106 = vector.load %arg19[%c0_160, %c5, %c0_161, %c0_162] : memref<2x8x8x128xf32, #tpu.memory_space<vmem>>, vector<1x1x8x16xf32>
    tpu.vector_store %arg19[%c0_160, %c5, %c0_161, %c0_162], %105 {strides = array<i32>} : memref<2x8x8x128xf32, #tpu.memory_space<vmem>>, vector<1x1x8x16xf32>,
    %107 = vector.extract_strided_slice %24 {offsets = [0, 1, 0, 80], sizes = [1, 1, 8, 16], strides = [1, 1, 1, 1]} : vector<1x8x8x128xf32> to vector<1x1x8x16xf32>
    %c0_163 = arith.constant 0 : index
    %c5_164 = arith.constant 5 : index
    %c0_165 = arith.constant 0 : index
    %c16_166 = arith.constant 16 : index
    %108 = vector.load %arg19[%c0_163, %c5_164, %c0_165, %c16_166] : memref<2x8x8x128xf32, #tpu.memory_space<vmem>>, vector<1x1x8x16xf32>
    tpu.vector_store %arg19[%c0_163, %c5_164, %c0_165, %c16_166], %107 {strides = array<i32>} : memref<2x8x8x128xf32, #tpu.memory_space<vmem>>, vector<1x1x8x16xf32>,
    %109 = vector.extract_strided_slice %24 {offsets = [0, 2, 0, 80], sizes = [1, 1, 8, 16], strides = [1, 1, 1, 1]} : vector<1x8x8x128xf32> to vector<1x1x8x16xf32>
    %c0_167 = arith.constant 0 : index
    %c5_168 = arith.constant 5 : index
    %c0_169 = arith.constant 0 : index
    %c32_170 = arith.constant 32 : index
    %110 = vector.load %arg19[%c0_167, %c5_168, %c0_169, %c32_170] : memref<2x8x8x128xf32, #tpu.memory_space<vmem>>, vector<1x1x8x16xf32>
    tpu.vector_store %arg19[%c0_167, %c5_168, %c0_169, %c32_170], %109 {strides = array<i32>} : memref<2x8x8x128xf32, #tpu.memory_space<vmem>>, vector<1x1x8x16xf32>,
    %111 = vector.extract_strided_slice %24 {offsets = [0, 3, 0, 80], sizes = [1, 1, 8, 16], strides = [1, 1, 1, 1]} : vector<1x8x8x128xf32> to vector<1x1x8x16xf32>
    %c0_171 = arith.constant 0 : index
    %c5_172 = arith.constant 5 : index
    %c0_173 = arith.constant 0 : index
    %c48_174 = arith.constant 48 : index
    %112 = vector.load %arg19[%c0_171, %c5_172, %c0_173, %c48_174] : memref<2x8x8x128xf32, #tpu.memory_space<vmem>>, vector<1x1x8x16xf32>
    tpu.vector_store %arg19[%c0_171, %c5_172, %c0_173, %c48_174], %111 {strides = array<i32>} : memref<2x8x8x128xf32, #tpu.memory_space<vmem>>, vector<1x1x8x16xf32>,
    %113 = vector.extract_strided_slice %24 {offsets = [0, 4, 0, 80], sizes = [1, 1, 8, 16], strides = [1, 1, 1, 1]} : vector<1x8x8x128xf32> to vector<1x1x8x16xf32>
    %c0_175 = arith.constant 0 : index
    %c5_176 = arith.constant 5 : index
    %c0_177 = arith.constant 0 : index
    %c64_178 = arith.constant 64 : index
    %114 = vector.load %arg19[%c0_175, %c5_176, %c0_177, %c64_178] : memref<2x8x8x128xf32, #tpu.memory_space<vmem>>, vector<1x1x8x16xf32>
    tpu.vector_store %arg19[%c0_175, %c5_176, %c0_177, %c64_178], %113 {strides = array<i32>} : memref<2x8x8x128xf32, #tpu.memory_space<vmem>>, vector<1x1x8x16xf32>,
    %115 = vector.extract_strided_slice %24 {offsets = [0, 5, 0, 80], sizes = [1, 1, 8, 16], strides = [1, 1, 1, 1]} : vector<1x8x8x128xf32> to vector<1x1x8x16xf32>
    %c0_179 = arith.constant 0 : index
    %c5_180 = arith.constant 5 : index
    %c0_181 = arith.constant 0 : index
    %c80_182 = arith.constant 80 : index
    %116 = vector.load %arg19[%c0_179, %c5_180, %c0_181, %c80_182] : memref<2x8x8x128xf32, #tpu.memory_space<vmem>>, vector<1x1x8x16xf32>
    tpu.vector_store %arg19[%c0_179, %c5_180, %c0_181, %c80_182], %115 {strides = array<i32>} : memref<2x8x8x128xf32, #tpu.memory_space<vmem>>, vector<1x1x8x16xf32>,
    %117 = vector.extract_strided_slice %24 {offsets = [0, 6, 0, 80], sizes = [1, 1, 8, 16], strides = [1, 1, 1, 1]} : vector<1x8x8x128xf32> to vector<1x1x8x16xf32>
    %c0_183 = arith.constant 0 : index
    %c5_184 = arith.constant 5 : index
    %c0_185 = arith.constant 0 : index
    %c96_186 = arith.constant 96 : index
    %118 = vector.load %arg19[%c0_183, %c5_184, %c0_185, %c96_186] : memref<2x8x8x128xf32, #tpu.memory_space<vmem>>, vector<1x1x8x16xf32>
    tpu.vector_store %arg19[%c0_183, %c5_184, %c0_185, %c96_186], %117 {strides = array<i32>} : memref<2x8x8x128xf32, #tpu.memory_space<vmem>>, vector<1x1x8x16xf32>,
    %119 = vector.extract_strided_slice %24 {offsets = [0, 7, 0, 80], sizes = [1, 1, 8, 16], strides = [1, 1, 1, 1]} : vector<1x8x8x128xf32> to vector<1x1x8x16xf32>
    %c0_187 = arith.constant 0 : index
    %c5_188 = arith.constant 5 : index
    %c0_189 = arith.constant 0 : index
    %c112_190 = arith.constant 112 : index
    %120 = vector.load %arg19[%c0_187, %c5_188, %c0_189, %c112_190] : memref<2x8x8x128xf32, #tpu.memory_space<vmem>>, vector<1x1x8x16xf32>
    tpu.vector_store %arg19[%c0_187, %c5_188, %c0_189, %c112_190], %119 {strides = array<i32>} : memref<2x8x8x128xf32, #tpu.memory_space<vmem>>, vector<1x1x8x16xf32>,
    %121 = vector.extract_strided_slice %24 {offsets = [0, 0, 0, 96], sizes = [1, 1, 8, 16], strides = [1, 1, 1, 1]} : vector<1x8x8x128xf32> to vector<1x1x8x16xf32>
    %c0_191 = arith.constant 0 : index
    %c6 = arith.constant 6 : index
    %c0_192 = arith.constant 0 : index
    %c0_193 = arith.constant 0 : index
    %122 = vector.load %arg19[%c0_191, %c6, %c0_192, %c0_193] : memref<2x8x8x128xf32, #tpu.memory_space<vmem>>, vector<1x1x8x16xf32>
    tpu.vector_store %arg19[%c0_191, %c6, %c0_192, %c0_193], %121 {strides = array<i32>} : memref<2x8x8x128xf32, #tpu.memory_space<vmem>>, vector<1x1x8x16xf32>,
    %123 = vector.extract_strided_slice %24 {offsets = [0, 1, 0, 96], sizes = [1, 1, 8, 16], strides = [1, 1, 1, 1]} : vector<1x8x8x128xf32> to vector<1x1x8x16xf32>
    %c0_194 = arith.constant 0 : index
    %c6_195 = arith.constant 6 : index
    %c0_196 = arith.constant 0 : index
    %c16_197 = arith.constant 16 : index
    %124 = vector.load %arg19[%c0_194, %c6_195, %c0_196, %c16_197] : memref<2x8x8x128xf32, #tpu.memory_space<vmem>>, vector<1x1x8x16xf32>
    tpu.vector_store %arg19[%c0_194, %c6_195, %c0_196, %c16_197], %123 {strides = array<i32>} : memref<2x8x8x128xf32, #tpu.memory_space<vmem>>, vector<1x1x8x16xf32>,
    %125 = vector.extract_strided_slice %24 {offsets = [0, 2, 0, 96], sizes = [1, 1, 8, 16], strides = [1, 1, 1, 1]} : vector<1x8x8x128xf32> to vector<1x1x8x16xf32>
    %c0_198 = arith.constant 0 : index
    %c6_199 = arith.constant 6 : index
    %c0_200 = arith.constant 0 : index
    %c32_201 = arith.constant 32 : index
    %126 = vector.load %arg19[%c0_198, %c6_199, %c0_200, %c32_201] : memref<2x8x8x128xf32, #tpu.memory_space<vmem>>, vector<1x1x8x16xf32>
    tpu.vector_store %arg19[%c0_198, %c6_199, %c0_200, %c32_201], %125 {strides = array<i32>} : memref<2x8x8x128xf32, #tpu.memory_space<vmem>>, vector<1x1x8x16xf32>,
    %127 = vector.extract_strided_slice %24 {offsets = [0, 3, 0, 96], sizes = [1, 1, 8, 16], strides = [1, 1, 1, 1]} : vector<1x8x8x128xf32> to vector<1x1x8x16xf32>
    %c0_202 = arith.constant 0 : index
    %c6_203 = arith.constant 6 : index
    %c0_204 = arith.constant 0 : index
    %c48_205 = arith.constant 48 : index
    %128 = vector.load %arg19[%c0_202, %c6_203, %c0_204, %c48_205] : memref<2x8x8x128xf32, #tpu.memory_space<vmem>>, vector<1x1x8x16xf32>
    tpu.vector_store %arg19[%c0_202, %c6_203, %c0_204, %c48_205], %127 {strides = array<i32>} : memref<2x8x8x128xf32, #tpu.memory_space<vmem>>, vector<1x1x8x16xf32>,
    %129 = vector.extract_strided_slice %24 {offsets = [0, 4, 0, 96], sizes = [1, 1, 8, 16], strides = [1, 1, 1, 1]} : vector<1x8x8x128xf32> to vector<1x1x8x16xf32>
    %c0_206 = arith.constant 0 : index
    %c6_207 = arith.constant 6 : index
    %c0_208 = arith.constant 0 : index
    %c64_209 = arith.constant 64 : index
    %130 = vector.load %arg19[%c0_206, %c6_207, %c0_208, %c64_209] : memref<2x8x8x128xf32, #tpu.memory_space<vmem>>, vector<1x1x8x16xf32>
    tpu.vector_store %arg19[%c0_206, %c6_207, %c0_208, %c64_209], %129 {strides = array<i32>} : memref<2x8x8x128xf32, #tpu.memory_space<vmem>>, vector<1x1x8x16xf32>,
    %131 = vector.extract_strided_slice %24 {offsets = [0, 5, 0, 96], sizes = [1, 1, 8, 16], strides = [1, 1, 1, 1]} : vector<1x8x8x128xf32> to vector<1x1x8x16xf32>
    %c0_210 = arith.constant 0 : index
    %c6_211 = arith.constant 6 : index
    %c0_212 = arith.constant 0 : index
    %c80_213 = arith.constant 80 : index
    %132 = vector.load %arg19[%c0_210, %c6_211, %c0_212, %c80_213] : memref<2x8x8x128xf32, #tpu.memory_space<vmem>>, vector<1x1x8x16xf32>
    tpu.vector_store %arg19[%c0_210, %c6_211, %c0_212, %c80_213], %131 {strides = array<i32>} : memref<2x8x8x128xf32, #tpu.memory_space<vmem>>, vector<1x1x8x16xf32>,
    %133 = vector.extract_strided_slice %24 {offsets = [0, 6, 0, 96], sizes = [1, 1, 8, 16], strides = [1, 1, 1, 1]} : vector<1x8x8x128xf32> to vector<1x1x8x16xf32>
    %c0_214 = arith.constant 0 : index
    %c6_215 = arith.constant 6 : index
    %c0_216 = arith.constant 0 : index
    %c96_217 = arith.constant 96 : index
    %134 = vector.load %arg19[%c0_214, %c6_215, %c0_216, %c96_217] : memref<2x8x8x128xf32, #tpu.memory_space<vmem>>, vector<1x1x8x16xf32>
    tpu.vector_store %arg19[%c0_214, %c6_215, %c0_216, %c96_217], %133 {strides = array<i32>} : memref<2x8x8x128xf32, #tpu.memory_space<vmem>>, vector<1x1x8x16xf32>,
    %135 = vector.extract_strided_slice %24 {offsets = [0, 7, 0, 96], sizes = [1, 1, 8, 16], strides = [1, 1, 1, 1]} : vector<1x8x8x128xf32> to vector<1x1x8x16xf32>
    %c0_218 = arith.constant 0 : index
    %c6_219 = arith.constant 6 : index
    %c0_220 = arith.constant 0 : index
    %c112_221 = arith.constant 112 : index
    %136 = vector.load %arg19[%c0_218, %c6_219, %c0_220, %c112_221] : memref<2x8x8x128xf32, #tpu.memory_space<vmem>>, vector<1x1x8x16xf32>
    tpu.vector_store %arg19[%c0_218, %c6_219, %c0_220, %c112_221], %135 {strides = array<i32>} : memref<2x8x8x128xf32, #tpu.memory_space<vmem>>, vector<1x1x8x16xf32>,
    %137 = vector.extract_strided_slice %24 {offsets = [0, 0, 0, 112], sizes = [1, 1, 8, 16], strides = [1, 1, 1, 1]} : vector<1x8x8x128xf32> to vector<1x1x8x16xf32>
    %c0_222 = arith.constant 0 : index
    %c7 = arith.constant 7 : index
    %c0_223 = arith.constant 0 : index
    %c0_224 = arith.constant 0 : index
    %138 = vector.load %arg19[%c0_222, %c7, %c0_223, %c0_224] : memref<2x8x8x128xf32, #tpu.memory_space<vmem>>, vector<1x1x8x16xf32>
    tpu.vector_store %arg19[%c0_222, %c7, %c0_223, %c0_224], %137 {strides = array<i32>} : memref<2x8x8x128xf32, #tpu.memory_space<vmem>>, vector<1x1x8x16xf32>,
    %139 = vector.extract_strided_slice %24 {offsets = [0, 1, 0, 112], sizes = [1, 1, 8, 16], strides = [1, 1, 1, 1]} : vector<1x8x8x128xf32> to vector<1x1x8x16xf32>
    %c0_225 = arith.constant 0 : index
    %c7_226 = arith.constant 7 : index
    %c0_227 = arith.constant 0 : index
    %c16_228 = arith.constant 16 : index
    %140 = vector.load %arg19[%c0_225, %c7_226, %c0_227, %c16_228] : memref<2x8x8x128xf32, #tpu.memory_space<vmem>>, vector<1x1x8x16xf32>
    tpu.vector_store %arg19[%c0_225, %c7_226, %c0_227, %c16_228], %139 {strides = array<i32>} : memref<2x8x8x128xf32, #tpu.memory_space<vmem>>, vector<1x1x8x16xf32>,
    %141 = vector.extract_strided_slice %24 {offsets = [0, 2, 0, 112], sizes = [1, 1, 8, 16], strides = [1, 1, 1, 1]} : vector<1x8x8x128xf32> to vector<1x1x8x16xf32>
    %c0_229 = arith.constant 0 : index
    %c7_230 = arith.constant 7 : index
    %c0_231 = arith.constant 0 : index
    %c32_232 = arith.constant 32 : index
    %142 = vector.load %arg19[%c0_229, %c7_230, %c0_231, %c32_232] : memref<2x8x8x128xf32, #tpu.memory_space<vmem>>, vector<1x1x8x16xf32>
    tpu.vector_store %arg19[%c0_229, %c7_230, %c0_231, %c32_232], %141 {strides = array<i32>} : memref<2x8x8x128xf32, #tpu.memory_space<vmem>>, vector<1x1x8x16xf32>,
    %143 = vector.extract_strided_slice %24 {offsets = [0, 3, 0, 112], sizes = [1, 1, 8, 16], strides = [1, 1, 1, 1]} : vector<1x8x8x128xf32> to vector<1x1x8x16xf32>
    %c0_233 = arith.constant 0 : index
    %c7_234 = arith.constant 7 : index
    %c0_235 = arith.constant 0 : index
    %c48_236 = arith.constant 48 : index
    %144 = vector.load %arg19[%c0_233, %c7_234, %c0_235, %c48_236] : memref<2x8x8x128xf32, #tpu.memory_space<vmem>>, vector<1x1x8x16xf32>
    tpu.vector_store %arg19[%c0_233, %c7_234, %c0_235, %c48_236], %143 {strides = array<i32>} : memref<2x8x8x128xf32, #tpu.memory_space<vmem>>, vector<1x1x8x16xf32>,
    %145 = vector.extract_strided_slice %24 {offsets = [0, 4, 0, 112], sizes = [1, 1, 8, 16], strides = [1, 1, 1, 1]} : vector<1x8x8x128xf32> to vector<1x1x8x16xf32>
    %c0_237 = arith.constant 0 : index
    %c7_238 = arith.constant 7 : index
    %c0_239 = arith.constant 0 : index
    %c64_240 = arith.constant 64 : index
    %146 = vector.load %arg19[%c0_237, %c7_238, %c0_239, %c64_240] : memref<2x8x8x128xf32, #tpu.memory_space<vmem>>, vector<1x1x8x16xf32>
    tpu.vector_store %arg19[%c0_237, %c7_238, %c0_239, %c64_240], %145 {strides = array<i32>} : memref<2x8x8x128xf32, #tpu.memory_space<vmem>>, vector<1x1x8x16xf32>,
    %147 = vector.extract_strided_slice %24 {offsets = [0, 5, 0, 112], sizes = [1, 1, 8, 16], strides = [1, 1, 1, 1]} : vector<1x8x8x128xf32> to vector<1x1x8x16xf32>
    %c0_241 = arith.constant 0 : index
    %c7_242 = arith.constant 7 : index
    %c0_243 = arith.constant 0 : index
    %c80_244 = arith.constant 80 : index
    %148 = vector.load %arg19[%c0_241, %c7_242, %c0_243, %c80_244] : memref<2x8x8x128xf32, #tpu.memory_space<vmem>>, vector<1x1x8x16xf32>
    tpu.vector_store %arg19[%c0_241, %c7_242, %c0_243, %c80_244], %147 {strides = array<i32>} : memref<2x8x8x128xf32, #tpu.memory_space<vmem>>, vector<1x1x8x16xf32>,
    %149 = vector.extract_strided_slice %24 {offsets = [0, 6, 0, 112], sizes = [1, 1, 8, 16], strides = [1, 1, 1, 1]} : vector<1x8x8x128xf32> to vector<1x1x8x16xf32>
    %c0_245 = arith.constant 0 : index
    %c7_246 = arith.constant 7 : index
    %c0_247 = arith.constant 0 : index
    %c96_248 = arith.constant 96 : index
    %150 = vector.load %arg19[%c0_245, %c7_246, %c0_247, %c96_248] : memref<2x8x8x128xf32, #tpu.memory_space<vmem>>, vector<1x1x8x16xf32>
    tpu.vector_store %arg19[%c0_245, %c7_246, %c0_247, %c96_248], %149 {strides = array<i32>} : memref<2x8x8x128xf32, #tpu.memory_space<vmem>>, vector<1x1x8x16xf32>,
    %151 = vector.extract_strided_slice %24 {offsets = [0, 7, 0, 112], sizes = [1, 1, 8, 16], strides = [1, 1, 1, 1]} : vector<1x8x8x128xf32> to vector<1x1x8x16xf32>
    %c0_249 = arith.constant 0 : index
    %c7_250 = arith.constant 7 : index
    %c0_251 = arith.constant 0 : index
    %c112_252 = arith.constant 112 : index
    %152 = vector.load %arg19[%c0_249, %c7_250, %c0_251, %c112_252] : memref<2x8x8x128xf32, #tpu.memory_space<vmem>>, vector<1x1x8x16xf32>
    tpu.vector_store %arg19[%c0_249, %c7_250, %c0_251, %c112_252], %151 {strides = array<i32>} : memref<2x8x8x128xf32, #tpu.memory_space<vmem>>, vector<1x1x8x16xf32>,
    %153 = vector.extract_strided_slice %24 {offsets = [0, 0, 0, 0], sizes = [1, 8, 1, 16], strides = [1, 1, 1, 1]} : vector<1x8x8x128xf32> to vector<1x8x1x16xf32>
    %c1_253 = arith.constant 1 : index
    %c0_254 = arith.constant 0 : index
    %c0_255 = arith.constant 0 : index
    %c0_256 = arith.constant 0 : index
    %154 = vector.load %arg19[%c1_253, %c0_254, %c0_255, %c0_256] : memref<2x8x8x128xf32, #tpu.memory_space<vmem>>, vector<1x8x1x16xf32>
    tpu.vector_store %arg19[%c1_253, %c0_254, %c0_255, %c0_256], %153 {strides = array<i32>} : memref<2x8x8x128xf32, #tpu.memory_space<vmem>>, vector<1x8x1x16xf32>,
    %155 = vector.extract_strided_slice %24 {offsets = [0, 0, 1, 0], sizes = [1, 8, 1, 16], strides = [1, 1, 1, 1]} : vector<1x8x8x128xf32> to vector<1x8x1x16xf32>
    %c1_257 = arith.constant 1 : index
    %c0_258 = arith.constant 0 : index
    %c0_259 = arith.constant 0 : index
    %c16_260 = arith.constant 16 : index
    %156 = vector.load %arg19[%c1_257, %c0_258, %c0_259, %c16_260] : memref<2x8x8x128xf32, #tpu.memory_space<vmem>>, vector<1x8x1x16xf32>
    tpu.vector_store %arg19[%c1_257, %c0_258, %c0_259, %c16_260], %155 {strides = array<i32>} : memref<2x8x8x128xf32, #tpu.memory_space<vmem>>, vector<1x8x1x16xf32>,
    %157 = vector.extract_strided_slice %24 {offsets = [0, 0, 2, 0], sizes = [1, 8, 1, 16], strides = [1, 1, 1, 1]} : vector<1x8x8x128xf32> to vector<1x8x1x16xf32>
    %c1_261 = arith.constant 1 : index
    %c0_262 = arith.constant 0 : index
    %c0_263 = arith.constant 0 : index
    %c32_264 = arith.constant 32 : index
    %158 = vector.load %arg19[%c1_261, %c0_262, %c0_263, %c32_264] : memref<2x8x8x128xf32, #tpu.memory_space<vmem>>, vector<1x8x1x16xf32>
    tpu.vector_store %arg19[%c1_261, %c0_262, %c0_263, %c32_264], %157 {strides = array<i32>} : memref<2x8x8x128xf32, #tpu.memory_space<vmem>>, vector<1x8x1x16xf32>,
    %159 = vector.extract_strided_slice %24 {offsets = [0, 0, 3, 0], sizes = [1, 8, 1, 16], strides = [1, 1, 1, 1]} : vector<1x8x8x128xf32> to vector<1x8x1x16xf32>
    %c1_265 = arith.constant 1 : index
    %c0_266 = arith.constant 0 : index
    %c0_267 = arith.constant 0 : index
    %c48_268 = arith.constant 48 : index
    %160 = vector.load %arg19[%c1_265, %c0_266, %c0_267, %c48_268] : memref<2x8x8x128xf32, #tpu.memory_space<vmem>>, vector<1x8x1x16xf32>
    tpu.vector_store %arg19[%c1_265, %c0_266, %c0_267, %c48_268], %159 {strides = array<i32>} : memref<2x8x8x128xf32, #tpu.memory_space<vmem>>, vector<1x8x1x16xf32>,
    %161 = vector.extract_strided_slice %24 {offsets = [0, 0, 4, 0], sizes = [1, 8, 1, 16], strides = [1, 1, 1, 1]} : vector<1x8x8x128xf32> to vector<1x8x1x16xf32>
    %c1_269 = arith.constant 1 : index
    %c0_270 = arith.constant 0 : index
    %c0_271 = arith.constant 0 : index
    %c64_272 = arith.constant 64 : index
    %162 = vector.load %arg19[%c1_269, %c0_270, %c0_271, %c64_272] : memref<2x8x8x128xf32, #tpu.memory_space<vmem>>, vector<1x8x1x16xf32>
    tpu.vector_store %arg19[%c1_269, %c0_270, %c0_271, %c64_272], %161 {strides = array<i32>} : memref<2x8x8x128xf32, #tpu.memory_space<vmem>>, vector<1x8x1x16xf32>,
    %163 = vector.extract_strided_slice %24 {offsets = [0, 0, 5, 0], sizes = [1, 8, 1, 16], strides = [1, 1, 1, 1]} : vector<1x8x8x128xf32> to vector<1x8x1x16xf32>
    %c1_273 = arith.constant 1 : index
    %c0_274 = arith.constant 0 : index
    %c0_275 = arith.constant 0 : index
    %c80_276 = arith.constant 80 : index
    %164 = vector.load %arg19[%c1_273, %c0_274, %c0_275, %c80_276] : memref<2x8x8x128xf32, #tpu.memory_space<vmem>>, vector<1x8x1x16xf32>
    tpu.vector_store %arg19[%c1_273, %c0_274, %c0_275, %c80_276], %163 {strides = array<i32>} : memref<2x8x8x128xf32, #tpu.memory_space<vmem>>, vector<1x8x1x16xf32>,
    %165 = vector.extract_strided_slice %24 {offsets = [0, 0, 6, 0], sizes = [1, 8, 1, 16], strides = [1, 1, 1, 1]} : vector<1x8x8x128xf32> to vector<1x8x1x16xf32>
    %c1_277 = arith.constant 1 : index
    %c0_278 = arith.constant 0 : index
    %c0_279 = arith.constant 0 : index
    %c96_280 = arith.constant 96 : index
    %166 = vector.load %arg19[%c1_277, %c0_278, %c0_279, %c96_280] : memref<2x8x8x128xf32, #tpu.memory_space<vmem>>, vector<1x8x1x16xf32>
    tpu.vector_store %arg19[%c1_277, %c0_278, %c0_279, %c96_280], %165 {strides = array<i32>} : memref<2x8x8x128xf32, #tpu.memory_space<vmem>>, vector<1x8x1x16xf32>,
    %167 = vector.extract_strided_slice %24 {offsets = [0, 0, 7, 0], sizes = [1, 8, 1, 16], strides = [1, 1, 1, 1]} : vector<1x8x8x128xf32> to vector<1x8x1x16xf32>
    %c1_281 = arith.constant 1 : index
    %c0_282 = arith.constant 0 : index
    %c0_283 = arith.constant 0 : index
    %c112_284 = arith.constant 112 : index
    %168 = vector.load %arg19[%c1_281, %c0_282, %c0_283, %c112_284] : memref<2x8x8x128xf32, #tpu.memory_space<vmem>>, vector<1x8x1x16xf32>
    tpu.vector_store %arg19[%c1_281, %c0_282, %c0_283, %c112_284], %167 {strides = array<i32>} : memref<2x8x8x128xf32, #tpu.memory_space<vmem>>, vector<1x8x1x16xf32>,
    %169 = vector.extract_strided_slice %24 {offsets = [0, 0, 0, 16], sizes = [1, 8, 1, 16], strides = [1, 1, 1, 1]} : vector<1x8x8x128xf32> to vector<1x8x1x16xf32>
    %c1_285 = arith.constant 1 : index
    %c0_286 = arith.constant 0 : index
    %c1_287 = arith.constant 1 : index
    %c0_288 = arith.constant 0 : index
    %170 = vector.load %arg19[%c1_285, %c0_286, %c1_287, %c0_288] : memref<2x8x8x128xf32, #tpu.memory_space<vmem>>, vector<1x8x1x16xf32>
    tpu.vector_store %arg19[%c1_285, %c0_286, %c1_287, %c0_288], %169 {strides = array<i32>} : memref<2x8x8x128xf32, #tpu.memory_space<vmem>>, vector<1x8x1x16xf32>,
    %171 = vector.extract_strided_slice %24 {offsets = [0, 0, 1, 16], sizes = [1, 8, 1, 16], strides = [1, 1, 1, 1]} : vector<1x8x8x128xf32> to vector<1x8x1x16xf32>
    %c1_289 = arith.constant 1 : index
    %c0_290 = arith.constant 0 : index
    %c1_291 = arith.constant 1 : index
    %c16_292 = arith.constant 16 : index
    %172 = vector.load %arg19[%c1_289, %c0_290, %c1_291, %c16_292] : memref<2x8x8x128xf32, #tpu.memory_space<vmem>>, vector<1x8x1x16xf32>
    tpu.vector_store %arg19[%c1_289, %c0_290, %c1_291, %c16_292], %171 {strides = array<i32>} : memref<2x8x8x128xf32, #tpu.memory_space<vmem>>, vector<1x8x1x16xf32>,
    %173 = vector.extract_strided_slice %24 {offsets = [0, 0, 2, 16], sizes = [1, 8, 1, 16], strides = [1, 1, 1, 1]} : vector<1x8x8x128xf32> to vector<1x8x1x16xf32>
    %c1_293 = arith.constant 1 : index
    %c0_294 = arith.constant 0 : index
    %c1_295 = arith.constant 1 : index
    %c32_296 = arith.constant 32 : index
    %174 = vector.load %arg19[%c1_293, %c0_294, %c1_295, %c32_296] : memref<2x8x8x128xf32, #tpu.memory_space<vmem>>, vector<1x8x1x16xf32>
    tpu.vector_store %arg19[%c1_293, %c0_294, %c1_295, %c32_296], %173 {strides = array<i32>} : memref<2x8x8x128xf32, #tpu.memory_space<vmem>>, vector<1x8x1x16xf32>,
    %175 = vector.extract_strided_slice %24 {offsets = [0, 0, 3, 16], sizes = [1, 8, 1, 16], strides = [1, 1, 1, 1]} : vector<1x8x8x128xf32> to vector<1x8x1x16xf32>
    %c1_297 = arith.constant 1 : index
    %c0_298 = arith.constant 0 : index
    %c1_299 = arith.constant 1 : index
    %c48_300 = arith.constant 48 : index
    %176 = vector.load %arg19[%c1_297, %c0_298, %c1_299, %c48_300] : memref<2x8x8x128xf32, #tpu.memory_space<vmem>>, vector<1x8x1x16xf32>
    tpu.vector_store %arg19[%c1_297, %c0_298, %c1_299, %c48_300], %175 {strides = array<i32>} : memref<2x8x8x128xf32, #tpu.memory_space<vmem>>, vector<1x8x1x16xf32>,
    %177 = vector.extract_strided_slice %24 {offsets = [0, 0, 4, 16], sizes = [1, 8, 1, 16], strides = [1, 1, 1, 1]} : vector<1x8x8x128xf32> to vector<1x8x1x16xf32>
    %c1_301 = arith.constant 1 : index
    %c0_302 = arith.constant 0 : index
    %c1_303 = arith.constant 1 : index
    %c64_304 = arith.constant 64 : index
    %178 = vector.load %arg19[%c1_301, %c0_302, %c1_303, %c64_304] : memref<2x8x8x128xf32, #tpu.memory_space<vmem>>, vector<1x8x1x16xf32>
    tpu.vector_store %arg19[%c1_301, %c0_302, %c1_303, %c64_304], %177 {strides = array<i32>} : memref<2x8x8x128xf32, #tpu.memory_space<vmem>>, vector<1x8x1x16xf32>,
    %179 = vector.extract_strided_slice %24 {offsets = [0, 0, 5, 16], sizes = [1, 8, 1, 16], strides = [1, 1, 1, 1]} : vector<1x8x8x128xf32> to vector<1x8x1x16xf32>
    %c1_305 = arith.constant 1 : index
    %c0_306 = arith.constant 0 : index
    %c1_307 = arith.constant 1 : index
    %c80_308 = arith.constant 80 : index
    %180 = vector.load %arg19[%c1_305, %c0_306, %c1_307, %c80_308] : memref<2x8x8x128xf32, #tpu.memory_space<vmem>>, vector<1x8x1x16xf32>
    tpu.vector_store %arg19[%c1_305, %c0_306, %c1_307, %c80_308], %179 {strides = array<i32>} : memref<2x8x8x128xf32, #tpu.memory_space<vmem>>, vector<1x8x1x16xf32>,
    %181 = vector.extract_strided_slice %24 {offsets = [0, 0, 6, 16], sizes = [1, 8, 1, 16], strides = [1, 1, 1, 1]} : vector<1x8x8x128xf32> to vector<1x8x1x16xf32>
    %c1_309 = arith.constant 1 : index
    %c0_310 = arith.constant 0 : index
    %c1_311 = arith.constant 1 : index
    %c96_312 = arith.constant 96 : index
    %182 = vector.load %arg19[%c1_309, %c0_310, %c1_311, %c96_312] : memref<2x8x8x128xf32, #tpu.memory_space<vmem>>, vector<1x8x1x16xf32>
    tpu.vector_store %arg19[%c1_309, %c0_310, %c1_311, %c96_312], %181 {strides = array<i32>} : memref<2x8x8x128xf32, #tpu.memory_space<vmem>>, vector<1x8x1x16xf32>,
    %183 = vector.extract_strided_slice %24 {offsets = [0, 0, 7, 16], sizes = [1, 8, 1, 16], strides = [1, 1, 1, 1]} : vector<1x8x8x128xf32> to vector<1x8x1x16xf32>
    %c1_313 = arith.constant 1 : index
    %c0_314 = arith.constant 0 : index
    %c1_315 = arith.constant 1 : index
    %c112_316 = arith.constant 112 : index
    %184 = vector.load %arg19[%c1_313, %c0_314, %c1_315, %c112_316] : memref<2x8x8x128xf32, #tpu.memory_space<vmem>>, vector<1x8x1x16xf32>
    tpu.vector_store %arg19[%c1_313, %c0_314, %c1_315, %c112_316], %183 {strides = array<i32>} : memref<2x8x8x128xf32, #tpu.memory_space<vmem>>, vector<1x8x1x16xf32>,
    %185 = vector.extract_strided_slice %24 {offsets = [0, 0, 0, 32], sizes = [1, 8, 1, 16], strides = [1, 1, 1, 1]} : vector<1x8x8x128xf32> to vector<1x8x1x16xf32>
    %c1_317 = arith.constant 1 : index
    %c0_318 = arith.constant 0 : index
    %c2_319 = arith.constant 2 : index
    %c0_320 = arith.constant 0 : index
    %186 = vector.load %arg19[%c1_317, %c0_318, %c2_319, %c0_320] : memref<2x8x8x128xf32, #tpu.memory_space<vmem>>, vector<1x8x1x16xf32>
    tpu.vector_store %arg19[%c1_317, %c0_318, %c2_319, %c0_320], %185 {strides = array<i32>} : memref<2x8x8x128xf32, #tpu.memory_space<vmem>>, vector<1x8x1x16xf32>,
    %187 = vector.extract_strided_slice %24 {offsets = [0, 0, 1, 32], sizes = [1, 8, 1, 16], strides = [1, 1, 1, 1]} : vector<1x8x8x128xf32> to vector<1x8x1x16xf32>
    %c1_321 = arith.constant 1 : index
    %c0_322 = arith.constant 0 : index
    %c2_323 = arith.constant 2 : index
    %c16_324 = arith.constant 16 : index
    %188 = vector.load %arg19[%c1_321, %c0_322, %c2_323, %c16_324] : memref<2x8x8x128xf32, #tpu.memory_space<vmem>>, vector<1x8x1x16xf32>
    tpu.vector_store %arg19[%c1_321, %c0_322, %c2_323, %c16_324], %187 {strides = array<i32>} : memref<2x8x8x128xf32, #tpu.memory_space<vmem>>, vector<1x8x1x16xf32>,
    %189 = vector.extract_strided_slice %24 {offsets = [0, 0, 2, 32], sizes = [1, 8, 1, 16], strides = [1, 1, 1, 1]} : vector<1x8x8x128xf32> to vector<1x8x1x16xf32>
    %c1_325 = arith.constant 1 : index
    %c0_326 = arith.constant 0 : index
    %c2_327 = arith.constant 2 : index
    %c32_328 = arith.constant 32 : index
    %190 = vector.load %arg19[%c1_325, %c0_326, %c2_327, %c32_328] : memref<2x8x8x128xf32, #tpu.memory_space<vmem>>, vector<1x8x1x16xf32>
    tpu.vector_store %arg19[%c1_325, %c0_326, %c2_327, %c32_328], %189 {strides = array<i32>} : memref<2x8x8x128xf32, #tpu.memory_space<vmem>>, vector<1x8x1x16xf32>,
    %191 = vector.extract_strided_slice %24 {offsets = [0, 0, 3, 32], sizes = [1, 8, 1, 16], strides = [1, 1, 1, 1]} : vector<1x8x8x128xf32> to vector<1x8x1x16xf32>
    %c1_329 = arith.constant 1 : index
    %c0_330 = arith.constant 0 : index
    %c2_331 = arith.constant 2 : index
    %c48_332 = arith.constant 48 : index
    %192 = vector.load %arg19[%c1_329, %c0_330, %c2_331, %c48_332] : memref<2x8x8x128xf32, #tpu.memory_space<vmem>>, vector<1x8x1x16xf32>
    tpu.vector_store %arg19[%c1_329, %c0_330, %c2_331, %c48_332], %191 {strides = array<i32>} : memref<2x8x8x128xf32, #tpu.memory_space<vmem>>, vector<1x8x1x16xf32>,
    %193 = vector.extract_strided_slice %24 {offsets = [0, 0, 4, 32], sizes = [1, 8, 1, 16], strides = [1, 1, 1, 1]} : vector<1x8x8x128xf32> to vector<1x8x1x16xf32>
    %c1_333 = arith.constant 1 : index
    %c0_334 = arith.constant 0 : index
    %c2_335 = arith.constant 2 : index
    %c64_336 = arith.constant 64 : index
    %194 = vector.load %arg19[%c1_333, %c0_334, %c2_335, %c64_336] : memref<2x8x8x128xf32, #tpu.memory_space<vmem>>, vector<1x8x1x16xf32>
    tpu.vector_store %arg19[%c1_333, %c0_334, %c2_335, %c64_336], %193 {strides = array<i32>} : memref<2x8x8x128xf32, #tpu.memory_space<vmem>>, vector<1x8x1x16xf32>,
    %195 = vector.extract_strided_slice %24 {offsets = [0, 0, 5, 32], sizes = [1, 8, 1, 16], strides = [1, 1, 1, 1]} : vector<1x8x8x128xf32> to vector<1x8x1x16xf32>
    %c1_337 = arith.constant 1 : index
    %c0_338 = arith.constant 0 : index
    %c2_339 = arith.constant 2 : index
    %c80_340 = arith.constant 80 : index
    %196 = vector.load %arg19[%c1_337, %c0_338, %c2_339, %c80_340] : memref<2x8x8x128xf32, #tpu.memory_space<vmem>>, vector<1x8x1x16xf32>
    tpu.vector_store %arg19[%c1_337, %c0_338, %c2_339, %c80_340], %195 {strides = array<i32>} : memref<2x8x8x128xf32, #tpu.memory_space<vmem>>, vector<1x8x1x16xf32>,
    %197 = vector.extract_strided_slice %24 {offsets = [0, 0, 6, 32], sizes = [1, 8, 1, 16], strides = [1, 1, 1, 1]} : vector<1x8x8x128xf32> to vector<1x8x1x16xf32>
    %c1_341 = arith.constant 1 : index
    %c0_342 = arith.constant 0 : index
    %c2_343 = arith.constant 2 : index
    %c96_344 = arith.constant 96 : index
    %198 = vector.load %arg19[%c1_341, %c0_342, %c2_343, %c96_344] : memref<2x8x8x128xf32, #tpu.memory_space<vmem>>, vector<1x8x1x16xf32>
    tpu.vector_store %arg19[%c1_341, %c0_342, %c2_343, %c96_344], %197 {strides = array<i32>} : memref<2x8x8x128xf32, #tpu.memory_space<vmem>>, vector<1x8x1x16xf32>,
    %199 = vector.extract_strided_slice %24 {offsets = [0, 0, 7, 32], sizes = [1, 8, 1, 16], strides = [1, 1, 1, 1]} : vector<1x8x8x128xf32> to vector<1x8x1x16xf32>
    %c1_345 = arith.constant 1 : index
    %c0_346 = arith.constant 0 : index
    %c2_347 = arith.constant 2 : index
    %c112_348 = arith.constant 112 : index
    %200 = vector.load %arg19[%c1_345, %c0_346, %c2_347, %c112_348] : memref<2x8x8x128xf32, #tpu.memory_space<vmem>>, vector<1x8x1x16xf32>
    tpu.vector_store %arg19[%c1_345, %c0_346, %c2_347, %c112_348], %199 {strides = array<i32>} : memref<2x8x8x128xf32, #tpu.memory_space<vmem>>, vector<1x8x1x16xf32>,
    %201 = vector.extract_strided_slice %24 {offsets = [0, 0, 0, 48], sizes = [1, 8, 1, 16], strides = [1, 1, 1, 1]} : vector<1x8x8x128xf32> to vector<1x8x1x16xf32>
    %c1_349 = arith.constant 1 : index
    %c0_350 = arith.constant 0 : index
    %c3_351 = arith.constant 3 : index
    %c0_352 = arith.constant 0 : index
    %202 = vector.load %arg19[%c1_349, %c0_350, %c3_351, %c0_352] : memref<2x8x8x128xf32, #tpu.memory_space<vmem>>, vector<1x8x1x16xf32>
    tpu.vector_store %arg19[%c1_349, %c0_350, %c3_351, %c0_352], %201 {strides = array<i32>} : memref<2x8x8x128xf32, #tpu.memory_space<vmem>>, vector<1x8x1x16xf32>,
    %203 = vector.extract_strided_slice %24 {offsets = [0, 0, 1, 48], sizes = [1, 8, 1, 16], strides = [1, 1, 1, 1]} : vector<1x8x8x128xf32> to vector<1x8x1x16xf32>
    %c1_353 = arith.constant 1 : index
    %c0_354 = arith.constant 0 : index
    %c3_355 = arith.constant 3 : index
    %c16_356 = arith.constant 16 : index
    %204 = vector.load %arg19[%c1_353, %c0_354, %c3_355, %c16_356] : memref<2x8x8x128xf32, #tpu.memory_space<vmem>>, vector<1x8x1x16xf32>
    tpu.vector_store %arg19[%c1_353, %c0_354, %c3_355, %c16_356], %203 {strides = array<i32>} : memref<2x8x8x128xf32, #tpu.memory_space<vmem>>, vector<1x8x1x16xf32>,
    %205 = vector.extract_strided_slice %24 {offsets = [0, 0, 2, 48], sizes = [1, 8, 1, 16], strides = [1, 1, 1, 1]} : vector<1x8x8x128xf32> to vector<1x8x1x16xf32>
    %c1_357 = arith.constant 1 : index
    %c0_358 = arith.constant 0 : index
    %c3_359 = arith.constant 3 : index
    %c32_360 = arith.constant 32 : index
    %206 = vector.load %arg19[%c1_357, %c0_358, %c3_359, %c32_360] : memref<2x8x8x128xf32, #tpu.memory_space<vmem>>, vector<1x8x1x16xf32>
    tpu.vector_store %arg19[%c1_357, %c0_358, %c3_359, %c32_360], %205 {strides = array<i32>} : memref<2x8x8x128xf32, #tpu.memory_space<vmem>>, vector<1x8x1x16xf32>,
    %207 = vector.extract_strided_slice %24 {offsets = [0, 0, 3, 48], sizes = [1, 8, 1, 16], strides = [1, 1, 1, 1]} : vector<1x8x8x128xf32> to vector<1x8x1x16xf32>
    %c1_361 = arith.constant 1 : index
    %c0_362 = arith.constant 0 : index
    %c3_363 = arith.constant 3 : index
    %c48_364 = arith.constant 48 : index
    %208 = vector.load %arg19[%c1_361, %c0_362, %c3_363, %c48_364] : memref<2x8x8x128xf32, #tpu.memory_space<vmem>>, vector<1x8x1x16xf32>
    tpu.vector_store %arg19[%c1_361, %c0_362, %c3_363, %c48_364], %207 {strides = array<i32>} : memref<2x8x8x128xf32, #tpu.memory_space<vmem>>, vector<1x8x1x16xf32>,
    %209 = vector.extract_strided_slice %24 {offsets = [0, 0, 4, 48], sizes = [1, 8, 1, 16], strides = [1, 1, 1, 1]} : vector<1x8x8x128xf32> to vector<1x8x1x16xf32>
    %c1_365 = arith.constant 1 : index
    %c0_366 = arith.constant 0 : index
    %c3_367 = arith.constant 3 : index
    %c64_368 = arith.constant 64 : index
    %210 = vector.load %arg19[%c1_365, %c0_366, %c3_367, %c64_368] : memref<2x8x8x128xf32, #tpu.memory_space<vmem>>, vector<1x8x1x16xf32>
    tpu.vector_store %arg19[%c1_365, %c0_366, %c3_367, %c64_368], %209 {strides = array<i32>} : memref<2x8x8x128xf32, #tpu.memory_space<vmem>>, vector<1x8x1x16xf32>,
    %211 = vector.extract_strided_slice %24 {offsets = [0, 0, 5, 48], sizes = [1, 8, 1, 16], strides = [1, 1, 1, 1]} : vector<1x8x8x128xf32> to vector<1x8x1x16xf32>
    %c1_369 = arith.constant 1 : index
    %c0_370 = arith.constant 0 : index
    %c3_371 = arith.constant 3 : index
    %c80_372 = arith.constant 80 : index
    %212 = vector.load %arg19[%c1_369, %c0_370, %c3_371, %c80_372] : memref<2x8x8x128xf32, #tpu.memory_space<vmem>>, vector<1x8x1x16xf32>
    tpu.vector_store %arg19[%c1_369, %c0_370, %c3_371, %c80_372], %211 {strides = array<i32>} : memref<2x8x8x128xf32, #tpu.memory_space<vmem>>, vector<1x8x1x16xf32>,
    %213 = vector.extract_strided_slice %24 {offsets = [0, 0, 6, 48], sizes = [1, 8, 1, 16], strides = [1, 1, 1, 1]} : vector<1x8x8x128xf32> to vector<1x8x1x16xf32>
    %c1_373 = arith.constant 1 : index
    %c0_374 = arith.constant 0 : index
    %c3_375 = arith.constant 3 : index
    %c96_376 = arith.constant 96 : index
    %214 = vector.load %arg19[%c1_373, %c0_374, %c3_375, %c96_376] : memref<2x8x8x128xf32, #tpu.memory_space<vmem>>, vector<1x8x1x16xf32>
    tpu.vector_store %arg19[%c1_373, %c0_374, %c3_375, %c96_376], %213 {strides = array<i32>} : memref<2x8x8x128xf32, #tpu.memory_space<vmem>>, vector<1x8x1x16xf32>,
    %215 = vector.extract_strided_slice %24 {offsets = [0, 0, 7, 48], sizes = [1, 8, 1, 16], strides = [1, 1, 1, 1]} : vector<1x8x8x128xf32> to vector<1x8x1x16xf32>
    %c1_377 = arith.constant 1 : index
    %c0_378 = arith.constant 0 : index
    %c3_379 = arith.constant 3 : index
    %c112_380 = arith.constant 112 : index
    %216 = vector.load %arg19[%c1_377, %c0_378, %c3_379, %c112_380] : memref<2x8x8x128xf32, #tpu.memory_space<vmem>>, vector<1x8x1x16xf32>
    tpu.vector_store %arg19[%c1_377, %c0_378, %c3_379, %c112_380], %215 {strides = array<i32>} : memref<2x8x8x128xf32, #tpu.memory_space<vmem>>, vector<1x8x1x16xf32>,
    %217 = vector.extract_strided_slice %24 {offsets = [0, 0, 0, 64], sizes = [1, 8, 1, 16], strides = [1, 1, 1, 1]} : vector<1x8x8x128xf32> to vector<1x8x1x16xf32>
    %c1_381 = arith.constant 1 : index
    %c0_382 = arith.constant 0 : index
    %c4_383 = arith.constant 4 : index
    %c0_384 = arith.constant 0 : index
    %218 = vector.load %arg19[%c1_381, %c0_382, %c4_383, %c0_384] : memref<2x8x8x128xf32, #tpu.memory_space<vmem>>, vector<1x8x1x16xf32>
    tpu.vector_store %arg19[%c1_381, %c0_382, %c4_383, %c0_384], %217 {strides = array<i32>} : memref<2x8x8x128xf32, #tpu.memory_space<vmem>>, vector<1x8x1x16xf32>,
    %219 = vector.extract_strided_slice %24 {offsets = [0, 0, 1, 64], sizes = [1, 8, 1, 16], strides = [1, 1, 1, 1]} : vector<1x8x8x128xf32> to vector<1x8x1x16xf32>
    %c1_385 = arith.constant 1 : index
    %c0_386 = arith.constant 0 : index
    %c4_387 = arith.constant 4 : index
    %c16_388 = arith.constant 16 : index
    %220 = vector.load %arg19[%c1_385, %c0_386, %c4_387, %c16_388] : memref<2x8x8x128xf32, #tpu.memory_space<vmem>>, vector<1x8x1x16xf32>
    tpu.vector_store %arg19[%c1_385, %c0_386, %c4_387, %c16_388], %219 {strides = array<i32>} : memref<2x8x8x128xf32, #tpu.memory_space<vmem>>, vector<1x8x1x16xf32>,
    %221 = vector.extract_strided_slice %24 {offsets = [0, 0, 2, 64], sizes = [1, 8, 1, 16], strides = [1, 1, 1, 1]} : vector<1x8x8x128xf32> to vector<1x8x1x16xf32>
    %c1_389 = arith.constant 1 : index
    %c0_390 = arith.constant 0 : index
    %c4_391 = arith.constant 4 : index
    %c32_392 = arith.constant 32 : index
    %222 = vector.load %arg19[%c1_389, %c0_390, %c4_391, %c32_392] : memref<2x8x8x128xf32, #tpu.memory_space<vmem>>, vector<1x8x1x16xf32>
    tpu.vector_store %arg19[%c1_389, %c0_390, %c4_391, %c32_392], %221 {strides = array<i32>} : memref<2x8x8x128xf32, #tpu.memory_space<vmem>>, vector<1x8x1x16xf32>,
    %223 = vector.extract_strided_slice %24 {offsets = [0, 0, 3, 64], sizes = [1, 8, 1, 16], strides = [1, 1, 1, 1]} : vector<1x8x8x128xf32> to vector<1x8x1x16xf32>
    %c1_393 = arith.constant 1 : index
    %c0_394 = arith.constant 0 : index
    %c4_395 = arith.constant 4 : index
    %c48_396 = arith.constant 48 : index
    %224 = vector.load %arg19[%c1_393, %c0_394, %c4_395, %c48_396] : memref<2x8x8x128xf32, #tpu.memory_space<vmem>>, vector<1x8x1x16xf32>
    tpu.vector_store %arg19[%c1_393, %c0_394, %c4_395, %c48_396], %223 {strides = array<i32>} : memref<2x8x8x128xf32, #tpu.memory_space<vmem>>, vector<1x8x1x16xf32>,
    %225 = vector.extract_strided_slice %24 {offsets = [0, 0, 4, 64], sizes = [1, 8, 1, 16], strides = [1, 1, 1, 1]} : vector<1x8x8x128xf32> to vector<1x8x1x16xf32>
    %c1_397 = arith.constant 1 : index
    %c0_398 = arith.constant 0 : index
    %c4_399 = arith.constant 4 : index
    %c64_400 = arith.constant 64 : index
    %226 = vector.load %arg19[%c1_397, %c0_398, %c4_399, %c64_400] : memref<2x8x8x128xf32, #tpu.memory_space<vmem>>, vector<1x8x1x16xf32>
    tpu.vector_store %arg19[%c1_397, %c0_398, %c4_399, %c64_400], %225 {strides = array<i32>} : memref<2x8x8x128xf32, #tpu.memory_space<vmem>>, vector<1x8x1x16xf32>,
    %227 = vector.extract_strided_slice %24 {offsets = [0, 0, 5, 64], sizes = [1, 8, 1, 16], strides = [1, 1, 1, 1]} : vector<1x8x8x128xf32> to vector<1x8x1x16xf32>
    %c1_401 = arith.constant 1 : index
    %c0_402 = arith.constant 0 : index
    %c4_403 = arith.constant 4 : index
    %c80_404 = arith.constant 80 : index
    %228 = vector.load %arg19[%c1_401, %c0_402, %c4_403, %c80_404] : memref<2x8x8x128xf32, #tpu.memory_space<vmem>>, vector<1x8x1x16xf32>
    tpu.vector_store %arg19[%c1_401, %c0_402, %c4_403, %c80_404], %227 {strides = array<i32>} : memref<2x8x8x128xf32, #tpu.memory_space<vmem>>, vector<1x8x1x16xf32>,
    %229 = vector.extract_strided_slice %24 {offsets = [0, 0, 6, 64], sizes = [1, 8, 1, 16], strides = [1, 1, 1, 1]} : vector<1x8x8x128xf32> to vector<1x8x1x16xf32>
    %c1_405 = arith.constant 1 : index
    %c0_406 = arith.constant 0 : index
    %c4_407 = arith.constant 4 : index
    %c96_408 = arith.constant 96 : index
    %230 = vector.load %arg19[%c1_405, %c0_406, %c4_407, %c96_408] : memref<2x8x8x128xf32, #tpu.memory_space<vmem>>, vector<1x8x1x16xf32>
    tpu.vector_store %arg19[%c1_405, %c0_406, %c4_407, %c96_408], %229 {strides = array<i32>} : memref<2x8x8x128xf32, #tpu.memory_space<vmem>>, vector<1x8x1x16xf32>,
    %231 = vector.extract_strided_slice %24 {offsets = [0, 0, 7, 64], sizes = [1, 8, 1, 16], strides = [1, 1, 1, 1]} : vector<1x8x8x128xf32> to vector<1x8x1x16xf32>
    %c1_409 = arith.constant 1 : index
    %c0_410 = arith.constant 0 : index
    %c4_411 = arith.constant 4 : index
    %c112_412 = arith.constant 112 : index
    %232 = vector.load %arg19[%c1_409, %c0_410, %c4_411, %c112_412] : memref<2x8x8x128xf32, #tpu.memory_space<vmem>>, vector<1x8x1x16xf32>
    tpu.vector_store %arg19[%c1_409, %c0_410, %c4_411, %c112_412], %231 {strides = array<i32>} : memref<2x8x8x128xf32, #tpu.memory_space<vmem>>, vector<1x8x1x16xf32>,
    %233 = vector.extract_strided_slice %24 {offsets = [0, 0, 0, 80], sizes = [1, 8, 1, 16], strides = [1, 1, 1, 1]} : vector<1x8x8x128xf32> to vector<1x8x1x16xf32>
    %c1_413 = arith.constant 1 : index
    %c0_414 = arith.constant 0 : index
    %c5_415 = arith.constant 5 : index
    %c0_416 = arith.constant 0 : index
    %234 = vector.load %arg19[%c1_413, %c0_414, %c5_415, %c0_416] : memref<2x8x8x128xf32, #tpu.memory_space<vmem>>, vector<1x8x1x16xf32>
    tpu.vector_store %arg19[%c1_413, %c0_414, %c5_415, %c0_416], %233 {strides = array<i32>} : memref<2x8x8x128xf32, #tpu.memory_space<vmem>>, vector<1x8x1x16xf32>,
    %235 = vector.extract_strided_slice %24 {offsets = [0, 0, 1, 80], sizes = [1, 8, 1, 16], strides = [1, 1, 1, 1]} : vector<1x8x8x128xf32> to vector<1x8x1x16xf32>
    %c1_417 = arith.constant 1 : index
    %c0_418 = arith.constant 0 : index
    %c5_419 = arith.constant 5 : index
    %c16_420 = arith.constant 16 : index
    %236 = vector.load %arg19[%c1_417, %c0_418, %c5_419, %c16_420] : memref<2x8x8x128xf32, #tpu.memory_space<vmem>>, vector<1x8x1x16xf32>
    tpu.vector_store %arg19[%c1_417, %c0_418, %c5_419, %c16_420], %235 {strides = array<i32>} : memref<2x8x8x128xf32, #tpu.memory_space<vmem>>, vector<1x8x1x16xf32>,
    %237 = vector.extract_strided_slice %24 {offsets = [0, 0, 2, 80], sizes = [1, 8, 1, 16], strides = [1, 1, 1, 1]} : vector<1x8x8x128xf32> to vector<1x8x1x16xf32>
    %c1_421 = arith.constant 1 : index
    %c0_422 = arith.constant 0 : index
    %c5_423 = arith.constant 5 : index
    %c32_424 = arith.constant 32 : index
    %238 = vector.load %arg19[%c1_421, %c0_422, %c5_423, %c32_424] : memref<2x8x8x128xf32, #tpu.memory_space<vmem>>, vector<1x8x1x16xf32>
    tpu.vector_store %arg19[%c1_421, %c0_422, %c5_423, %c32_424], %237 {strides = array<i32>} : memref<2x8x8x128xf32, #tpu.memory_space<vmem>>, vector<1x8x1x16xf32>,
    %239 = vector.extract_strided_slice %24 {offsets = [0, 0, 3, 80], sizes = [1, 8, 1, 16], strides = [1, 1, 1, 1]} : vector<1x8x8x128xf32> to vector<1x8x1x16xf32>
    %c1_425 = arith.constant 1 : index
    %c0_426 = arith.constant 0 : index
    %c5_427 = arith.constant 5 : index
    %c48_428 = arith.constant 48 : index
    %240 = vector.load %arg19[%c1_425, %c0_426, %c5_427, %c48_428] : memref<2x8x8x128xf32, #tpu.memory_space<vmem>>, vector<1x8x1x16xf32>
    tpu.vector_store %arg19[%c1_425, %c0_426, %c5_427, %c48_428], %239 {strides = array<i32>} : memref<2x8x8x128xf32, #tpu.memory_space<vmem>>, vector<1x8x1x16xf32>,
    %241 = vector.extract_strided_slice %24 {offsets = [0, 0, 4, 80], sizes = [1, 8, 1, 16], strides = [1, 1, 1, 1]} : vector<1x8x8x128xf32> to vector<1x8x1x16xf32>
    %c1_429 = arith.constant 1 : index
    %c0_430 = arith.constant 0 : index
    %c5_431 = arith.constant 5 : index
    %c64_432 = arith.constant 64 : index
    %242 = vector.load %arg19[%c1_429, %c0_430, %c5_431, %c64_432] : memref<2x8x8x128xf32, #tpu.memory_space<vmem>>, vector<1x8x1x16xf32>
    tpu.vector_store %arg19[%c1_429, %c0_430, %c5_431, %c64_432], %241 {strides = array<i32>} : memref<2x8x8x128xf32, #tpu.memory_space<vmem>>, vector<1x8x1x16xf32>,
    %243 = vector.extract_strided_slice %24 {offsets = [0, 0, 5, 80], sizes = [1, 8, 1, 16], strides = [1, 1, 1, 1]} : vector<1x8x8x128xf32> to vector<1x8x1x16xf32>
    %c1_433 = arith.constant 1 : index
    %c0_434 = arith.constant 0 : index
    %c5_435 = arith.constant 5 : index
    %c80_436 = arith.constant 80 : index
    %244 = vector.load %arg19[%c1_433, %c0_434, %c5_435, %c80_436] : memref<2x8x8x128xf32, #tpu.memory_space<vmem>>, vector<1x8x1x16xf32>
    tpu.vector_store %arg19[%c1_433, %c0_434, %c5_435, %c80_436], %243 {strides = array<i32>} : memref<2x8x8x128xf32, #tpu.memory_space<vmem>>, vector<1x8x1x16xf32>,
    %245 = vector.extract_strided_slice %24 {offsets = [0, 0, 6, 80], sizes = [1, 8, 1, 16], strides = [1, 1, 1, 1]} : vector<1x8x8x128xf32> to vector<1x8x1x16xf32>
    %c1_437 = arith.constant 1 : index
    %c0_438 = arith.constant 0 : index
    %c5_439 = arith.constant 5 : index
    %c96_440 = arith.constant 96 : index
    %246 = vector.load %arg19[%c1_437, %c0_438, %c5_439, %c96_440] : memref<2x8x8x128xf32, #tpu.memory_space<vmem>>, vector<1x8x1x16xf32>
    tpu.vector_store %arg19[%c1_437, %c0_438, %c5_439, %c96_440], %245 {strides = array<i32>} : memref<2x8x8x128xf32, #tpu.memory_space<vmem>>, vector<1x8x1x16xf32>,
    %247 = vector.extract_strided_slice %24 {offsets = [0, 0, 7, 80], sizes = [1, 8, 1, 16], strides = [1, 1, 1, 1]} : vector<1x8x8x128xf32> to vector<1x8x1x16xf32>
    %c1_441 = arith.constant 1 : index
    %c0_442 = arith.constant 0 : index
    %c5_443 = arith.constant 5 : index
    %c112_444 = arith.constant 112 : index
    %248 = vector.load %arg19[%c1_441, %c0_442, %c5_443, %c112_444] : memref<2x8x8x128xf32, #tpu.memory_space<vmem>>, vector<1x8x1x16xf32>
    tpu.vector_store %arg19[%c1_441, %c0_442, %c5_443, %c112_444], %247 {strides = array<i32>} : memref<2x8x8x128xf32, #tpu.memory_space<vmem>>, vector<1x8x1x16xf32>,
    %249 = vector.extract_strided_slice %24 {offsets = [0, 0, 0, 96], sizes = [1, 8, 1, 16], strides = [1, 1, 1, 1]} : vector<1x8x8x128xf32> to vector<1x8x1x16xf32>
    %c1_445 = arith.constant 1 : index
    %c0_446 = arith.constant 0 : index
    %c6_447 = arith.constant 6 : index
    %c0_448 = arith.constant 0 : index
    %250 = vector.load %arg19[%c1_445, %c0_446, %c6_447, %c0_448] : memref<2x8x8x128xf32, #tpu.memory_space<vmem>>, vector<1x8x1x16xf32>
    tpu.vector_store %arg19[%c1_445, %c0_446, %c6_447, %c0_448], %249 {strides = array<i32>} : memref<2x8x8x128xf32, #tpu.memory_space<vmem>>, vector<1x8x1x16xf32>,
    %251 = vector.extract_strided_slice %24 {offsets = [0, 0, 1, 96], sizes = [1, 8, 1, 16], strides = [1, 1, 1, 1]} : vector<1x8x8x128xf32> to vector<1x8x1x16xf32>
    %c1_449 = arith.constant 1 : index
    %c0_450 = arith.constant 0 : index
    %c6_451 = arith.constant 6 : index
    %c16_452 = arith.constant 16 : index
    %252 = vector.load %arg19[%c1_449, %c0_450, %c6_451, %c16_452] : memref<2x8x8x128xf32, #tpu.memory_space<vmem>>, vector<1x8x1x16xf32>
    tpu.vector_store %arg19[%c1_449, %c0_450, %c6_451, %c16_452], %251 {strides = array<i32>} : memref<2x8x8x128xf32, #tpu.memory_space<vmem>>, vector<1x8x1x16xf32>,
    %253 = vector.extract_strided_slice %24 {offsets = [0, 0, 2, 96], sizes = [1, 8, 1, 16], strides = [1, 1, 1, 1]} : vector<1x8x8x128xf32> to vector<1x8x1x16xf32>
    %c1_453 = arith.constant 1 : index
    %c0_454 = arith.constant 0 : index
    %c6_455 = arith.constant 6 : index
    %c32_456 = arith.constant 32 : index
    %254 = vector.load %arg19[%c1_453, %c0_454, %c6_455, %c32_456] : memref<2x8x8x128xf32, #tpu.memory_space<vmem>>, vector<1x8x1x16xf32>
    tpu.vector_store %arg19[%c1_453, %c0_454, %c6_455, %c32_456], %253 {strides = array<i32>} : memref<2x8x8x128xf32, #tpu.memory_space<vmem>>, vector<1x8x1x16xf32>,
    %255 = vector.extract_strided_slice %24 {offsets = [0, 0, 3, 96], sizes = [1, 8, 1, 16], strides = [1, 1, 1, 1]} : vector<1x8x8x128xf32> to vector<1x8x1x16xf32>
    %c1_457 = arith.constant 1 : index
    %c0_458 = arith.constant 0 : index
    %c6_459 = arith.constant 6 : index
    %c48_460 = arith.constant 48 : index
    %256 = vector.load %arg19[%c1_457, %c0_458, %c6_459, %c48_460] : memref<2x8x8x128xf32, #tpu.memory_space<vmem>>, vector<1x8x1x16xf32>
    tpu.vector_store %arg19[%c1_457, %c0_458, %c6_459, %c48_460], %255 {strides = array<i32>} : memref<2x8x8x128xf32, #tpu.memory_space<vmem>>, vector<1x8x1x16xf32>,
    %257 = vector.extract_strided_slice %24 {offsets = [0, 0, 4, 96], sizes = [1, 8, 1, 16], strides = [1, 1, 1, 1]} : vector<1x8x8x128xf32> to vector<1x8x1x16xf32>
    %c1_461 = arith.constant 1 : index
    %c0_462 = arith.constant 0 : index
    %c6_463 = arith.constant 6 : index
    %c64_464 = arith.constant 64 : index
    %258 = vector.load %arg19[%c1_461, %c0_462, %c6_463, %c64_464] : memref<2x8x8x128xf32, #tpu.memory_space<vmem>>, vector<1x8x1x16xf32>
    tpu.vector_store %arg19[%c1_461, %c0_462, %c6_463, %c64_464], %257 {strides = array<i32>} : memref<2x8x8x128xf32, #tpu.memory_space<vmem>>, vector<1x8x1x16xf32>,
    %259 = vector.extract_strided_slice %24 {offsets = [0, 0, 5, 96], sizes = [1, 8, 1, 16], strides = [1, 1, 1, 1]} : vector<1x8x8x128xf32> to vector<1x8x1x16xf32>
    %c1_465 = arith.constant 1 : index
    %c0_466 = arith.constant 0 : index
    %c6_467 = arith.constant 6 : index
    %c80_468 = arith.constant 80 : index
    %260 = vector.load %arg19[%c1_465, %c0_466, %c6_467, %c80_468] : memref<2x8x8x128xf32, #tpu.memory_space<vmem>>, vector<1x8x1x16xf32>
    tpu.vector_store %arg19[%c1_465, %c0_466, %c6_467, %c80_468], %259 {strides = array<i32>} : memref<2x8x8x128xf32, #tpu.memory_space<vmem>>, vector<1x8x1x16xf32>,
    %261 = vector.extract_strided_slice %24 {offsets = [0, 0, 6, 96], sizes = [1, 8, 1, 16], strides = [1, 1, 1, 1]} : vector<1x8x8x128xf32> to vector<1x8x1x16xf32>
    %c1_469 = arith.constant 1 : index
    %c0_470 = arith.constant 0 : index
    %c6_471 = arith.constant 6 : index
    %c96_472 = arith.constant 96 : index
    %262 = vector.load %arg19[%c1_469, %c0_470, %c6_471, %c96_472] : memref<2x8x8x128xf32, #tpu.memory_space<vmem>>, vector<1x8x1x16xf32>
    tpu.vector_store %arg19[%c1_469, %c0_470, %c6_471, %c96_472], %261 {strides = array<i32>} : memref<2x8x8x128xf32, #tpu.memory_space<vmem>>, vector<1x8x1x16xf32>,
    %263 = vector.extract_strided_slice %24 {offsets = [0, 0, 7, 96], sizes = [1, 8, 1, 16], strides = [1, 1, 1, 1]} : vector<1x8x8x128xf32> to vector<1x8x1x16xf32>
    %c1_473 = arith.constant 1 : index
    %c0_474 = arith.constant 0 : index
    %c6_475 = arith.constant 6 : index
    %c112_476 = arith.constant 112 : index
    %264 = vector.load %arg19[%c1_473, %c0_474, %c6_475, %c112_476] : memref<2x8x8x128xf32, #tpu.memory_space<vmem>>, vector<1x8x1x16xf32>
    tpu.vector_store %arg19[%c1_473, %c0_474, %c6_475, %c112_476], %263 {strides = array<i32>} : memref<2x8x8x128xf32, #tpu.memory_space<vmem>>, vector<1x8x1x16xf32>,
    %265 = vector.extract_strided_slice %24 {offsets = [0, 0, 0, 112], sizes = [1, 8, 1, 16], strides = [1, 1, 1, 1]} : vector<1x8x8x128xf32> to vector<1x8x1x16xf32>
    %c1_477 = arith.constant 1 : index
    %c0_478 = arith.constant 0 : index
    %c7_479 = arith.constant 7 : index
    %c0_480 = arith.constant 0 : index
    %266 = vector.load %arg19[%c1_477, %c0_478, %c7_479, %c0_480] : memref<2x8x8x128xf32, #tpu.memory_space<vmem>>, vector<1x8x1x16xf32>
    tpu.vector_store %arg19[%c1_477, %c0_478, %c7_479, %c0_480], %265 {strides = array<i32>} : memref<2x8x8x128xf32, #tpu.memory_space<vmem>>, vector<1x8x1x16xf32>,
    %267 = vector.extract_strided_slice %24 {offsets = [0, 0, 1, 112], sizes = [1, 8, 1, 16], strides = [1, 1, 1, 1]} : vector<1x8x8x128xf32> to vector<1x8x1x16xf32>
    %c1_481 = arith.constant 1 : index
    %c0_482 = arith.constant 0 : index
    %c7_483 = arith.constant 7 : index
    %c16_484 = arith.constant 16 : index
    %268 = vector.load %arg19[%c1_481, %c0_482, %c7_483, %c16_484] : memref<2x8x8x128xf32, #tpu.memory_space<vmem>>, vector<1x8x1x16xf32>
    tpu.vector_store %arg19[%c1_481, %c0_482, %c7_483, %c16_484], %267 {strides = array<i32>} : memref<2x8x8x128xf32, #tpu.memory_space<vmem>>, vector<1x8x1x16xf32>,
    %269 = vector.extract_strided_slice %24 {offsets = [0, 0, 2, 112], sizes = [1, 8, 1, 16], strides = [1, 1, 1, 1]} : vector<1x8x8x128xf32> to vector<1x8x1x16xf32>
    %c1_485 = arith.constant 1 : index
    %c0_486 = arith.constant 0 : index
    %c7_487 = arith.constant 7 : index
    %c32_488 = arith.constant 32 : index
    %270 = vector.load %arg19[%c1_485, %c0_486, %c7_487, %c32_488] : memref<2x8x8x128xf32, #tpu.memory_space<vmem>>, vector<1x8x1x16xf32>
    tpu.vector_store %arg19[%c1_485, %c0_486, %c7_487, %c32_488], %269 {strides = array<i32>} : memref<2x8x8x128xf32, #tpu.memory_space<vmem>>, vector<1x8x1x16xf32>,
    %271 = vector.extract_strided_slice %24 {offsets = [0, 0, 3, 112], sizes = [1, 8, 1, 16], strides = [1, 1, 1, 1]} : vector<1x8x8x128xf32> to vector<1x8x1x16xf32>
    %c1_489 = arith.constant 1 : index
    %c0_490 = arith.constant 0 : index
    %c7_491 = arith.constant 7 : index
    %c48_492 = arith.constant 48 : index
    %272 = vector.load %arg19[%c1_489, %c0_490, %c7_491, %c48_492] : memref<2x8x8x128xf32, #tpu.memory_space<vmem>>, vector<1x8x1x16xf32>
    tpu.vector_store %arg19[%c1_489, %c0_490, %c7_491, %c48_492], %271 {strides = array<i32>} : memref<2x8x8x128xf32, #tpu.memory_space<vmem>>, vector<1x8x1x16xf32>,
    %273 = vector.extract_strided_slice %24 {offsets = [0, 0, 4, 112], sizes = [1, 8, 1, 16], strides = [1, 1, 1, 1]} : vector<1x8x8x128xf32> to vector<1x8x1x16xf32>
    %c1_493 = arith.constant 1 : index
    %c0_494 = arith.constant 0 : index
    %c7_495 = arith.constant 7 : index
    %c64_496 = arith.constant 64 : index
    %274 = vector.load %arg19[%c1_493, %c0_494, %c7_495, %c64_496] : memref<2x8x8x128xf32, #tpu.memory_space<vmem>>, vector<1x8x1x16xf32>
    tpu.vector_store %arg19[%c1_493, %c0_494, %c7_495, %c64_496], %273 {strides = array<i32>} : memref<2x8x8x128xf32, #tpu.memory_space<vmem>>, vector<1x8x1x16xf32>,
    %275 = vector.extract_strided_slice %24 {offsets = [0, 0, 5, 112], sizes = [1, 8, 1, 16], strides = [1, 1, 1, 1]} : vector<1x8x8x128xf32> to vector<1x8x1x16xf32>
    %c1_497 = arith.constant 1 : index
    %c0_498 = arith.constant 0 : index
    %c7_499 = arith.constant 7 : index
    %c80_500 = arith.constant 80 : index
    %276 = vector.load %arg19[%c1_497, %c0_498, %c7_499, %c80_500] : memref<2x8x8x128xf32, #tpu.memory_space<vmem>>, vector<1x8x1x16xf32>
    tpu.vector_store %arg19[%c1_497, %c0_498, %c7_499, %c80_500], %275 {strides = array<i32>} : memref<2x8x8x128xf32, #tpu.memory_space<vmem>>, vector<1x8x1x16xf32>,
    %277 = vector.extract_strided_slice %24 {offsets = [0, 0, 6, 112], sizes = [1, 8, 1, 16], strides = [1, 1, 1, 1]} : vector<1x8x8x128xf32> to vector<1x8x1x16xf32>
    %c1_501 = arith.constant 1 : index
    %c0_502 = arith.constant 0 : index
    %c7_503 = arith.constant 7 : index
    %c96_504 = arith.constant 96 : index
    %278 = vector.load %arg19[%c1_501, %c0_502, %c7_503, %c96_504] : memref<2x8x8x128xf32, #tpu.memory_space<vmem>>, vector<1x8x1x16xf32>
    tpu.vector_store %arg19[%c1_501, %c0_502, %c7_503, %c96_504], %277 {strides = array<i32>} : memref<2x8x8x128xf32, #tpu.memory_space<vmem>>, vector<1x8x1x16xf32>,
    %279 = vector.extract_strided_slice %24 {offsets = [0, 0, 7, 112], sizes = [1, 8, 1, 16], strides = [1, 1, 1, 1]} : vector<1x8x8x128xf32> to vector<1x8x1x16xf32>
    %c1_505 = arith.constant 1 : index
    %c0_506 = arith.constant 0 : index
    %c7_507 = arith.constant 7 : index
    %c112_508 = arith.constant 112 : index
    %280 = vector.load %arg19[%c1_505, %c0_506, %c7_507, %c112_508] : memref<2x8x8x128xf32, #tpu.memory_space<vmem>>, vector<1x8x1x16xf32>
    tpu.vector_store %arg19[%c1_505, %c0_506, %c7_507, %c112_508], %279 {strides = array<i32>} : memref<2x8x8x128xf32, #tpu.memory_space<vmem>>, vector<1x8x1x16xf32>,
    %c0_509 = arith.constant 0 : index
    %c0_510 = arith.constant 0 : index
    %c0_511 = arith.constant 0 : index
    %c0_512 = arith.constant 0 : index
    %281 = vector.load %arg19[%c0_509, %c0_510, %c0_511, %c0_512] : memref<2x8x8x128xf32, #tpu.memory_space<vmem>>, vector<2x8x8x128xf32>
    %282 = vector.shape_cast %281 : vector<2x8x8x128xf32> to vector<128x128xf32>
    %283 = arith.truncf %282 : vector<128x128xf32> to vector<128x128xbf16>
    %c0_513 = arith.constant 0 : index
    %c0_514 = arith.constant 0 : index
    %284 = vector.load %arg4[%c0_513, %c0_514] : memref<128x128xbf16, #tpu.memory_space<vmem>>, vector<128x128xbf16>
    %cst_515 = arith.constant dense<0.000000e+00> : vector<128x128xf32>
    %285 = tpu.matmul %283, %284, %cst_515 {dimension_numbers = #tpu.dot_dimension_numbers<[1], [0], [0], [1], [0, 0, 1, 1], [], []>} : vector<128x128xbf16>, vector<128x128xbf16>, vector<128x128xf32> -> vector<128x128xf32>
    %286 = arith.truncf %23 : vector<64x128xf32> to vector<64x128xbf16>
    %c0_516 = arith.constant 0 : index
    %c0_517 = arith.constant 0 : index
    %287 = vector.load %arg5[%c0_516, %c0_517] : memref<128x128xbf16, #tpu.memory_space<vmem>>, vector<128x128xbf16>
    %cst_518 = arith.constant dense<0.000000e+00> : vector<64x128xf32>
    %288 = tpu.matmul %286, %287, %cst_518 {dimension_numbers = #tpu.dot_dimension_numbers<[1], [0], [0], [1], [0, 0, 1, 1], [], []>} : vector<64x128xbf16>, vector<128x128xbf16>, vector<64x128xf32> -> vector<64x128xf32>
    %289 = vector.extract_strided_slice %285 {offsets = [0, 0], sizes = [64, 128], strides = [1, 1]} : vector<128x128xf32> to vector<64x128xf32>
    %290 = vector.extract_strided_slice %285 {offsets = [64, 0], sizes = [64, 128], strides = [1, 1]} : vector<128x128xf32> to vector<64x128xf32>
    %291 = arith.addf %289, %290 : vector<64x128xf32>
    %292 = arith.addf %291, %288 : vector<64x128xf32>
    %293 = vector.shape_cast %292 : vector<64x128xf32> to vector<1x64x128xf32>
    %cst_519 = arith.constant dense<0.000000e+00> : vector<1x128xf32>
    %294 = vector.multi_reduction <add>, %293, %cst_519 [1] : vector<1x64x128xf32> to vector<1x128xf32>
    %cst_520 = arith.constant 6.400000e+01 : f32
    %295 = vector.broadcast %cst_520 : f32 to vector<1x128xf32>
    %296 = arith.divf %294, %295 : vector<1x128xf32>
    %297 = arith.truncf %296 : vector<1x128xf32> to vector<1x128xbf16>
    %c0_521 = arith.constant 0 : index
    %c0_522 = arith.constant 0 : index
    %298 = vector.load %arg6[%c0_521, %c0_522] : memref<128x128xbf16, #tpu.memory_space<vmem>>, vector<128x128xbf16>
    %cst_523 = arith.constant dense<0.000000e+00> : vector<1x128xf32>
    %299 = tpu.matmul %297, %298, %cst_523 {dimension_numbers = #tpu.dot_dimension_numbers<[1], [0], [0], [1], [0, 0, 1, 1], [], []>} : vector<1x128xbf16>, vector<128x128xbf16>, vector<1x128xf32> -> vector<1x128xf32>
    %c0_524 = arith.constant 0 : index
    %c0_525 = arith.constant 0 : index
    %300 = vector.load %arg7[%c0_524, %c0_525] : memref<1x128xf32, #tpu.memory_space<vmem>>, vector<1x128xf32>
    %301 = arith.addf %299, %300 : vector<1x128xf32>
    %cst_526 = arith.constant 5.000000e-01 : f32
    %302 = vector.broadcast %cst_526 : f32 to vector<1x128xf32>
    %303 = arith.mulf %302, %301 : vector<1x128xf32>
    %cst_527 = arith.constant 4.471500e-02 : f32
    %304 = vector.broadcast %cst_527 : f32 to vector<1x128xf32>
    %305 = arith.mulf %304, %301 : vector<1x128xf32>
    %306 = arith.mulf %305, %301 : vector<1x128xf32>
    %307 = arith.mulf %306, %301 : vector<1x128xf32>
    %308 = arith.addf %301, %307 : vector<1x128xf32>
    %cst_528 = arith.constant 0.797884583 : f32
    %309 = vector.broadcast %cst_528 : f32 to vector<1x128xf32>
    %310 = arith.mulf %309, %308 : vector<1x128xf32>
    %311 = math.tanh %310 : vector<1x128xf32>
    %cst_529 = arith.constant 1.000000e+00 : f32
    %312 = vector.broadcast %cst_529 : f32 to vector<1x128xf32>
    %313 = arith.addf %312, %311 : vector<1x128xf32>
    %314 = arith.mulf %303, %313 : vector<1x128xf32>
    %315 = arith.truncf %314 : vector<1x128xf32> to vector<1x128xbf16>
    %c0_530 = arith.constant 0 : index
    %c0_531 = arith.constant 0 : index
    %316 = vector.load %arg8[%c0_530, %c0_531] : memref<128x384xbf16, #tpu.memory_space<vmem>>, vector<128x384xbf16>
    %cst_532 = arith.constant dense<0.000000e+00> : vector<1x384xf32>
    %317 = tpu.matmul %315, %316, %cst_532 {dimension_numbers = #tpu.dot_dimension_numbers<[1], [0], [0], [1], [0, 0, 1, 1], [], []>} : vector<1x128xbf16>, vector<128x384xbf16>, vector<1x384xf32> -> vector<1x384xf32>
    %c0_533 = arith.constant 0 : index
    %c0_534 = arith.constant 0 : index
    %318 = vector.load %arg9[%c0_533, %c0_534] : memref<1x384xf32, #tpu.memory_space<vmem>>, vector<1x384xf32>
    %319 = arith.addf %317, %318 : vector<1x384xf32>
    %320 = vector.extract_strided_slice %319 {offsets = [0, 0], sizes = [1, 128], strides = [1, 1]} : vector<1x384xf32> to vector<1x128xf32>
    %321 = vector.extract_strided_slice %319 {offsets = [0, 128], sizes = [1, 128], strides = [1, 1]} : vector<1x384xf32> to vector<1x128xf32>
    %322 = vector.extract_strided_slice %319 {offsets = [0, 256], sizes = [1, 128], strides = [1, 1]} : vector<1x384xf32> to vector<1x128xf32>
    %323 = arith.maximumf %320, %321 : vector<1x128xf32>
    %324 = arith.maximumf %323, %322 : vector<1x128xf32>
    %325 = arith.subf %320, %324 : vector<1x128xf32>
    %326 = math.exp %325 : vector<1x128xf32>
    %327 = arith.subf %321, %324 : vector<1x128xf32>
    %328 = math.exp %327 : vector<1x128xf32>
    %329 = arith.subf %322, %324 : vector<1x128xf32>
    %330 = math.exp %329 : vector<1x128xf32>
    %331 = arith.addf %326, %328 : vector<1x128xf32>
    %332 = arith.addf %331, %330 : vector<1x128xf32>
    %333 = tpu.reciprocal %332 {approx = true} : vector<1x128xf32> -> vector<1x128xf32>
    %334 = arith.mulf %326, %333 : vector<1x128xf32>
    %335 = vector.shape_cast %334 : vector<1x128xf32> to vector<1x1x128xf32>
    %336 = arith.mulf %328, %333 : vector<1x128xf32>
    %337 = vector.shape_cast %336 : vector<1x128xf32> to vector<1x1x128xf32>
    %338 = arith.mulf %330, %333 : vector<1x128xf32>
    %339 = vector.shape_cast %338 : vector<1x128xf32> to vector<1x1x128xf32>
    %340 = vector.shape_cast %289 : vector<64x128xf32> to vector<1x64x128xf32>
    %341 = vector.broadcast %335 : vector<1x1x128xf32> to vector<1x64x128xf32>
    %342 = arith.mulf %341, %340 : vector<1x64x128xf32>
    %343 = vector.shape_cast %290 : vector<64x128xf32> to vector<1x64x128xf32>
    %344 = vector.broadcast %337 : vector<1x1x128xf32> to vector<1x64x128xf32>
    %345 = arith.mulf %344, %343 : vector<1x64x128xf32>
    %346 = arith.addf %342, %345 : vector<1x64x128xf32>
    %347 = vector.shape_cast %288 : vector<64x128xf32> to vector<1x64x128xf32>
    %348 = vector.broadcast %339 : vector<1x1x128xf32> to vector<1x64x128xf32>
    %349 = arith.mulf %348, %347 : vector<1x64x128xf32>
    %350 = arith.addf %346, %349 : vector<1x64x128xf32>
    %351 = vector.shape_cast %350 : vector<1x64x128xf32> to vector<64x128xf32>
    %352 = arith.truncf %351 : vector<64x128xf32> to vector<64x128xbf16>
    %c0_535 = arith.constant 0 : index
    %c0_536 = arith.constant 0 : index
    %353 = vector.load %arg10[%c0_535, %c0_536] : memref<128x128xbf16, #tpu.memory_space<vmem>>, vector<128x128xbf16>
    %cst_537 = arith.constant dense<0.000000e+00> : vector<64x128xf32>
    %354 = tpu.matmul %352, %353, %cst_537 {dimension_numbers = #tpu.dot_dimension_numbers<[1], [0], [0], [1], [0, 0, 1, 1], [], []>} : vector<64x128xbf16>, vector<128x128xbf16>, vector<64x128xf32> -> vector<64x128xf32>
    %c0_538 = arith.constant 0 : index
    %c0_539 = arith.constant 0 : index
    %355 = vector.load %arg11[%c0_538, %c0_539] : memref<1x128xf32, #tpu.memory_space<vmem>>, vector<1x128xf32>
    %356 = vector.broadcast %355 : vector<1x128xf32> to vector<64x128xf32>
    %357 = arith.addf %354, %356 : vector<64x128xf32>
    %358 = arith.addf %1, %357 : vector<64x128xf32>
    %c0_540 = arith.constant 0 : index
    %c0_541 = arith.constant 0 : index
    %359 = vector.load %arg12[%c0_540, %c0_541] : memref<1x128xf32, #tpu.memory_space<vmem>>, vector<1x128xf32>
    %c0_542 = arith.constant 0 : index
    %c0_543 = arith.constant 0 : index
    %360 = vector.load %arg13[%c0_542, %c0_543] : memref<1x128xf32, #tpu.memory_space<vmem>>, vector<1x128xf32>
    %cst_544 = arith.constant dense<0.000000e+00> : vector<64xf32>
    %361 = vector.multi_reduction <add>, %358, %cst_544 [1] : vector<64x128xf32> to vector<64xf32>
    %362 = vector.shape_cast %361 : vector<64xf32> to vector<64x1xf32>
    %cst_545 = arith.constant 1.280000e+02 : f32
    %363 = vector.broadcast %cst_545 : f32 to vector<64x1xf32>
    %364 = arith.divf %362, %363 : vector<64x1xf32>
    %365 = vector.broadcast %364 : vector<64x1xf32> to vector<64x128xf32>
    %366 = arith.subf %358, %365 : vector<64x128xf32>
    %367 = arith.mulf %366, %366 : vector<64x128xf32>
    %cst_546 = arith.constant dense<0.000000e+00> : vector<64xf32>
    %368 = vector.multi_reduction <add>, %367, %cst_546 [1] : vector<64x128xf32> to vector<64xf32>
    %369 = vector.shape_cast %368 : vector<64xf32> to vector<64x1xf32>
    %cst_547 = arith.constant 1.280000e+02 : f32
    %370 = vector.broadcast %cst_547 : f32 to vector<64x1xf32>
    %371 = arith.divf %369, %370 : vector<64x1xf32>
    %cst_548 = arith.constant 9.99999974E-6 : f32
    %372 = vector.broadcast %cst_548 : f32 to vector<64x1xf32>
    %373 = arith.addf %371, %372 : vector<64x1xf32>
    %374 = math.rsqrt %373 : vector<64x1xf32>
    %375 = vector.broadcast %374 : vector<64x1xf32> to vector<64x128xf32>
    %376 = arith.mulf %366, %375 : vector<64x128xf32>
    %377 = vector.broadcast %359 : vector<1x128xf32> to vector<64x128xf32>
    %378 = arith.mulf %376, %377 : vector<64x128xf32>
    %379 = vector.broadcast %360 : vector<1x128xf32> to vector<64x128xf32>
    %380 = arith.addf %378, %379 : vector<64x128xf32>
    %381 = arith.truncf %380 : vector<64x128xf32> to vector<64x128xbf16>
    %c0_549 = arith.constant 0 : index
    %c0_550 = arith.constant 0 : index
    %382 = vector.load %arg14[%c0_549, %c0_550] : memref<128x384xbf16, #tpu.memory_space<vmem>>, vector<128x384xbf16>
    %cst_551 = arith.constant dense<0.000000e+00> : vector<64x384xf32>
    %383 = tpu.matmul %381, %382, %cst_551 {dimension_numbers = #tpu.dot_dimension_numbers<[1], [0], [0], [1], [0, 0, 1, 1], [], []>} : vector<64x128xbf16>, vector<128x384xbf16>, vector<64x384xf32> -> vector<64x384xf32>
    %c0_552 = arith.constant 0 : index
    %c0_553 = arith.constant 0 : index
    %384 = vector.load %arg15[%c0_552, %c0_553] : memref<1x384xf32, #tpu.memory_space<vmem>>, vector<1x384xf32>
    %385 = vector.broadcast %384 : vector<1x384xf32> to vector<64x384xf32>
    %386 = arith.addf %383, %385 : vector<64x384xf32>
    %cst_554 = arith.constant 5.000000e-01 : f32
    %387 = vector.broadcast %cst_554 : f32 to vector<64x384xf32>
    %388 = arith.mulf %387, %386 : vector<64x384xf32>
    %cst_555 = arith.constant 4.471500e-02 : f32
    %389 = vector.broadcast %cst_555 : f32 to vector<64x384xf32>
    %390 = arith.mulf %389, %386 : vector<64x384xf32>
    %391 = arith.mulf %390, %386 : vector<64x384xf32>
    %392 = arith.mulf %391, %386 : vector<64x384xf32>
    %393 = arith.addf %386, %392 : vector<64x384xf32>
    %cst_556 = arith.constant 0.797884583 : f32
    %394 = vector.broadcast %cst_556 : f32 to vector<64x384xf32>
    %395 = arith.mulf %394, %393 : vector<64x384xf32>
    %396 = math.tanh %395 : vector<64x384xf32>
    %cst_557 = arith.constant 1.000000e+00 : f32
    %397 = vector.broadcast %cst_557 : f32 to vector<64x384xf32>
    %398 = arith.addf %397, %396 : vector<64x384xf32>
    %399 = arith.mulf %388, %398 : vector<64x384xf32>
    %400 = arith.truncf %399 : vector<64x384xf32> to vector<64x384xbf16>
    %c0_558 = arith.constant 0 : index
    %c0_559 = arith.constant 0 : index
    %401 = vector.load %arg16[%c0_558, %c0_559] : memref<384x128xbf16, #tpu.memory_space<vmem>>, vector<384x128xbf16>
    %cst_560 = arith.constant dense<0.000000e+00> : vector<64x128xf32>
    %402 = tpu.matmul %400, %401, %cst_560 {dimension_numbers = #tpu.dot_dimension_numbers<[1], [0], [0], [1], [0, 0, 1, 1], [], []>} : vector<64x384xbf16>, vector<384x128xbf16>, vector<64x128xf32> -> vector<64x128xf32>
    %c0_561 = arith.constant 0 : index
    %c0_562 = arith.constant 0 : index
    %403 = vector.load %arg17[%c0_561, %c0_562] : memref<1x128xf32, #tpu.memory_space<vmem>>, vector<1x128xf32>
    %404 = vector.broadcast %403 : vector<1x128xf32> to vector<64x128xf32>
    %405 = arith.addf %402, %404 : vector<64x128xf32>
    %406 = arith.addf %358, %405 : vector<64x128xf32>
    %407 = vector.shape_cast %406 : vector<64x128xf32> to vector<1x8x8x128xf32>
    %c0_563 = arith.constant 0 : index
    %c0_564 = arith.constant 0 : index
    %c0_565 = arith.constant 0 : index
    %c0_566 = arith.constant 0 : index
    %408 = vector.load %arg18[%c0_563, %c0_564, %c0_565, %c0_566] : memref<1x8x8x128xf32, #tpu.memory_space<vmem>>, vector<1x8x8x128xf32>
    tpu.vector_store %arg18[%c0_563, %c0_564, %c0_565, %c0_566], %407 {strides = array<i32>} : memref<1x8x8x128xf32, #tpu.memory_space<vmem>>, vector<1x8x8x128xf32>,
    return
  }
  func.func @transform_0(%arg0: i32) -> (i32, i32, i32, i32) {
    %c0_i32 = arith.constant 0 : i32
    %c0_i32_0 = arith.constant 0 : i32
    %c0_i32_1 = arith.constant 0 : i32
    %c0_i32_2 = arith.constant 0 : i32
    return %arg0, %c0_i32, %c0_i32_0, %c0_i32_1 : i32, i32, i32, i32
  }
  func.func @transform_1(%arg0: i32) -> (i32, i32) {
    %c0_i32 = arith.constant 0 : i32
    %c0_i32_0 = arith.constant 0 : i32
    %c0_i32_1 = arith.constant 0 : i32
    return %c0_i32, %c0_i32_0 : i32, i32
  }
  func.func @transform_2(%arg0: i32) -> (i32, i32) {
    %c0_i32 = arith.constant 0 : i32
    %c0_i32_0 = arith.constant 0 : i32
    %c0_i32_1 = arith.constant 0 : i32
    return %c0_i32, %c0_i32_0 : i32, i32
  }
  func.func @transform_3(%arg0: i32) -> (i32, i32) {
    %c0_i32 = arith.constant 0 : i32
    %c0_i32_0 = arith.constant 0 : i32
    %c0_i32_1 = arith.constant 0 : i32
    return %c0_i32, %c0_i32_0 : i32, i32
  }
  func.func @transform_4(%arg0: i32) -> (i32, i32) {
    %c0_i32 = arith.constant 0 : i32
    %c0_i32_0 = arith.constant 0 : i32
    %c0_i32_1 = arith.constant 0 : i32
    return %c0_i32, %c0_i32_0 : i32, i32
  }
  func.func @transform_5(%arg0: i32) -> (i32, i32) {
    %c0_i32 = arith.constant 0 : i32
    %c0_i32_0 = arith.constant 0 : i32
    %c0_i32_1 = arith.constant 0 : i32
    return %c0_i32, %c0_i32_0 : i32, i32
  }
  func.func @transform_6(%arg0: i32) -> (i32, i32) {
    %c0_i32 = arith.constant 0 : i32
    %c0_i32_0 = arith.constant 0 : i32
    %c0_i32_1 = arith.constant 0 : i32
    return %c0_i32, %c0_i32_0 : i32, i32
  }
  func.func @transform_7(%arg0: i32) -> (i32, i32) {
    %c0_i32 = arith.constant 0 : i32
    %c0_i32_0 = arith.constant 0 : i32
    %c0_i32_1 = arith.constant 0 : i32
    return %c0_i32, %c0_i32_0 : i32, i32
  }
  func.func @transform_8(%arg0: i32) -> (i32, i32) {
    %c0_i32 = arith.constant 0 : i32
    %c0_i32_0 = arith.constant 0 : i32
    %c0_i32_1 = arith.constant 0 : i32
    return %c0_i32, %c0_i32_0 : i32, i32
  }
  func.func @transform_9(%arg0: i32) -> (i32, i32) {
    %c0_i32 = arith.constant 0 : i32
    %c0_i32_0 = arith.constant 0 : i32
    %c0_i32_1 = arith.constant 0 : i32
    return %c0_i32, %c0_i32_0 : i32, i32
  }
  func.func @transform_10(%arg0: i32) -> (i32, i32) {
    %c0_i32 = arith.constant 0 : i32
    %c0_i32_0 = arith.constant 0 : i32
    %c0_i32_1 = arith.constant 0 : i32
    return %c0_i32, %c0_i32_0 : i32, i32
  }
  func.func @transform_11(%arg0: i32) -> (i32, i32) {
    %c0_i32 = arith.constant 0 : i32
    %c0_i32_0 = arith.constant 0 : i32
    %c0_i32_1 = arith.constant 0 : i32
    return %c0_i32, %c0_i32_0 : i32, i32
  }
  func.func @transform_12(%arg0: i32) -> (i32, i32) {
    %c0_i32 = arith.constant 0 : i32
    %c0_i32_0 = arith.constant 0 : i32
    %c0_i32_1 = arith.constant 0 : i32
    return %c0_i32, %c0_i32_0 : i32, i32
  }
  func.func @transform_13(%arg0: i32) -> (i32, i32) {
    %c0_i32 = arith.constant 0 : i32
    %c0_i32_0 = arith.constant 0 : i32
    %c0_i32_1 = arith.constant 0 : i32
    return %c0_i32, %c0_i32_0 : i32, i32
  }
  func.func @transform_14(%arg0: i32) -> (i32, i32) {
    %c0_i32 = arith.constant 0 : i32
    %c0_i32_0 = arith.constant 0 : i32
    %c0_i32_1 = arith.constant 0 : i32
    return %c0_i32, %c0_i32_0 : i32, i32
  }
  func.func @transform_15(%arg0: i32) -> (i32, i32) {
    %c0_i32 = arith.constant 0 : i32
    %c0_i32_0 = arith.constant 0 : i32
    %c0_i32_1 = arith.constant 0 : i32
    return %c0_i32, %c0_i32_0 : i32, i32
  }
  func.func @transform_16(%arg0: i32) -> (i32, i32) {
    %c0_i32 = arith.constant 0 : i32
    %c0_i32_0 = arith.constant 0 : i32
    %c0_i32_1 = arith.constant 0 : i32
    return %c0_i32, %c0_i32_0 : i32, i32
  }
  func.func @transform_17(%arg0: i32) -> (i32, i32, i32, i32) {
    %c0_i32 = arith.constant 0 : i32
    %c0_i32_0 = arith.constant 0 : i32
    %c0_i32_1 = arith.constant 0 : i32
    %c0_i32_2 = arith.constant 0 : i32
    return %arg0, %c0_i32, %c0_i32_0, %c0_i32_1 : i32, i32, i32, i32
  }
}

</mosaic_0001>

<bundles_post_ra>
// kernel: permutator_forward.1
= control target key start
LH: loop header
LB: loop body
LE: loop exit
PB: predicated region body
PF: predicated region fallthrough
CT: control target
= control target key end

     0   :  { %s7128_s0 = inlined_call_operand.hbm [shape: f32[2,8,8,128], index: 0, kind: input, shape index: {}]   ;;  %s7129_s1 = inlined_call_operand.vmem [shape: f32[1,128], index: 1, kind: input, shape index: {}]   ;;  %s7130_s2 = inlined_call_operand.vmem [shape: f32[1,128], index: 2, kind: input, shape index: {}]   ;;  %s7131_s3 = inlined_call_operand.hbm [shape: bf16[128,128], index: 3, kind: input, shape index: {}]   ;;  %s7132_s4 = inlined_call_operand.hbm [shape: bf16[128,128], index: 4, kind: input, shape index: {}]   ;;  %s7133_s5 = inlined_call_operand.hbm [shape: bf16[128,128], index: 5, kind: input, shape index: {}]   ;;  %s7134_s6 = inlined_call_operand.hbm [shape: f32[1,128], index: 6, kind: input, shape index: {}]   ;;  %s7135_s7 = inlined_call_operand.hbm [shape: bf16[128,384], index: 7, kind: input, shape index: {}]   ;;  %s7136_s8 = inlined_call_operand.vmem [shape: f32[1,384], index: 8, kind: input, shape index: {}]   ;;  %s7137_s9 = inlined_call_operand.hbm [shape: bf16[128,128], index: 9, kind: input, shape index: {}]   ;;  %s7138_s10 = inlined_call_operand.hbm [shape: f32[1,128], index: 10, kind: input, shape index: {}]   ;;  %s7139_s11 = inlined_call_operand.vmem [shape: f32[1,128], index: 11, kind: input, shape index: {}]   ;;  %s7140_s12 = inlined_call_operand.vmem [shape: f32[1,128], index: 12, kind: input, shape index: {}]   ;;  %s7141_s13 = inlined_call_operand.hbm [shape: bf16[128,384], index: 13, kind: input, shape index: {}]   ;;  %s7142_s14 = inlined_call_operand.hbm [shape: f32[1,384], index: 14, kind: input, shape index: {}]   ;;  %s7143_s15 = inlined_call_operand.hbm [shape: bf16[384,128], index: 15, kind: input, shape index: {}]   ;;  %s7144_s16 = inlined_call_operand.hbm [shape: f32[1,128], index: 16, kind: input, shape index: {}]   ;;  %s7145_s17 = inlined_call_operand.hbm [shape: f32[2,8,8,128], index: 17, kind: output, shape index: {}]  }
   0x1   :  { %7154 = sst [smem:[#allocation32_spill]] %s7128_s0 }
   0x2   :  { %7155 = sst [smem:[#allocation33_spill]] %s7129_s1 }
   0x3   :  { %7156 = sst [smem:[#allocation34_spill]] %s7131_s3 }
   0x4   :  { %7157 = sst [smem:[#allocation35_spill]] %s7132_s4 }
   0x5   :  { %7158 = sst [smem:[#allocation36_spill]] %s7133_s5 }
   0x6   :  { %7159 = sst [smem:[#allocation37_spill]] %s7134_s6 }
   0x7   :  { %7160 = sst [smem:[#allocation38_spill]] %s7135_s7 }
   0x8   :  { %7161 = sst [smem:[#allocation39_spill]] %s7136_s8 }
   0x9   :  { %7162 = sst [smem:[#allocation40_spill]] %s7137_s9 }
   0xa   :  { %7163 = sst [smem:[#allocation41_spill]] %s7138_s10 }
   0xb   :  { %7164 = sst [smem:[#allocation42_spill]] %s7139_s11 }
   0xc   :  { %7165 = sst [smem:[#allocation43_spill]] %s7140_s12 }
   0xd   :  { %7166 = sst [smem:[#allocation44_spill]] %s7145_s17 }
   0xe   :  { %22 = vsyncpa [#allocation4], 0 }
   0xf   :  { %24 = vsyncpa [#allocation4 + $0x1], 0 }
  0x10   :  { %25 = vsyncpa [#allocation7], 0 }
  0x11   :  { %26 = vsyncpa [#allocation10], 0 }
  0x12   :  { %27 = vsyncpa [#allocation13], 0 }
  0x13   :  { %28 = vsyncpa [#allocation16], 0 }
  0x14   :  { %29 = vsyncpa [#allocation19], 0 }
  0x15   :  { %30 = vsyncpa [#allocation22], 0 }
  0x16   :  { %31 = vsyncpa [#allocation5], 0 }
  0x17   :  { %33 = vsyncpa [#allocation5 + $0x1], 0  ;;  %s5028_s24 = smov 0   ;;  %s5030_s25 = smov 0  }
  0x18   :  { %s5032_s26 = smov 0   ;;  %s5034_s27 = smov 0  }
  0x19 LB: > { %s7167_s3 = sld [smem:[#allocation34_spill]]  ;;  %s5052_s30 = sadd.s32 4294967295, %s4908_s27   ;;  %s4908_s27 = sphi %s5034_s27, %s7199_s27   ;;  %s4904_s26 = sphi %s5032_s26, %s7198_s26   ;;  %s4900_s25 = sphi %s5030_s25, %s7197_s25   ;;  %s4896_s24 = sphi %s5028_s24, %s7196_s24  }
  0x1a   : > { %p3619_p0 = scmp.ge.s32.totalorder %s4908_s27, 1  ;;  %p60_p1 = scmp.eq.s32.totalorder %s5052_s30, 0 }
  0x1b   : > { %p432_p2 = scmp.lt.s32.totalorder %s4908_s27, 3  ;;  %s4910_s19 = smov [#allocation6]  }
  0x1c   : > { %s451_s1 = sshll.u32 %s4910_s19, 4  ;;  %s7169_s5 = sld [smem:[#allocation36_spill]]  ;;  %s452_s1 = int_to_ptr.vmem [resolvable:$true] %s451_s1 }
  0x1d   : > { %p5057_p3 = pnand %p3619_p0, %p432_p2  ;;  %s7171_s7 = sld [smem:[#allocation38_spill]] }
  0x1e   : > { %s7148_s12 = smov 64   ;;  %s7150_s11 = smov 4  }
  0x1f   : > { %s449_s0 = sshll.u32 %s7167_s3, 4  ;;  %p4224_p4 = pneg %p5057_p3  ;;  %s450_s0 = int_to_ptr.hbm [resolvable:$true] %s449_s0 }
  0x20   : > { %s4911_s3 = smov [#allocation9]   ;;  %s4914_s20 = smov [#allocation12]  }
  0x21   : > { %p5069_p6 = pnand %p4224_p4, %p60_p1  ;;  %s479_s17 = sshll.u32 %s4911_s3, 4  ;;  %s480_s17 = int_to_ptr.vmem [resolvable:$true] %s479_s17 }
  0x22   : > { %s477_s22 = sshll.u32 %s7169_s5, 4  ;;  %s505_s21 = sshll.u32 %s4914_s20, 4  ;;  %s478_s22 = int_to_ptr.hbm [resolvable:$true] %s477_s22  ;;  %s506_s21 = int_to_ptr.vmem [resolvable:$true] %s505_s21 }
  0x23   : > { %s503_s19 = sshll.u32 %s7171_s7, 4  ;;  %s7172_s10 = sld [smem:[#allocation41_spill]]  ;;  %s504_s19 = int_to_ptr.hbm [resolvable:$true] %s503_s19 }
  0x24   : > { %4227 = dma.hbm_to_vmem [thread:$0]  (!%p5069_p6), %s450_s0, 1024, %s452_s1, [#allocation7], %s7148_s12, %s7148_s12, %s7150_s11  }
  0x25   : > { %4233 = dma.hbm_to_vmem [thread:$0]  (!%p5069_p6), %s478_s22, 1024, %s480_s17, [#allocation10], %s7148_s12, %s7148_s12, %s7150_s11  }
  0x26   : > { %s7152_s5 = smov 192   ;;  %s7153_s7 = smov 12  }
  0x27   : > { %4239 = dma.hbm_to_vmem [thread:$0]  (!%p5069_p6), %s504_s19, 3072, %s506_s21, [#allocation13], %s7152_s5, %s7152_s5, %s7153_s7  }
  0x28   : > { %s4917_s0 = smov [#allocation15]   ;;  %s567_s22 = sshll.u32 %s7142_s14, 4  ;;  %s568_s22 = int_to_ptr.hbm [resolvable:$true] %s567_s22 }
  0x29   : > { %s535_s29 = sshll.u32 %s7172_s10, 4  ;;  %s537_s1 = sshll.u32 %s4917_s0, 4  ;;  %s536_s29 = int_to_ptr.hbm [resolvable:$true] %s535_s29  ;;  %s538_s1 = int_to_ptr.vmem [resolvable:$true] %s537_s1 }
  0x2a   : > { %4245 = dma.hbm_to_vmem [thread:$0]  (!%p5069_p6), %s536_s29, 16, %s538_s1, [#allocation16]  }
  0x2b   : > { %s7173_s4 = sld [smem:[#allocation35_spill]]  ;;  %s4918_s12 = smov [#allocation18]  }
  0x2c   : > { %s569_s11 = sshll.u32 %s4918_s12, 4  ;;  %s4919_s19 = smov [#allocation8]   ;;  %s570_s11 = int_to_ptr.vmem [resolvable:$true] %s569_s11 }
  0x2d   : > { %4251 = dma.hbm_to_vmem [thread:$0]  (!%p5069_p6), %s568_s22, 48, %s570_s11, [#allocation19]  }
  0x2e   : > { %s465_s21 = sshll.u32 %s4919_s19, 4  ;;  %s7174_s6 = sld [smem:[#allocation37_spill]]  ;;  %s466_s21 = int_to_ptr.vmem [resolvable:$true] %s465_s21 }
  0x2f   : > { %s7175_s29 = smov 4   ;;  %s7176_s1 = smov 64  }
  0x30   : > { %s7177_s9 = sld [smem:[#allocation40_spill]]  ;;  %s4920_s5 = smov [#allocation11]  }
  0x31   : > { %s463_s3 = sshll.u32 %s7173_s4, 4  ;;  %s494_s11 = sshll.u32 %s4920_s5, 4  ;;  %s464_s3 = int_to_ptr.hbm [resolvable:$true] %s463_s3  ;;  %s495_s11 = int_to_ptr.vmem [resolvable:$true] %s494_s11 }
  0x32   : > { %4230 = dma.hbm_to_vmem [thread:$0]  (!%p5069_p6), %s464_s3, 1024, %s466_s21, [#allocation7], %s7176_s1, %s7176_s1, %s7175_s29  }
  0x33   : > { %s4921_s22 = smov [#allocation14]   ;;  %s552_s7 = sshll.u32 %s7141_s13, 4  ;;  %s553_s7 = int_to_ptr.hbm [resolvable:$true] %s552_s7 }
  0x34   : > { %s492_s17 = sshll.u32 %s7174_s6, 4  ;;  %s522_s19 = sshll.u32 %s4921_s22, 4  ;;  %s493_s17 = int_to_ptr.hbm [resolvable:$true] %s492_s17  ;;  %s523_s19 = int_to_ptr.vmem [resolvable:$true] %s522_s19 }
  0x35   : > { %4236 = dma.hbm_to_vmem [thread:$0]  (!%p5069_p6), %s493_s17, 16, %s495_s11, [#allocation10]  }
  0x36   : > { %s520_s28 = sshll.u32 %s7177_s9, 4  ;;  %s578_s21 = sshll.u32 %s7143_s15, 4  ;;  %s521_s28 = int_to_ptr.hbm [resolvable:$true] %s520_s28  ;;  %s579_s21 = int_to_ptr.hbm [resolvable:$true] %s578_s21 }
  0x37   : > { %4242 = dma.hbm_to_vmem [thread:$0]  (!%p5069_p6), %s521_s28, 1024, %s523_s19, [#allocation13], %s7176_s1, %s7176_s1, %s7175_s29  }
  0x38   : > { %s4922_s17 = smov [#allocation17]   ;;  %s7178_s12 = smov 12  }
  0x39   : > { %s554_s20 = sshll.u32 %s4922_s17, 4  ;;  %s7179_s11 = smov 192   ;;  %s555_s20 = int_to_ptr.vmem [resolvable:$true] %s554_s20 }
  0x3a   : > { %4248 = dma.hbm_to_vmem [thread:$0]  (!%p5069_p6), %s553_s7, 3072, %s555_s20, [#allocation16], %s7179_s11, %s7179_s11, %s7178_s12  }
  0x3b   : > { %s4923_s28 = smov [#allocation20]   ;;  %s593_s0 = sshll.u32 %s7144_s16, 4  ;;  %s594_s0 = int_to_ptr.hbm [resolvable:$true] %s593_s0 }
  0x3c   : > { %s580_s22 = sshll.u32 %s4923_s28, 4  ;;  %s4924_s7 = smov [#allocation21]   ;;  %s581_s22 = int_to_ptr.vmem [resolvable:$true] %s580_s22 }
  0x3d   : > { %4254 = dma.hbm_to_vmem [thread:$0]  (!%p5069_p6), %s579_s21, 3072, %s581_s22, [#allocation19], %s7176_s1, %s7176_s1, %s7175_s29  }
  0x3e   : > { %s595_s3 = sshll.u32 %s4924_s7, 4  ;;  %s3618_s5 = sadd.s32 4294967294, %s4908_s27   ;;  %s596_s3 = int_to_ptr.vmem [resolvable:$true] %s595_s3 }
  0x3f   : > { %4257 = dma.hbm_to_vmem [thread:$0]  (!%p5069_p6), %s594_s0, 16, %s596_s3, [#allocation22]  }
  0x40   : > { %s5145_s17 = sadd.s32 1, %s4908_s27   ;;  %s46_s20 = sadd.s32 1, %s4904_s26 }
  0x41   : > { %s43_s12 = ssub.s32 %s4908_s27, %s5145_s17  ;;  %p53_p7 = scmp.ne.s32.totalorder %s4904_s26, %s4900_s25 }
  0x42   : > { %p44_p8 = scmp.eq.s32.totalorder %s43_s12, 0  ;;  %p54_p9 = scmp.eq.s32.totalorder %s4908_s27, 0 }
  0x43   : > { %p59_p10 = scmp.ne.s32.totalorder %s4900_s25, %s4896_s24  ;;  %p419_p11 = scmp.eq.s32.totalorder %s5052_s30, 1 }
  0x44   : > { %s5157_s29 = scalar_select %p44_p8, %s4904_s26, %s46_s20  }
  0x45   : > { %p5159_p12 = por %p54_p9, %p53_p7  ;;  %p5165_p13 = por %p60_p1, %p59_p10 }
  0x46   : > { %p5169_p0 = por %p419_p11, %p53_p7  ;;  %p425_p2 = scmp.eq.s32.totalorder %s3618_s5, 1 }
  0x47   : > { %p4277_p4 = scmp.lt.s32.totalorder %s4908_s27, 2  ;;  %s606_s11 = sand.u32 1, %s4904_s26  }
  0x48   : > { %p5175_p6 = por %p425_p2, %p59_p10  ;;  %s3632_s22 = sshll.u32 %s606_s11, 6 }
  0x49   : > { %s4070_s19 = sshll.u32 %s4908_s27, 6  ;;  %s7184_s7 = sld [smem:[#allocation32_spill]] }
  0x4a   : > { %s610_s12 = scalar_lea.vmem [#allocation3], %s3632_s22  ;;  %p5185_p7 = pnand %p4277_p4, %p5159_p12 }
  0x4b   : > { %s618_s4 = sshll.u32 %s610_s12, 4  ;;  %s607_s6 = scalar_lea.sflag [#allocation4], %s606_s11  ;;  %s619_s4 = int_to_ptr.vmem [resolvable:$true] %s618_s4 }
  0x4c   : > { %p4792_p9 = pneg %p5185_p7 }
  0x4f   : > { %s615_s3 = scalar_lea.hbm %s7184_s7, %s4070_s19  ;;  %s4795_s8 = scalar_lea.hbm %s7184_s7, 128 }
  0x50   : > { %s616_s20 = sshll.u32 %s615_s3, 4  ;;  %s617_s20 = int_to_ptr.hbm [resolvable:$true] %s616_s20 }
  0x51   : > { %s4788_s9 = sshra.s32 %s617_s20, 4  ;;  %s4789_s9 = int_to_ptr.hbm [resolvable:$true] %s4788_s9 }
  0x52   : > { %s4790_s10 = scalar_lea.hbm %s4789_s9, 64  ;;  %p4796_p12 = scmp.lt.s32.totalorder %s4789_s9, %s7184_s7 }
  0x53   : > { %p4791_p8 = scmp.ne.s32.totalorder %s4789_s9, %s4790_s10  ;;  %p4797_p2 = scmp.lt.s32.totalorder %s4795_s8, %s4790_s10 }
  0x55   : > { %p4793_p10 = pnand %p4792_p9, %p4791_p8  ;;  %p4798_p4 = por %p4797_p2, %p4796_p12 }
  0x57   : > { %p4794_p11 = pneg %p4793_p10 }
  0x59   : > { %p4799_p5 = pnand %p4798_p4, %p4794_p11 }
  0x5b   : > { %4802 = shalt.err (!%p4799_p5)
}
  0x5c   : > { %s4925_s11 = smov 128   ;;  %s4926_s3 = smov 8  }
  0x5d   : > { %4261 = dma.hbm_to_vmem [thread:$0]  (!%p5185_p7), %s617_s20, 1024, %s619_s4, %s607_s6, %s4925_s11, %s4925_s11, %s4926_s3  }
  0x5e   : > { %630 = sbr.rel (%p5057_p3) target bundleno = 2433 (0x981), region = 88  ;;  %s5202_s12 = sand.u32 (!%p5057_p3), 1, %s4900_s25  }
  0x5f   : > { %s3636_s9 = sshll.u32 (!%p5057_p3), %s5202_s12, 6  ;;  %s633_s10 = scalar_lea.sflag (!%p5057_p3), [#allocation4], %s5202_s12 }
  0x60   : > { %s5208_s19 = scalar_lea.vmem (!%p5057_p3), [#allocation3], %s3636_s9 }
  0x63   : > { %4863 = dma.done.wait (%p5165_p13), %s633_s10, 1024  }
  0x64   : > { %4865 = vsyncadd (%p5165_p13), %s633_s10, 4294966272 }
  0x65   : > { %4867 = dma.done.wait (%p60_p1), [#allocation7], 2048  }
  0x66   : > { %4869 = vsyncadd (%p60_p1), [#allocation7], 4294965248 }
  0x67   : > { %4871 = dma.done.wait (%p60_p1), [#allocation10], 1040  }
  0x68   : > { %4873 = vsyncadd (%p60_p1), [#allocation10], 4294966256 }
  0x69   : > { %4875 = dma.done.wait (%p60_p1), [#allocation13], 4096  }
  0x6a   : > { %4877 = vsyncadd (%p60_p1), [#allocation13], 4294963200 }
  0x6b   : > { %4879 = dma.done.wait (%p60_p1), [#allocation16], 3088  }
  0x6c   : > { %4881 = vsyncadd (%p60_p1), [#allocation16], 4294964208 }
  0x6d   : > { %4883 = dma.done.wait (%p60_p1), [#allocation19], 3120  }
  0x6e   : > { %4885 = vsyncadd (%p60_p1), [#allocation19], 4294964176 }
  0x6f   : > { %4887 = dma.done.wait (%p60_p1), [#allocation22], 16  }
  0x70   : > { %4889 = vsyncadd (%p60_p1), [#allocation22], 4294967280  ;;  %v747_v0 = vld [vmem:[%s5208_s19 + $0x20] sm:$0xff]  ;;  %v745_v1 = vld [vmem:[%s5208_s19 + $0x10] sm:$0xff]  ;;  %v4927_v8 = vmov 128.0   ;;  %vm942_vm3 = vcmask 130048  }
  0x71   : > { %v743_v2 = vld [vmem:[%s5208_s19] sm:$0xff]  ;;  %761 = vadd.xlane.f32.xlu2 %v747_v0  ;;  %757 = vadd.xlane.f32.xlu1 %v745_v1  ;;  %v748_v3 = vld [vmem:[%s5208_s19 + $0x28] sm:$0xff]  ;;  %v746_v4 = vld [vmem:[%s5208_s19 + $0x18] sm:$0xff]  ;;  %4356 = vrcp.f32 %v4927_v8  ;;  %s7186_s18 = sld [smem:[#allocation33_spill]]  ;;  %vm1198_vm10 = vcmask 122880   ;;  %s4928_s5 = smov 32  }
  0x72   : > { %753 = vadd.xlane.f32.xlu0 %v743_v2  ;;  %v744_v5 = vld [vmem:[%s5208_s19 + $0x8] sm:$0xff]  ;;  %v750_v6 = vld [vmem:[%s5208_s19 + $0x38] sm:$0xff]  ;;  %v749_v7 = vld [vmem:[%s5208_s19 + $0x30] sm:$0xff]  ;;  %s4929_s22 = smov 112   ;;  %s4930_s8 = smov 48  }
  0x73   : > { %v4086_v47 = vld [vmem:[#allocation8 + $0x38] sm:$0xff]  ;;  %v4085_v48 = vld [vmem:[#allocation8 + $0x30] sm:$0xff]  ;;  %v4084_v49 = vld [vmem:[#allocation8 + $0x28] sm:$0xff]  ;;  %s4931_s0 = smov 16   ;;  %s4932_s1 = smov 80  }
  0x74   : > { %1923 = vmatpush.bf16.msra.mxu1 %v4086_v47  ;;  %v4083_v50 = vld [vmem:[#allocation8 + $0x20] sm:$0xff]  ;;  %v4082_v51 = vld [vmem:[#allocation8 + $0x18] sm:$0xff]  ;;  %v4081_v52 = vld [vmem:[#allocation8 + $0x10] sm:$0xff]  ;;  %s4933_s11 = smov 64   ;;  %s4934_s3 = smov 96  }
  0x75   : > { %v4080_v58 = vld [vmem:[#allocation8 + $0x8] sm:$0xff]  ;;  %v4079_v60 = vld [vmem:[#allocation8] sm:$0xff]  ;;  %s7189_s6 = sld [smem:[#allocation39_spill]] }
  0x76   : > { %s7192_s23 = sld [smem:[#allocation42_spill]] }
  0x77   : > { %v4357_v9 = vpop.eup %4356 }
  0x78   : > { %v770_v10 = vmul.f32 128.0, %v4357_v9  ;;  %vm774_vm0 = vweird.f32 %v4357_v9  ;;  %1924 = vmatpush.bf16.msra.mxu1 %v4085_v48 }
  0x79   : > { %763 = vadd.xlane.f32.xlu2 %v748_v3  ;;  %759 = vadd.xlane.f32.xlu1 %v746_v4 }
  0x7a   : > { %755 = vadd.xlane.f32.xlu0 %v744_v5  ;;  %v771_v11 = vsub.f32 1.0, %v770_v10 }
  0x7c   : > { %v772_v12 = vmul.f32 %v4357_v9, %v771_v11  ;;  %1925 = vmatpush.bf16.msra.mxu1 %v4084_v49 }
  0x7e   : > { %v773_v13 = vadd.f32 %v4357_v9, %v772_v12 }
  0x80   : > { %v5246_v14 = vsel %vm774_vm0, %v4357_v9, %v773_v13  ;;  %1926 = vmatpush.bf16.msra.mxu1 %v4083_v50 }
  0x81   : > { %767 = vadd.xlane.f32.xlu1 %v750_v6 }
  0x82   : > { %765 = vadd.xlane.f32.xlu0 %v749_v7 }
  0x84   : > { %1927 = vmatpush.bf16.msra.mxu1 %v4082_v51 }
  0x88   : > { %1928 = vmatpush.bf16.msra.mxu1 %v4081_v52 }
  0x8c   : > { %1929 = vmatpush.bf16.msra.mxu1 %v4080_v58 }
  0x90   : > { %1930 = vmatpush.bf16.msra.mxu1 %v4079_v60 }
  0xe4   : > { %v762_v15 = vpop.xlane.xlu2 %761  ;;  %v758_v16 = vpop.xlane.xlu1 %757 }
  0xe5   : > { %v778_v17 = vmul.f32 %v5246_v14, %v758_v16  ;;  %v754_v18 = vpop.xlane.xlu0 %753  ;;  %v780_v35 = vmul.f32 %v5246_v14, %v762_v15 }
  0xe6   : > { %v776_v19 = vmul.f32 %v5246_v14, %v754_v18 }
  0xe7   : > { %v5250_v20 = vsub.f32 %v745_v1, %v778_v17  ;;  %v5274_v39 = vsub.f32 %v747_v0, %v780_v35 }
  0xe8   : > { %v5252_v21 = vsub.f32 %v743_v2, %v776_v19 }
  0xe9   : > { %v794_v22 = vmul.f32 %v5250_v20, %v5250_v20  ;;  %v796_v43 = vmul.f32 %v5274_v39, %v5274_v39 }
  0xea   : > { %v792_v23 = vmul.f32 %v5252_v21, %v5252_v21 }
  0xeb   : > { %804 = vadd.xlane.f32.xlu1 %v794_v22 }
  0xec   : > { %800 = vadd.xlane.f32.xlu2 %v792_v23  ;;  %v764_v24 = vpop.xlane.xlu2 %763  ;;  %v760_v25 = vpop.xlane.xlu1 %759 }
  0xed   : > { %v781_v26 = vmul.f32 %v5246_v14, %v764_v24  ;;  %v779_v27 = vmul.f32 %v5246_v14, %v760_v25  ;;  %v756_v28 = vpop.xlane.xlu0 %755 }
  0xee   : > { %v777_v29 = vmul.f32 %v5246_v14, %v756_v28 }
  0xef   : > { %v5261_v30 = vsub.f32 %v748_v3, %v781_v26  ;;  %v5263_v31 = vsub.f32 %v746_v4, %v779_v27 }
  0xf0   : > { %v5265_v32 = vsub.f32 %v744_v5, %v777_v29  ;;  %v5313_v29 = vld [vmem:[%s7186_s18] ss:$0 sm:$0xff] }
  0xf1   : > { %v797_v33 = vmul.f32 %v5261_v30, %v5261_v30  ;;  %v795_v34 = vmul.f32 %v5263_v31, %v5263_v31 }
  0xf2   : > { %v793_v36 = vmul.f32 %v5265_v32, %v5265_v32 }
  0xf3   : > { %810 = vadd.xlane.f32.xlu1 %v797_v33 }
  0xf4   : > { %806 = vadd.xlane.f32.xlu2 %v795_v34  ;;  %802 = vadd.xlane.f32.xlu0 %v793_v36  ;;  %v768_v38 = vpop.xlane.xlu1 %767 }
  0xf5   : > { %v766_v37 = vpop.xlane.xlu0 %765  ;;  %v783_v42 = vmul.f32 %v5246_v14, %v768_v38 }
  0xf6   : > { %v782_v40 = vmul.f32 %v5246_v14, %v766_v37 }
  0xf7   : > { %v5284_v45 = vsub.f32 %v750_v6, %v783_v42 }
  0xf8   : > { %v5277_v41 = vsub.f32 %v749_v7, %v782_v40  ;;  %v5326_v40 = vld [vmem:[%s7130_s2] ss:$0 sm:$0xff] }
  0xf9   : > { %v799_v46 = vmul.f32 %v5284_v45, %v5284_v45 }
  0xfa   : > { %v798_v44 = vmul.f32 %v5277_v41, %v5277_v41 }
  0xfc   : > { %808 = vadd.xlane.f32.xlu0 %v796_v43  ;;  %812 = vadd.xlane.f32.xlu2 %v798_v44 }
 0x104   : > { %814 = vadd.xlane.f32.xlu0 %v799_v46 }
 0x15e   : > { %v805_v53 = vpop.xlane.xlu1 %804 }
 0x15f   : > { %v818_v54 = vmul.f32 %v805_v53, %v5246_v14  ;;  %v801_v55 = vpop.xlane.xlu2 %800 }
 0x160   : > { %v816_v56 = vmul.f32 %v801_v55, %v5246_v14 }
 0x161   : > { %v826_v57 = vadd.f32 1e-05, %v818_v54 }
 0x162   : > { %v824_v59 = vadd.f32 1e-05, %v816_v56 }
 0x163   : > { %4358 = vrsqrt.f32 %v826_v57  ;;  %vm858_vm4 = vweird.f32 %v826_v57 }
 0x164   : > { %4360 = vrsqrt.f32 %v824_v59  ;;  %vm838_vm6 = vweird.f32 %v824_v59 }
 0x166   : > { %v811_v61 = vpop.xlane.xlu1 %810 }
 0x167   : > { %v821_v62 = vmul.f32 %v811_v61, %v5246_v14  ;;  %v807_v63 = vpop.xlane.xlu2 %806  ;;  %v803_v0 = vpop.xlane.xlu0 %802 }
 0x168   : > { %v819_v1 = vmul.f32 %v807_v63, %v5246_v14  ;;  %v817_v2 = vmul.f32 %v803_v0, %v5246_v14 }
 0x169   : > { %v4359_v3 = vpop.eup %4358  ;;  %v829_v4 = vadd.f32 1e-05, %v821_v62 }
 0x16a   : > { %v4361_v5 = vpop.eup %4360  ;;  %v853_v6 = vmul.f32 %v4359_v3, %v826_v57  ;;  %v5293_v7 = vadd.f32 1e-05, %v819_v1  ;;  %v5295_v8 = vadd.f32 1e-05, %v817_v2  ;;  %vm859_vm1 = vweird.f32 %v4359_v3 }
 0x16b   : > { %v833_v9 = vmul.f32 %v4361_v5, %v824_v59  ;;  %4362 = vrsqrt.f32 %v829_v4  ;;  %vm839_vm2 = vweird.f32 %v4361_v5  ;;  %vm860_vm5 = vmor %vm858_vm4, %vm859_vm1  ;;  %vm888_vm8 = vweird.f32 %v829_v4 }
 0x16c   : > { %v854_v10 = vmul.f32 %v4359_v3, %v853_v6  ;;  %4364 = vrsqrt.f32 %v5293_v7  ;;  %vm840_vm7 = vmor %vm838_vm6, %vm839_vm2  ;;  %vm868_vm14 = vweird.f32 %v5293_v7  ;;  %vm848_vm0 = vweird.f32 %v5295_v8 }
 0x16d   : > { %v834_v11 = vmul.f32 %v4361_v5, %v833_v9  ;;  %4366 = vrsqrt.f32 %v5295_v8 }
 0x16e   : > { %v855_v12 = vmul.f32 0.5, %v854_v10 }
 0x16f   : > { %v835_v13 = vmul.f32 0.5, %v834_v11  ;;  %v813_v15 = vpop.xlane.xlu2 %812  ;;  %v809_v16 = vpop.xlane.xlu0 %808 }
 0x170   : > { %v856_v17 = vsub.f32 1.5, %v855_v12  ;;  %v822_v18 = vmul.f32 %v813_v15, %v5246_v14  ;;  %v820_v19 = vmul.f32 %v809_v16, %v5246_v14 }
 0x171   : > { %v5301_v22 = vpop.eup %4362  ;;  %v836_v23 = vsub.f32 1.5, %v835_v13 }
 0x172   : > { %v5303_v24 = vpop.eup %4364  ;;  %v857_v25 = vmul.f32 %v4359_v3, %v856_v17  ;;  %v883_v26 = vmul.f32 %v5301_v22, %v829_v4  ;;  %v5306_v27 = vadd.f32 1e-05, %v822_v18  ;;  %v5317_v35 = vadd.f32 1e-05, %v820_v19 }
 0x173   : > { %v5308_v28 = vpop.eup %4366  ;;  %v837_v33 = vmul.f32 %v4361_v5, %v836_v23  ;;  %v863_v34 = vmul.f32 %v5303_v24, %v5293_v7  ;;  %vm889_vm9 = vweird.f32 %v5301_v22  ;;  %vm869_vm12 = vweird.f32 %v5303_v24 }
 0x174   : > { %v861_v36 = vsel %vm860_vm5, %v4359_v3, %v857_v25  ;;  %v884_v37 = vmul.f32 %v5301_v22, %v883_v26  ;;  %v843_v38 = vmul.f32 %v5308_v28, %v5295_v8  ;;  %4368 = vrsqrt.f32 %v5306_v27  ;;  %vm5342_vm11 = vmor %vm888_vm8, %vm889_vm9 }
 0x175   : > { %v914_v42 = vmul.f32 %v861_v36, %v5250_v20  ;;  %v841_v43 = vsel %vm840_vm7, %v4361_v5, %v837_v33  ;;  %v864_v44 = vmul.f32 %v5303_v24, %v863_v34  ;;  %4370 = vrsqrt.f32 %v5317_v35  ;;  %vm870_vm15 = vmor %vm868_vm14, %vm869_vm12 }
 0x176   : > { %v912_v46 = vmul.f32 %v841_v43, %v5252_v21  ;;  %v885_v47 = vmul.f32 0.5, %v884_v37  ;;  %v844_v48 = vmul.f32 %v5308_v28, %v843_v38  ;;  %vm849_vm13 = vweird.f32 %v5308_v28 }
 0x177   : > { %v925_v49 = vmul.f32 %v5313_v29, %v914_v42  ;;  %v865_v50 = vmul.f32 0.5, %v864_v44  ;;  %v815_v51 = vpop.xlane.xlu0 %814  ;;  %vm850_vm1 = vmor %vm848_vm0, %vm849_vm13  ;;  %vm898_vm2 = vweird.f32 %v5306_v27  ;;  %vm878_vm7 = vweird.f32 %v5317_v35 }
 0x178   : > { %v923_v20 = vmul.f32 %v5313_v29, %v912_v46  ;;  %v886_v52 = vsub.f32 1.5, %v885_v47  ;;  %v845_v53 = vmul.f32 0.5, %v844_v48  ;;  %v823_v54 = vmul.f32 %v815_v51, %v5246_v14  ;;  %v4078_v48 = vld [vmem:[#allocation6 + $0x38] sm:$0xff] }
 0x179   : > { %v5339_v21 = vadd.f32 %v5326_v40, %v925_v49  ;;  %v866_v56 = vsub.f32 1.5, %v865_v50  ;;  %vm948_vm13 = vcmask 261248   ;;  %vm1207_vm14 = vcmask 255105   ;;  %1806 = vmatpush.bf16.msra.mxu0 %v4078_v48  ;;  %v4077_v50 = vld [vmem:[#allocation6 + $0x30] sm:$0xff] }
 0x17a   : > { %v5349_v57 = vadd.f32 %v5326_v40, %v923_v20  ;;  %v887_v58 = vmul.f32 %v5301_v22, %v886_v52  ;;  %v846_v59 = vsub.f32 1.5, %v845_v53  ;;  %v5352_v60 = vadd.f32 1e-05, %v823_v54  ;;  %v4369_v61 = vpop.eup %4368  ;;  %v4076_v20 = vld [vmem:[#allocation6 + $0x28] sm:$0xff]  ;;  %v4075_v52 = vld [vmem:[#allocation6 + $0x20] sm:$0xff] }
 0x17b   : > { %v867_v62 = vmul.f32 %v5303_v24, %v866_v56  ;;  %951 = vrot.lane.b32.xlu0 %v5339_v21, %s4928_s5  ;;  %1201 = vst.msk [vmem:[#allocation2 + $0x50] sm:$0x1] %vm1198_vm10, %v5339_v21  ;;  %v893_v1 = vmul.f32 %v4369_v61, %v5306_v27  ;;  %v4371_v2 = vpop.eup %4370  ;;  %vm899_vm4 = vweird.f32 %v4369_v61  ;;  %v4074_v56 = vld [vmem:[#allocation6 + $0x18] sm:$0xff]  ;;  %vm1216_vm0 = vcmask 387330  }
 0x17c   : > { %v891_v63 = vsel %vm5342_vm11, %v5301_v22, %v887_v58  ;;  %v847_v0 = vmul.f32 %v5308_v28, %v846_v59  ;;  %987 = vrot.lane.b32.xlu1 %v5349_v57, %s4929_s22  ;;  %943 = vst.msk [vmem:[#allocation2] sm:$0xff] %vm942_vm3, %v5349_v57  ;;  %4372 = vrsqrt.f32 %v5352_v60  ;;  %v873_v8 = vmul.f32 %v4371_v2, %v5317_v35  ;;  %vm900_vm6 = vmor %vm898_vm2, %vm899_vm4  ;;  %v4073_v58 = vld [vmem:[#allocation6 + $0x10] sm:$0xff] }
 0x17d   : > { %v917_v3 = vmul.f32 %v891_v63, %v5261_v30  ;;  %v871_v4 = vsel %vm870_vm15, %v5303_v24, %v867_v62  ;;  %1199 = vst.msk [vmem:[#allocation2 + $0x40] sm:$0x1] %vm1198_vm10, %v5349_v57  ;;  %v894_v7 = vmul.f32 %v4369_v61, %v893_v1  ;;  %vm879_vm5 = vweird.f32 %v4371_v2  ;;  %1807 = vmatpush.bf16.msra.mxu0 %v4077_v50  ;;  %v4072_v62 = vld [vmem:[#allocation6 + $0x8] sm:$0xff]  ;;  %v4071_v63 = vld [vmem:[#allocation6] sm:$0xff] }
 0x17e   : > { %v915_v5 = vmul.f32 %v871_v4, %v5263_v31  ;;  %v851_v6 = vsel %vm850_vm1, %v5308_v28, %v847_v0  ;;  %v874_v12 = vmul.f32 %v4371_v2, %v873_v8  ;;  %vm880_vm8 = vmor %vm878_vm7, %vm879_vm5  ;;  %vm908_vm9 = vweird.f32 %v5352_v60 }
 0x17f   : > { %v928_v9 = vmul.f32 %v5313_v29, %v917_v3  ;;  %v913_v30 = vmul.f32 %v851_v6, %v5265_v32  ;;  %v895_v11 = vmul.f32 0.5, %v894_v7  ;;  %vm954_vm15 = vcmask 392448  }
 0x180   : > { %v926_v10 = vmul.f32 %v5313_v29, %v915_v5  ;;  %v875_v17 = vmul.f32 0.5, %v874_v12  ;;  %vm960_vm1 = vcmask 523648   ;;  %vm966_vm2 = vcmask 654848  }
 0x181   : > { %v5384_v13 = vadd.f32 %v5326_v40, %v928_v9  ;;  %v924_v15 = vmul.f32 %v5313_v29, %v913_v30  ;;  %v896_v16 = vsub.f32 1.5, %v895_v11  ;;  %1808 = vmatpush.bf16.msra.mxu0 %v4076_v20  ;;  %vm972_vm4 = vcmask 786048  }
 0x182   : > { %v5389_v31 = vadd.f32 %v5326_v40, %v926_v10  ;;  %v4373_v18 = vpop.eup %4372  ;;  %v876_v22 = vsub.f32 1.5, %v875_v17  ;;  %vm978_vm5 = vcmask 917248   ;;  %vm1225_vm7 = vcmask 519555  }
 0x183   : > { %v5392_v32 = vadd.f32 %v5326_v40, %v924_v15  ;;  %1204 = vst.msk [vmem:[#allocation2 + $0x68] sm:$0x1] %vm1198_vm10, %v5384_v13  ;;  %v897_v19 = vmul.f32 %v4369_v61, %v896_v16  ;;  %v903_v23 = vmul.f32 %v4373_v18, %v5352_v60  ;;  %vm909_vm11 = vweird.f32 %v4373_v18 }
 0x184   : > { %957 = vrot.lane.b32.xlu1 %v5389_v31, %s4930_s8  ;;  %997 = vrot.lane.b32.xlu0 %v5389_v31, %s4928_s5  ;;  %1202 = vst.msk [vmem:[#allocation2 + $0x58] sm:$0x1] %vm1198_vm10, %v5389_v31  ;;  %v877_v26 = vmul.f32 %v4371_v2, %v876_v22  ;;  %vm910_vm12 = vmor %vm908_vm9, %vm909_vm11  ;;  %vm1243_vm9 = vcmask 784005   ;;  %vm1252_vm11 = vcmask 916230  }
 0x185   : > { %945 = vrot.lane.b32.xlu2 %v5392_v32, %s4931_s0  ;;  %v1855_v24 = vpack.c.bf16 %v5392_v32, %v5349_v57  ;;  %1200 = vst.msk [vmem:[#allocation2 + $0x48] sm:$0x1] %vm1198_vm10, %v5392_v32  ;;  %v901_v25 = vsel %vm900_vm6, %v4369_v61, %v897_v19  ;;  %v904_v28 = vmul.f32 %v4373_v18, %v903_v23  ;;  %vm984_vm6 = vcmask 1048448  }
 0x186   : > { %v918_v33 = vmul.f32 %v901_v25, %v5277_v41  ;;  %v881_v27 = vsel %vm880_vm8, %v4371_v2, %v877_v26  ;;  %1809 = vmatpush.bf16.msra.mxu0 %v4075_v52  ;;  %vm1234_vm8 = vcmask 651780  }
 0x187   : > { %1931 = vmatmul.bf16.vlgmr.msra.gmra.mxu1 %v1855_v24  ;;  %v905_v34 = vmul.f32 0.5, %v904_v28  ;;  %v916_v37 = vmul.f32 %v881_v27, %v5274_v39 }
 0x188   : > { %v929_v36 = vmul.f32 %v5313_v29, %v918_v33 }
 0x189   : > { %v906_v38 = vsub.f32 1.5, %v905_v34  ;;  %v927_v35 = vmul.f32 %v5313_v29, %v916_v37 }
 0x18a   : > { %v5418_v42 = vadd.f32 %v5326_v40, %v929_v36  ;;  %1810 = vmatpush.bf16.msra.mxu0 %v4074_v56 }
 0x18b   : > { %v907_v43 = vmul.f32 %v4373_v18, %v906_v38  ;;  %v5424_v41 = vadd.f32 %v5326_v40, %v927_v35 }
 0x18c   : > { %969 = vrot.lane.b32.xlu0 %v5384_v13, %s4932_s1  ;;  %1205 = vst.msk [vmem:[#allocation2 + $0x70] sm:$0x1] %vm1198_vm10, %v5418_v42 }
 0x18d   : > { %993 = vrot.lane.b32.xlu2 %v5339_v21, %s4931_s0  ;;  %v911_v39 = vsel %vm910_vm12, %v4373_v18, %v907_v43  ;;  %1001 = vrot.lane.b32.xlu1 %v5424_v41, %s4930_s8  ;;  %1203 = vst.msk [vmem:[#allocation2 + $0x60] sm:$0x1] %vm1198_vm10, %v5424_v41 }
 0x18e   : > { %v919_v44 = vmul.f32 %v911_v39, %v5284_v45  ;;  %v1856_v45 = vpack.c.bf16 %v5389_v31, %v5339_v21  ;;  %1811 = vmatpush.bf16.msra.mxu0 %v4073_v58 }
 0x190   : > { %v930_v46 = vmul.f32 %v5313_v29, %v919_v44  ;;  %v1857_v29 = vpack.c.bf16 %v5384_v13, %v5424_v41 }
 0x192   : > { %v5437_v47 = vadd.f32 %v5326_v40, %v930_v46  ;;  %1812 = vmatpush.bf16.msra.mxu0 %v4072_v62 }
 0x194   : > { %1009 = vrot.lane.b32.xlu0 %v5418_v42, %s4932_s1  ;;  %1206 = vst.msk [vmem:[#allocation2 + $0x78] sm:$0x1] %vm1198_vm10, %v5437_v47  ;;  %v1858_v40 = vpack.c.bf16 %v5437_v47, %v5418_v42 }
 0x195   : > { %963 = vrot.lane.b32.xlu2 %v5424_v41, %s4933_s11  ;;  %975 = vrot.lane.b32.xlu1 %v5418_v42, %s4934_s3 }
 0x196   : > { %1813 = vmatpush.bf16.msra.mxu0 %v4071_v63 }
 0x197   : > { %1936 = vmatmul.bf16.gmra.mxu1 %v1856_v45 }
 0x19c   : > { %1017 = vrot.lane.b32.xlu0 %v5349_v57, %s4934_s3 }
 0x19d   : > { %1005 = vrot.lane.b32.xlu2 %v5384_v13, %s4933_s11  ;;  %1013 = vrot.lane.b32.xlu1 %v5437_v47, %s4934_s3 }
 0x1a4   : > { %1052 = vrot.lane.b32.xlu0 %v5392_v32, %s4934_s3 }
 0x1a5   : > { %981 = vrot.lane.b32.xlu2 %v5437_v47, %s4929_s22  ;;  %1022 = vrot.lane.b32.xlu1 %v5392_v32, %s4929_s22 }
 0x1a7   : > { %1941 = vmatmul.bf16.gmra.mxu1 %v1857_v29 }
 0x1ac   : > { %1031 = vrot.lane.b32.xlu0 %v5424_v41, %s4928_s5 }
 0x1ad   : > { %1047 = vrot.lane.b32.xlu2 %v5349_v57, %s4932_s1  ;;  %1027 = vrot.lane.b32.xlu1 %v5389_v31, %s4931_s0 }
 0x1b4   : > { %1065 = vrot.lane.b32.xlu0 %v5384_v13, %s4928_s5 }
 0x1b5   : > { %1056 = vrot.lane.b32.xlu2 %v5339_v21, %s4929_s22  ;;  %1035 = vrot.lane.b32.xlu1 %v5384_v13, %s4930_s8 }
 0x1b7   : > { %1946 = vmatmul.bf16.gmra.mxu1 %v1858_v40 }
 0x1bc   : > { %1043 = vrot.lane.b32.xlu0 %v5437_v47, %s4932_s1 }
 0x1bd   : > { %1061 = vrot.lane.b32.xlu2 %v5424_v41, %s4931_s0  ;;  %1069 = vrot.lane.b32.xlu1 %v5418_v42, %s4930_s8 }
 0x1c4   : > { %1107 = vrot.lane.b32.xlu0 %v5349_v57, %s4930_s8 }
 0x1c5   : > { %1039 = vrot.lane.b32.xlu2 %v5418_v42, %s4933_s11  ;;  %1077 = vrot.lane.b32.xlu1 %v5349_v57, %s4933_s11 }
 0x1cc   : > { %1086 = vrot.lane.b32.xlu0 %v5339_v21, %s4934_s3 }
 0x1cd   : > { %1073 = vrot.lane.b32.xlu2 %v5437_v47, %s4933_s11  ;;  %1112 = vrot.lane.b32.xlu1 %v5392_v32, %s4933_s11 }
 0x1d4   : > { %1120 = vrot.lane.b32.xlu0 %v5389_v31, %s4934_s3 }
 0x1d5   : > { %1082 = vrot.lane.b32.xlu2 %v5392_v32, %s4932_s1  ;;  %1090 = vrot.lane.b32.xlu1 %v5389_v31, %s4929_s22 }
 0x1dc   : > { %1099 = vrot.lane.b32.xlu0 %v5418_v42, %s4928_s5 }
 0x1dd   : > { %1116 = vrot.lane.b32.xlu2 %v5339_v21, %s4932_s1  ;;  %1095 = vrot.lane.b32.xlu1 %v5384_v13, %s4931_s0 }
 0x1df   : > { %v5507_v49 = vpop.permute.xlu2 %945 }
 0x1e0   : > { %949 = vst.msk [vmem:[#allocation2] sm:$0xff] %vm948_vm13, %v5507_v49 }
 0x1e1   : > { %1209 = vst.msk [vmem:[#allocation2 + $0x47] sm:$0x2] %vm1207_vm14, %v5507_v49 }
 0x1e2   : > { %1655 = vst.msk [vmem:[#allocation2 + $0x4f] sm:$0x1] %vm1198_vm10, %v5507_v49 }
 0x1e4   : > { %1133 = vrot.lane.b32.xlu0 %v5437_v47, %s4928_s5 }
 0x1e5   : > { %1124 = vrot.lane.b32.xlu2 %v5424_v41, %s4929_s22  ;;  %1103 = vrot.lane.b32.xlu1 %v5437_v47, %s4930_s8 }
 0x1e7   : > { %v5521_v51 = vpop.permute.xlu2 %993 }
 0x1e8   : > { %1210 = vst.msk [vmem:[#allocation2 + $0x4f] sm:$0x2] %vm1207_vm14, %v5521_v51 }
 0x1e9   : > { %1656 = vst.msk [vmem:[#allocation2 + $0x57] sm:$0x1] %vm1198_vm10, %v5521_v51 }
 0x1ec   : > { %1142 = vrot.lane.b32.xlu0 %v5392_v32, %s4930_s8 }
 0x1ed   : > { %1129 = vrot.lane.b32.xlu2 %v5418_v42, %s4931_s0  ;;  %v5531_v53 = vpop.permute.xlu0 %951  ;;  %1167 = vrot.lane.b32.xlu1 %v5349_v57, %s4931_s0 }
 0x1ee   : > { %v5533_v54 = vpop.permute.xlu1 %987  ;;  %955 = vst.msk [vmem:[#allocation2] sm:$0xff] %vm954_vm15, %v5531_v53 }
 0x1ef   : > { %991 = vst.msk [vmem:[#allocation2 + $0x8] sm:$0xff] %vm942_vm3, %v5533_v54  ;;  %v5541_v55 = vpop.permute.xlu2 %963 }
 0x1f0   : > { %992 = vst.msk [vmem:[#allocation2 + $0x8] sm:$0xff] %vm948_vm13, %v5392_v32 }
 0x1f1   : > { %1270 = vst.msk [vmem:[#allocation2 + $0x41] sm:$0x1] %vm1198_vm10, %v5533_v54 }
 0x1f2   : > { %1278 = vst.msk [vmem:[#allocation2 + $0x40] sm:$0x2] %vm1207_vm14, %v5349_v57 }
 0x1f3   : > { %1466 = vst.msk [vmem:[#allocation2 + $0x64] sm:$0x1] %vm1198_vm10, %v5541_v55 }
 0x1f4   : > { %1219 = vst.msk [vmem:[#allocation2 + $0x4e] sm:$0x4] %vm1216_vm0, %v5531_v53  ;;  %1176 = vrot.lane.b32.xlu0 %v5339_v21, %s4930_s8  ;;  %s7077_s8 = scalar_lea.vmem [#allocation23], %s3636_s9  ;;  %s4175_s9 = sshll.u32 %s5052_s30, 6 }
 0x1f5   : > { %1592 = vst.msk [vmem:[#allocation2 + $0x56] sm:$0x1] %vm1198_vm10, %v5531_v53  ;;  %1137 = vrot.lane.b32.xlu2 %v5349_v57, %s4928_s5  ;;  %1146 = vrot.lane.b32.xlu1 %v5339_v21, %s4933_s11  ;;  %s3437_s10 = sshll.u32 %s7077_s8, 4  ;;  %s3425_s30 = scalar_lea.sflag [#allocation5], %s5202_s12  ;;  %s3438_s10 = int_to_ptr.vmem [resolvable:$true] %s3437_s10 }
 0x1f6   : > { %1664 = vst.msk [vmem:[#allocation2 + $0x56] sm:$0x2] %vm1207_vm14, %v5531_v53  ;;  %v5561_v59 = vpop.permute.xlu1 %957  ;;  %v5563_v60 = vpop.permute.xlu0 %997 }
 0x1f7   : > { %996 = vst.msk [vmem:[#allocation2 + $0x8] sm:$0xff] %vm954_vm15, %v5521_v51  ;;  %v5569_v61 = vpop.permute.xlu2 %1005 }
 0x1f8   : > { %961 = vst.msk [vmem:[#allocation2] sm:$0xff] %vm960_vm1, %v5561_v59 }
 0x1f9   : > { %1529 = vst.msk [vmem:[#allocation2 + $0x5d] sm:$0x1] %vm1198_vm10, %v5561_v59 }
 0x1fa   : > { %1467 = vst.msk [vmem:[#allocation2 + $0x6c] sm:$0x1] %vm1198_vm10, %v5569_v61 }
 0x1fb   : > { %1000 = vst.msk [vmem:[#allocation2 + $0x8] sm:$0xff] %vm960_vm1, %v5563_v60 }
 0x1fc   : > { %1593 = vst.msk [vmem:[#allocation2 + $0x5e] sm:$0x1] %vm1198_vm10, %v5563_v60  ;;  %1154 = vrot.lane.b32.xlu0 %v5424_v41, %s4934_s3 }
 0x1fd   : > { %1601 = vst.msk [vmem:[#allocation2 + $0x5d] sm:$0x2] %vm1207_vm14, %v5561_v59  ;;  %1172 = vrot.lane.b32.xlu2 %v5392_v32, %s4928_s5  ;;  %1180 = vrot.lane.b32.xlu1 %v5389_v31, %s4933_s11  ;;  %s7194_s11 = sld [smem:[#allocation44_spill]] }
 0x1fe   : > { %967 = vst.msk [vmem:[#allocation2] sm:$0xff] %vm966_vm2, %v5541_v55  ;;  %v5589_v0 = vpop.permute.xlu0 %969 }
 0x1ff   : > { %v5593_v1 = vpop.permute.xlu2 %981  ;;  %973 = vst.msk [vmem:[#allocation2] sm:$0xff] %vm972_vm4, %v5589_v0  ;;  %v5599_v2 = vpop.permute.xlu1 %1001 }
 0x200   : > { %1277 = vst.msk [vmem:[#allocation2 + $0x79] sm:$0x1] %vm1198_vm10, %v5593_v1 }
 0x201   : > { %1285 = vst.msk [vmem:[#allocation2 + $0x78] sm:$0x2] %vm1207_vm14, %v5437_v47 }
 0x202   : > { %1004 = vst.msk [vmem:[#allocation2 + $0x8] sm:$0xff] %vm966_vm2, %v5599_v2 }
 0x203   : > { %1530 = vst.msk [vmem:[#allocation2 + $0x65] sm:$0x1] %vm1198_vm10, %v5599_v2  ;;  %s4838_s20 = scalar_lea.hbm %s7194_s11, 128 }
 0x204   : > { %1538 = vst.msk [vmem:[#allocation2 + $0x64] sm:$0x2] %vm1207_vm14, %v5541_v55  ;;  %1188 = vrot.lane.b32.xlu0 %v5384_v13, %s4934_s3  ;;  %s3436_s3 = scalar_lea.hbm %s7194_s11, %s4175_s9 }
 0x205   : > { %1403 = vst.msk [vmem:[#allocation2 + $0x6b] sm:$0x1] %vm1198_vm10, %v5589_v0  ;;  %1150 = vrot.lane.b32.xlu2 %v5389_v31, %s4932_s1  ;;  %1158 = vrot.lane.b32.xlu1 %v5384_v13, %s4929_s22  ;;  %s3439_s4 = sshll.u32 %s3436_s3, 4  ;;  %s3440_s4 = int_to_ptr.hbm [resolvable:$true] %s3439_s4 }
 0x206   : > { %1475 = vst.msk [vmem:[#allocation2 + $0x6b] sm:$0x2] %vm1207_vm14, %v5589_v0  ;;  %v5631_v5 = vpop.permute.xlu0 %1009 }
 0x207   : > { %1008 = vst.msk [vmem:[#allocation2 + $0x8] sm:$0xff] %vm972_vm4, %v5569_v61  ;;  %v5621_v3 = vpop.permute.xlu2 %1047  ;;  %v5625_v4 = vpop.permute.xlu1 %975 }
 0x208   : > { %1051 = vst.msk [vmem:[#allocation2 + $0x18] sm:$0xff] %vm942_vm3, %v5621_v3 }
 0x209   : > { %1398 = vst.msk [vmem:[#allocation2 + $0x43] sm:$0x1] %vm1198_vm10, %v5621_v3 }
 0x20a   : > { %979 = vst.msk [vmem:[#allocation2] sm:$0xff] %vm978_vm5, %v5625_v4 }
 0x20b   : > { %985 = vst.msk [vmem:[#allocation2] sm:$0xff] %vm984_vm6, %v5593_v1 }
 0x20c   : > { %1340 = vst.msk [vmem:[#allocation2 + $0x72] sm:$0x1] %vm1198_vm10, %v5625_v4 }
 0x20d   : > { %1012 = vst.msk [vmem:[#allocation2 + $0x8] sm:$0xff] %vm978_vm5, %v5631_v5  ;;  %1184 = vrot.lane.b32.xlu2 %v5424_v41, %s4932_s1  ;;  %1163 = vrot.lane.b32.xlu1 %v5437_v47, %s4931_s0 }
 0x20e   : > { %1404 = vst.msk [vmem:[#allocation2 + $0x73] sm:$0x1] %vm1198_vm10, %v5631_v5  ;;  %v5661_v8 = vpop.permute.xlu0 %1017 }
 0x20f   : > { %1412 = vst.msk [vmem:[#allocation2 + $0x72] sm:$0x2] %vm1207_vm14, %v5625_v4  ;;  %v5647_v6 = vpop.permute.xlu2 %1056  ;;  %v5651_v7 = vpop.permute.xlu1 %1013 }
 0x210   : > { %1272 = vst.msk [vmem:[#allocation2 + $0x51] sm:$0x1] %vm1198_vm10, %v5647_v6 }
 0x211   : > { %1280 = vst.msk [vmem:[#allocation2 + $0x50] sm:$0x2] %vm1207_vm14, %v5339_v21 }
 0x212   : > { %1016 = vst.msk [vmem:[#allocation2 + $0x8] sm:$0xff] %vm984_vm6, %v5651_v7  ;;  %v1718_v9 = vld [vmem:[#allocation2] sm:$0xff] }
 0x213   : > { %1341 = vst.msk [vmem:[#allocation2 + $0x7a] sm:$0x1] %vm1198_vm10, %v5651_v7 }
 0x214   : > { %1349 = vst.msk [vmem:[#allocation2 + $0x79] sm:$0x2] %vm1207_vm14, %v5593_v1 }
 0x215   : > { %1357 = vst.msk [vmem:[#allocation2 + $0x78] sm:$0x4] %vm1216_vm0, %v5437_v47  ;;  %1192 = vrot.lane.b32.xlu2 %v5418_v42, %s4929_s22  ;;  %s7193_s22 = sld [smem:[#allocation43_spill]] }
 0x216   : > { %1288 = vst.msk [vmem:[#allocation2 + $0x4f] sm:$0x4] %vm1216_vm0, %v5521_v51  ;;  %v5695_v15 = vpop.permute.xlu0 %1052 }
 0x217   : > { %1021 = vst.msk [vmem:[#allocation2 + $0x10] sm:$0xff] %vm942_vm3, %v5661_v8  ;;  %v5677_v10 = vpop.permute.xlu1 %1022  ;;  %v5689_v12 = vpop.permute.xlu2 %1061 }
 0x218   : > { %1334 = vst.msk [vmem:[#allocation2 + $0x42] sm:$0x1] %vm1198_vm10, %v5661_v8 }
 0x219   : > { %1342 = vst.msk [vmem:[#allocation2 + $0x41] sm:$0x2] %vm1207_vm14, %v5533_v54  ;;  %v1719_v30 = vld [vmem:[#allocation2 + $0x8] sm:$0xff] }
 0x21a   : > { %1406 = vst.msk [vmem:[#allocation2 + $0x42] sm:$0x2] %vm1207_vm14, %v5661_v8  ;;  %v1734_v11 = vpack.c.bf16 %v1719_v30, %v1718_v9 }
 0x21b   : > { %1414 = vst.msk [vmem:[#allocation2 + $0x41] sm:$0x4] %vm1216_vm0, %v5533_v54 }
 0x21c   : > { %1350 = vst.msk [vmem:[#allocation2 + $0x40] sm:$0x4] %vm1216_vm0, %v5349_v57  ;;  %1814 = vmatmul.bf16.vlgmr.msra.gmra.mxu0 %v1734_v11 }
 0x21d   : > { %1025 = vst.msk [vmem:[#allocation2 + $0x10] sm:$0xff] %vm948_vm13, %v5677_v10 }
 0x21e   : > { %1271 = vst.msk [vmem:[#allocation2 + $0x49] sm:$0x1] %vm1198_vm10, %v5677_v10  ;;  %v5733_v18 = vpop.permute.xlu0 %1031 }
 0x21f   : > { %1279 = vst.msk [vmem:[#allocation2 + $0x48] sm:$0x2] %vm1207_vm14, %v5392_v32  ;;  %v5711_v16 = vpop.permute.xlu1 %1027  ;;  %v5725_v17 = vpop.permute.xlu2 %1039 }
 0x220   : > { %1026 = vst.msk [vmem:[#allocation2 + $0x10] sm:$0xff] %vm954_vm15, %v5339_v21 }
 0x221   : > { %1287 = vst.msk [vmem:[#allocation2 + $0x47] sm:$0x4] %vm1216_vm0, %v5507_v49 }
 0x222   : > { %1212 = vst.msk [vmem:[#allocation2 + $0x5f] sm:$0x2] %vm1207_vm14, %v5689_v12 }
 0x223   : > { %1658 = vst.msk [vmem:[#allocation2 + $0x67] sm:$0x1] %vm1198_vm10, %v5689_v12 }
 0x224   : > { %1055 = vst.msk [vmem:[#allocation2 + $0x18] sm:$0xff] %vm948_vm13, %v5695_v15 }
 0x225   : > { %1059 = vst.msk [vmem:[#allocation2 + $0x18] sm:$0xff] %vm954_vm15, %v5647_v6 }
 0x226   : > { %1335 = vst.msk [vmem:[#allocation2 + $0x4a] sm:$0x1] %vm1198_vm10, %v5695_v15  ;;  %v5777_v23 = vpop.permute.xlu0 %1065 }
 0x227   : > { %1343 = vst.msk [vmem:[#allocation2 + $0x49] sm:$0x2] %vm1207_vm14, %v5677_v10  ;;  %v5761_v19 = vpop.permute.xlu1 %1035  ;;  %v5773_v22 = vpop.permute.xlu2 %1073 }
 0x228   : > { %1060 = vst.msk [vmem:[#allocation2 + $0x18] sm:$0xff] %vm960_vm1, %v5389_v31 }
 0x229   : > { %1351 = vst.msk [vmem:[#allocation2 + $0x48] sm:$0x4] %vm1216_vm0, %v5392_v32 }
 0x22a   : > { %1064 = vst.msk [vmem:[#allocation2 + $0x18] sm:$0xff] %vm966_vm2, %v5689_v12 }
 0x22b   : > { %1030 = vst.msk [vmem:[#allocation2 + $0x10] sm:$0xff] %vm960_vm1, %v5711_v16 }
 0x22c   : > { %1211 = vst.msk [vmem:[#allocation2 + $0x57] sm:$0x2] %vm1207_vm14, %v5711_v16 }
 0x22d   : > { %1220 = vst.msk [vmem:[#allocation2 + $0x56] sm:$0x4] %vm1216_vm0, %v5563_v60 }
 0x22e   : > { %1657 = vst.msk [vmem:[#allocation2 + $0x5f] sm:$0x1] %vm1198_vm10, %v5711_v16  ;;  %v5813_v26 = vpop.permute.xlu0 %1043 }
 0x22f   : > { %1665 = vst.msk [vmem:[#allocation2 + $0x5e] sm:$0x2] %vm1207_vm14, %v5563_v60  ;;  %v5789_v24 = vpop.permute.xlu1 %1069  ;;  %v5801_v25 = vpop.permute.xlu2 %1082 }
 0x230   : > { %1673 = vst.msk [vmem:[#allocation2 + $0x5d] sm:$0x4] %vm1216_vm0, %v5561_v59 }
 0x231   : > { %1468 = vst.msk [vmem:[#allocation2 + $0x74] sm:$0x1] %vm1198_vm10, %v5725_v17 }
 0x232   : > { %1476 = vst.msk [vmem:[#allocation2 + $0x73] sm:$0x2] %vm1207_vm14, %v5631_v5 }
 0x233   : > { %1484 = vst.msk [vmem:[#allocation2 + $0x72] sm:$0x4] %vm1216_vm0, %v5625_v4 }
 0x234   : > { %1034 = vst.msk [vmem:[#allocation2 + $0x10] sm:$0xff] %vm966_vm2, %v5733_v18 }
 0x235   : > { %1221 = vst.msk [vmem:[#allocation2 + $0x5e] sm:$0x4] %vm1216_vm0, %v5733_v18 }
 0x236   : > { %1230 = vst.msk [vmem:[#allocation2 + $0x5d] sm:$0x8] %vm1225_vm7, %v5599_v2  ;;  %v5849_v37 = vpop.permute.xlu0 %1107 }
 0x237   : > { %1594 = vst.msk [vmem:[#allocation2 + $0x66] sm:$0x1] %vm1198_vm10, %v5733_v18  ;;  %v5831_v28 = vpop.permute.xlu1 %1077  ;;  %v5845_v36 = vpop.permute.xlu2 %1116 }
 0x238   : > { %1602 = vst.msk [vmem:[#allocation2 + $0x65] sm:$0x2] %vm1207_vm14, %v5599_v2 }
 0x239   : > { %1666 = vst.msk [vmem:[#allocation2 + $0x66] sm:$0x2] %vm1207_vm14, %v5733_v18 }
 0x23a   : > { %1674 = vst.msk [vmem:[#allocation2 + $0x65] sm:$0x4] %vm1216_vm0, %v5599_v2 }
 0x23b   : > { %1229 = vst.msk [vmem:[#allocation2 + $0x55] sm:$0x8] %vm1225_vm7, %v5561_v59 }
 0x23c   : > { %1296 = vst.msk [vmem:[#allocation2 + $0x4e] sm:$0x8] %vm1225_vm7, %v5531_v53 }
 0x23d   : > { %1359 = vst.msk [vmem:[#allocation2 + $0x47] sm:$0x8] %vm1225_vm7, %v5507_v49 }
 0x23e   : > { %1422 = vst.msk [vmem:[#allocation2 + $0x40] sm:$0x8] %vm1225_vm7, %v5349_v57  ;;  %v5885_v43 = vpop.permute.xlu0 %1086 }
 0x23f   : > { %1610 = vst.msk [vmem:[#allocation2 + $0x64] sm:$0x4] %vm1216_vm0, %v5541_v55  ;;  %v5861_v38 = vpop.permute.xlu1 %1112  ;;  %v5875_v35 = vpop.permute.xlu2 %1124 }
 0x240   : > { %1682 = vst.msk [vmem:[#allocation2 + $0x64] sm:$0x8] %vm1225_vm7, %v5541_v55 }
 0x241   : > { %1038 = vst.msk [vmem:[#allocation2 + $0x10] sm:$0xff] %vm972_vm4, %v5761_v19 }
 0x242   : > { %1531 = vst.msk [vmem:[#allocation2 + $0x6d] sm:$0x1] %vm1198_vm10, %v5761_v19 }
 0x243   : > { %1539 = vst.msk [vmem:[#allocation2 + $0x6c] sm:$0x2] %vm1207_vm14, %v5569_v61 }
 0x244   : > { %1042 = vst.msk [vmem:[#allocation2 + $0x10] sm:$0xff] %vm978_vm5, %v5725_v17 }
 0x245   : > { %1547 = vst.msk [vmem:[#allocation2 + $0x6b] sm:$0x4] %vm1216_vm0, %v5589_v0 }
 0x246   : > { %1469 = vst.msk [vmem:[#allocation2 + $0x7c] sm:$0x1] %vm1198_vm10, %v5773_v22  ;;  %v5923_v46 = vpop.permute.xlu0 %1120 }
 0x247   : > { %1068 = vst.msk [vmem:[#allocation2 + $0x18] sm:$0xff] %vm972_vm4, %v5777_v23  ;;  %v5903_v39 = vpop.permute.xlu1 %1090  ;;  %v5917_v44 = vpop.permute.xlu2 %1129 }
 0x248   : > { %1595 = vst.msk [vmem:[#allocation2 + $0x6e] sm:$0x1] %vm1198_vm10, %v5777_v23 }
 0x249   : > { %1603 = vst.msk [vmem:[#allocation2 + $0x6d] sm:$0x2] %vm1207_vm14, %v5761_v19 }
 0x24a   : > { %1611 = vst.msk [vmem:[#allocation2 + $0x6c] sm:$0x4] %vm1216_vm0, %v5569_v61 }
 0x24b   : > { %1619 = vst.msk [vmem:[#allocation2 + $0x6b] sm:$0x8] %vm1225_vm7, %v5589_v0 }
 0x24c   : > { %1072 = vst.msk [vmem:[#allocation2 + $0x18] sm:$0xff] %vm978_vm5, %v5789_v24 }
 0x24d   : > { %1076 = vst.msk [vmem:[#allocation2 + $0x18] sm:$0xff] %vm984_vm6, %v5773_v22 }
 0x24e   : > { %1532 = vst.msk [vmem:[#allocation2 + $0x75] sm:$0x1] %vm1198_vm10, %v5789_v24  ;;  %v5971_v40 = vpop.permute.xlu0 %1099 }
 0x24f   : > { %1540 = vst.msk [vmem:[#allocation2 + $0x74] sm:$0x2] %vm1207_vm14, %v5725_v17  ;;  %v5939_v45 = vpop.permute.xlu1 %1095  ;;  %v5959_v29 = vpop.permute.xlu2 %1137 }
 0x250   : > { %1548 = vst.msk [vmem:[#allocation2 + $0x73] sm:$0x4] %vm1216_vm0, %v5631_v5 }
 0x251   : > { %1399 = vst.msk [vmem:[#allocation2 + $0x4b] sm:$0x1] %vm1198_vm10, %v5801_v25 }
 0x252   : > { %1407 = vst.msk [vmem:[#allocation2 + $0x4a] sm:$0x2] %vm1207_vm14, %v5695_v15 }
 0x253   : > { %1415 = vst.msk [vmem:[#allocation2 + $0x49] sm:$0x4] %vm1216_vm0, %v5677_v10 }
 0x254   : > { %1423 = vst.msk [vmem:[#allocation2 + $0x48] sm:$0x8] %vm1225_vm7, %v5392_v32  ;;  %v1721_v33 = vld [vmem:[#allocation2 + $0x18] sm:$0xff] }
 0x255   : > { %1556 = vst.msk [vmem:[#allocation2 + $0x72] sm:$0x8] %vm1225_vm7, %v5625_v4 }
 0x256   : > { %1046 = vst.msk [vmem:[#allocation2 + $0x10] sm:$0xff] %vm984_vm6, %v5813_v26  ;;  %v6075_v20 = vpop.permute.xlu0 %1133 }
 0x257   : > { %1405 = vst.msk [vmem:[#allocation2 + $0x7b] sm:$0x1] %vm1198_vm10, %v5813_v26  ;;  %v6025_v48 = vpop.permute.xlu1 %1103  ;;  %v6039_v50 = vpop.permute.xlu2 %1172 }
 0x258   : > { %1413 = vst.msk [vmem:[#allocation2 + $0x7a] sm:$0x2] %vm1207_vm14, %v5651_v7 }
 0x259   : > { %1477 = vst.msk [vmem:[#allocation2 + $0x7b] sm:$0x2] %vm1207_vm14, %v5813_v26 }
 0x25a   : > { %1485 = vst.msk [vmem:[#allocation2 + $0x7a] sm:$0x4] %vm1216_vm0, %v5651_v7 }
 0x25b   : > { %1421 = vst.msk [vmem:[#allocation2 + $0x79] sm:$0x4] %vm1216_vm0, %v5593_v1 }
 0x25c   : > { %1493 = vst.msk [vmem:[#allocation2 + $0x79] sm:$0x8] %vm1225_vm7, %v5593_v1 }
 0x25d   : > { %1429 = vst.msk [vmem:[#allocation2 + $0x78] sm:$0x8] %vm1225_vm7, %v5437_v47  ;;  %v1720_v27 = vld [vmem:[#allocation2 + $0x10] sm:$0xff] }
 0x25e   : > { %1081 = vst.msk [vmem:[#allocation2 + $0x20] sm:$0xff] %vm942_vm3, %v5831_v28  ;;  %v1735_v34 = vpack.c.bf16 %v1721_v33, %v1720_v27  ;;  %v1143_v63 = vpop.permute.xlu0 %1142  ;;  %v4093_v33 = vld [vmem:[#allocation9 + $0x30] sm:$0xff] }
 0x25f   : > { %1462 = vst.msk [vmem:[#allocation2 + $0x44] sm:$0x1] %vm1198_vm10, %v5831_v28  ;;  %v1168_v52 = vpop.permute.xlu1 %1167  ;;  %v6156_v56 = vpop.permute.xlu2 %1150 }
 0x260   : > { %1470 = vst.msk [vmem:[#allocation2 + $0x43] sm:$0x2] %vm1207_vm14, %v5621_v3  ;;  %1819 = vmatmul.bf16.gmra.mxu0 %v1735_v34 }
 0x261   : > { %1478 = vst.msk [vmem:[#allocation2 + $0x42] sm:$0x4] %vm1216_vm0, %v5661_v8 }
 0x262   : > { %1085 = vst.msk [vmem:[#allocation2 + $0x20] sm:$0xff] %vm948_vm13, %v5801_v25 }
 0x263   : > { %1486 = vst.msk [vmem:[#allocation2 + $0x41] sm:$0x8] %vm1225_vm7, %v5533_v54 }
 0x264   : > { %1400 = vst.msk [vmem:[#allocation2 + $0x53] sm:$0x1] %vm1198_vm10, %v5845_v36 }
 0x265   : > { %1111 = vst.msk [vmem:[#allocation2 + $0x28] sm:$0xff] %vm942_vm3, %v5849_v37 }
 0x266   : > { %1526 = vst.msk [vmem:[#allocation2 + $0x45] sm:$0x1] %vm1198_vm10, %v5849_v37 }
 0x267   : > { %1534 = vst.msk [vmem:[#allocation2 + $0x44] sm:$0x2] %vm1207_vm14, %v5831_v28 }
 0x268   : > { %1542 = vst.msk [vmem:[#allocation2 + $0x43] sm:$0x4] %vm1216_vm0, %v5621_v3 }
 0x269   : > { %1550 = vst.msk [vmem:[#allocation2 + $0x42] sm:$0x8] %vm1225_vm7, %v5661_v8 }
 0x26a   : > { %1115 = vst.msk [vmem:[#allocation2 + $0x28] sm:$0xff] %vm948_vm13, %v5861_v38 }
 0x26b   : > { %1463 = vst.msk [vmem:[#allocation2 + $0x4c] sm:$0x1] %vm1198_vm10, %v5861_v38 }
 0x26c   : > { %1471 = vst.msk [vmem:[#allocation2 + $0x4b] sm:$0x2] %vm1207_vm14, %v5801_v25 }
 0x26d   : > { %1479 = vst.msk [vmem:[#allocation2 + $0x4a] sm:$0x4] %vm1216_vm0, %v5695_v15 }
 0x26e   : > { %1119 = vst.msk [vmem:[#allocation2 + $0x28] sm:$0xff] %vm954_vm15, %v5845_v36 }
 0x26f   : > { %1487 = vst.msk [vmem:[#allocation2 + $0x49] sm:$0x8] %vm1225_vm7, %v5677_v10 }
 0x270   : > { %1274 = vst.msk [vmem:[#allocation2 + $0x61] sm:$0x1] %vm1198_vm10, %v5875_v35 }
 0x271   : > { %1282 = vst.msk [vmem:[#allocation2 + $0x60] sm:$0x2] %vm1207_vm14, %v5424_v41 }
 0x272   : > { %1290 = vst.msk [vmem:[#allocation2 + $0x5f] sm:$0x4] %vm1216_vm0, %v5689_v12 }
 0x273   : > { %1298 = vst.msk [vmem:[#allocation2 + $0x5e] sm:$0x8] %vm1225_vm7, %v5733_v18 }
 0x274   : > { %1089 = vst.msk [vmem:[#allocation2 + $0x20] sm:$0xff] %vm954_vm15, %v5885_v43 }
 0x275   : > { %1336 = vst.msk [vmem:[#allocation2 + $0x52] sm:$0x1] %vm1198_vm10, %v5885_v43 }
 0x276   : > { %1344 = vst.msk [vmem:[#allocation2 + $0x51] sm:$0x2] %vm1207_vm14, %v5647_v6 }
 0x277   : > { %1352 = vst.msk [vmem:[#allocation2 + $0x50] sm:$0x4] %vm1216_vm0, %v5339_v21 }
 0x278   : > { %1408 = vst.msk [vmem:[#allocation2 + $0x52] sm:$0x2] %vm1207_vm14, %v5885_v43 }
 0x279   : > { %1416 = vst.msk [vmem:[#allocation2 + $0x51] sm:$0x4] %vm1216_vm0, %v5647_v6 }
 0x27a   : > { %1424 = vst.msk [vmem:[#allocation2 + $0x50] sm:$0x8] %vm1225_vm7, %v5339_v21 }
 0x27b   : > { %1360 = vst.msk [vmem:[#allocation2 + $0x4f] sm:$0x8] %vm1225_vm7, %v5521_v51 }
 0x27c   : > { %1093 = vst.msk [vmem:[#allocation2 + $0x20] sm:$0xff] %vm960_vm1, %v5903_v39 }
 0x27d   : > { %1273 = vst.msk [vmem:[#allocation2 + $0x59] sm:$0x1] %vm1198_vm10, %v5903_v39 }
 0x27e   : > { %1281 = vst.msk [vmem:[#allocation2 + $0x58] sm:$0x2] %vm1207_vm14, %v5389_v31 }
 0x27f   : > { %1289 = vst.msk [vmem:[#allocation2 + $0x57] sm:$0x4] %vm1216_vm0, %v5711_v16 }
 0x280   : > { %1094 = vst.msk [vmem:[#allocation2 + $0x20] sm:$0xff] %vm966_vm2, %v5424_v41 }
 0x281   : > { %1297 = vst.msk [vmem:[#allocation2 + $0x56] sm:$0x8] %vm1225_vm7, %v5563_v60 }
 0x282   : > { %1214 = vst.msk [vmem:[#allocation2 + $0x6f] sm:$0x2] %vm1207_vm14, %v5917_v44 }
 0x283   : > { %1660 = vst.msk [vmem:[#allocation2 + $0x77] sm:$0x1] %vm1198_vm10, %v5917_v44 }
 0x284   : > { %1123 = vst.msk [vmem:[#allocation2 + $0x28] sm:$0xff] %vm960_vm1, %v5923_v46 }
 0x285   : > { %1127 = vst.msk [vmem:[#allocation2 + $0x28] sm:$0xff] %vm966_vm2, %v5875_v35 }
 0x286   : > { %1337 = vst.msk [vmem:[#allocation2 + $0x5a] sm:$0x1] %vm1198_vm10, %v5923_v46 }
 0x287   : > { %1345 = vst.msk [vmem:[#allocation2 + $0x59] sm:$0x2] %vm1207_vm14, %v5903_v39 }
 0x288   : > { %1353 = vst.msk [vmem:[#allocation2 + $0x58] sm:$0x4] %vm1216_vm0, %v5389_v31 }
 0x289   : > { %1128 = vst.msk [vmem:[#allocation2 + $0x28] sm:$0xff] %vm972_vm4, %v5384_v13 }
 0x28a   : > { %1361 = vst.msk [vmem:[#allocation2 + $0x57] sm:$0x8] %vm1225_vm7, %v5711_v16 }
 0x28b   : > { %1098 = vst.msk [vmem:[#allocation2 + $0x20] sm:$0xff] %vm972_vm4, %v5939_v45 }
 0x28c   : > { %1213 = vst.msk [vmem:[#allocation2 + $0x67] sm:$0x2] %vm1207_vm14, %v5939_v45 }
 0x28d   : > { %1222 = vst.msk [vmem:[#allocation2 + $0x66] sm:$0x4] %vm1216_vm0, %v5777_v23 }
 0x28e   : > { %1231 = vst.msk [vmem:[#allocation2 + $0x65] sm:$0x8] %vm1225_vm7, %v5761_v19 }
 0x28f   : > { %1659 = vst.msk [vmem:[#allocation2 + $0x6f] sm:$0x1] %vm1198_vm10, %v5939_v45 }
 0x290   : > { %1667 = vst.msk [vmem:[#allocation2 + $0x6e] sm:$0x2] %vm1207_vm14, %v5777_v23 }
 0x291   : > { %1675 = vst.msk [vmem:[#allocation2 + $0x6d] sm:$0x4] %vm1216_vm0, %v5761_v19 }
 0x292   : > { %1132 = vst.msk [vmem:[#allocation2 + $0x28] sm:$0xff] %vm978_vm5, %v5917_v44 }
 0x293   : > { %1683 = vst.msk [vmem:[#allocation2 + $0x6c] sm:$0x8] %vm1225_vm7, %v5569_v61 }
 0x294   : > { %1141 = vst.msk [vmem:[#allocation2 + $0x30] sm:$0xff] %vm942_vm3, %v5959_v29 }
 0x295   : > { %1590 = vst.msk [vmem:[#allocation2 + $0x46] sm:$0x1] %vm1198_vm10, %v5959_v29 }
 0x296   : > { %1598 = vst.msk [vmem:[#allocation2 + $0x45] sm:$0x2] %vm1207_vm14, %v5849_v37 }
 0x297   : > { %1606 = vst.msk [vmem:[#allocation2 + $0x44] sm:$0x4] %vm1216_vm0, %v5831_v28 }
 0x298   : > { %1614 = vst.msk [vmem:[#allocation2 + $0x43] sm:$0x8] %vm1225_vm7, %v5621_v3 }
 0x299   : > { %1102 = vst.msk [vmem:[#allocation2 + $0x20] sm:$0xff] %vm978_vm5, %v5971_v40  ;;  %v6690_v11 = vpop.f32.mrf.mxu0 }
 0x29a   : > { %1223 = vst.msk [vmem:[#allocation2 + $0x6e] sm:$0x4] %vm1216_vm0, %v5971_v40 }
 0x29b   : > { %1232 = vst.msk [vmem:[#allocation2 + $0x6d] sm:$0x8] %vm1225_vm7, %v5789_v24 }
 0x29c   : > { %1241 = vst.msk [vmem:[#allocation2 + $0x6c] sm:$0x10] %vm1234_vm8, %v5725_v17 }
 0x29d   : > { %1596 = vst.msk [vmem:[#allocation2 + $0x76] sm:$0x1] %vm1198_vm10, %v5971_v40 }
 0x29e   : > { %1604 = vst.msk [vmem:[#allocation2 + $0x75] sm:$0x2] %vm1207_vm14, %v5789_v24 }
 0x29f   : > { %1612 = vst.msk [vmem:[#allocation2 + $0x74] sm:$0x4] %vm1216_vm0, %v5725_v17 }
 0x2a0   : > { %1668 = vst.msk [vmem:[#allocation2 + $0x76] sm:$0x2] %vm1207_vm14, %v5971_v40 }
 0x2a1   : > { %1676 = vst.msk [vmem:[#allocation2 + $0x75] sm:$0x4] %vm1216_vm0, %v5789_v24 }
 0x2a2   : > { %1684 = vst.msk [vmem:[#allocation2 + $0x74] sm:$0x8] %vm1225_vm7, %v5725_v17 }
 0x2a3   : > { %1239 = vst.msk [vmem:[#allocation2 + $0x5c] sm:$0x10] %vm1234_vm8, %v5541_v55 }
 0x2a4   : > { %1240 = vst.msk [vmem:[#allocation2 + $0x64] sm:$0x10] %vm1234_vm8, %v5569_v61 }
 0x2a5   : > { %1305 = vst.msk [vmem:[#allocation2 + $0x55] sm:$0x10] %vm1234_vm8, %v5561_v59 }
 0x2a6   : > { %1306 = vst.msk [vmem:[#allocation2 + $0x5d] sm:$0x10] %vm1234_vm8, %v5599_v2 }
 0x2a7   : > { %1368 = vst.msk [vmem:[#allocation2 + $0x4e] sm:$0x10] %vm1234_vm8, %v5531_v53 }
 0x2a8   : > { %1369 = vst.msk [vmem:[#allocation2 + $0x56] sm:$0x10] %vm1234_vm8, %v5563_v60 }
 0x2a9   : > { %1431 = vst.msk [vmem:[#allocation2 + $0x47] sm:$0x10] %vm1234_vm8, %v5507_v49 }
 0x2aa   : > { %1432 = vst.msk [vmem:[#allocation2 + $0x4f] sm:$0x10] %vm1234_vm8, %v5521_v51 }
 0x2ab   : > { %1494 = vst.msk [vmem:[#allocation2 + $0x40] sm:$0x10] %vm1234_vm8, %v5349_v57 }
 0x2ac   : > { %1495 = vst.msk [vmem:[#allocation2 + $0x48] sm:$0x10] %vm1234_vm8, %v5392_v32 }
 0x2ad   : > { %1501 = vst.msk [vmem:[#allocation2 + $0x78] sm:$0x10] %vm1234_vm8, %v5437_v47 }
 0x2ae   : > { %1558 = vst.msk [vmem:[#allocation2 + $0x41] sm:$0x10] %vm1234_vm8, %v5533_v54 }
 0x2af   : > { %1620 = vst.msk [vmem:[#allocation2 + $0x73] sm:$0x8] %vm1225_vm7, %v5631_v5 }
 0x2b0   : > { %1622 = vst.msk [vmem:[#allocation2 + $0x42] sm:$0x10] %vm1234_vm8, %v5661_v8 }
 0x2b1   : > { %1691 = vst.msk [vmem:[#allocation2 + $0x6b] sm:$0x10] %vm1234_vm8, %v5589_v0 }
 0x2b2   : > { %1692 = vst.msk [vmem:[#allocation2 + $0x73] sm:$0x10] %vm1234_vm8, %v5631_v5 }
 0x2b3   : > { %1106 = vst.msk [vmem:[#allocation2 + $0x20] sm:$0xff] %vm984_vm6, %v6025_v48 }
 0x2b4   : > { %1533 = vst.msk [vmem:[#allocation2 + $0x7d] sm:$0x1] %vm1198_vm10, %v6025_v48 }
 0x2b5   : > { %1541 = vst.msk [vmem:[#allocation2 + $0x7c] sm:$0x2] %vm1207_vm14, %v5773_v22 }
 0x2b6   : > { %1549 = vst.msk [vmem:[#allocation2 + $0x7b] sm:$0x4] %vm1216_vm0, %v5813_v26 }
 0x2b7   : > { %1557 = vst.msk [vmem:[#allocation2 + $0x7a] sm:$0x8] %vm1225_vm7, %v5651_v7 }
 0x2b8   : > { %1628 = vst.msk [vmem:[#allocation2 + $0x72] sm:$0x10] %vm1234_vm8, %v5625_v4 }
 0x2b9   : > { %1218 = vst.msk [vmem:[#allocation2 + $0x46] sm:$0x4] %vm1216_vm0, %v6039_v50 }
 0x2ba   : > { %1295 = vst.msk [vmem:[#allocation2 + $0x46] sm:$0x8] %vm1225_vm7, %v6039_v50  ;;  %v1722_v58 = vld [vmem:[#allocation2 + $0x20] sm:$0xff] }
 0x2bb   : > { %1367 = vst.msk [vmem:[#allocation2 + $0x46] sm:$0x10] %vm1234_vm8, %v6039_v50 }
 0x2bc   : > { %1439 = vst.msk [vmem:[#allocation2 + $0x46] sm:$0x20] %vm1243_vm9, %v6039_v50 }
 0x2bd   : > { %1503 = vst.msk [vmem:[#allocation2 + $0x47] sm:$0x20] %vm1243_vm9, %v5507_v49 }
 0x2be   : > { %1511 = vst.msk [vmem:[#allocation2 + $0x46] sm:$0x40] %vm1252_vm11, %v6039_v50 }
 0x2bf   : > { %1591 = vst.msk [vmem:[#allocation2 + $0x4e] sm:$0x1] %vm1198_vm10, %v6039_v50 }
 0x2c0   : > { %1663 = vst.msk [vmem:[#allocation2 + $0x4e] sm:$0x2] %vm1207_vm14, %v6039_v50 }
 0x2c1   : > { %1249 = vst.msk [vmem:[#allocation2 + $0x63] sm:$0x20] %vm1243_vm9, %v5589_v0 }
 0x2c2   : > { %1250 = vst.msk [vmem:[#allocation2 + $0x6b] sm:$0x20] %vm1243_vm9, %v5631_v5 }
 0x2c3   : > { %1314 = vst.msk [vmem:[#allocation2 + $0x5c] sm:$0x20] %vm1243_vm9, %v5541_v55 }
 0x2c4   : > { %1377 = vst.msk [vmem:[#allocation2 + $0x55] sm:$0x20] %vm1243_vm9, %v5561_v59 }
 0x2c5   : > { %1440 = vst.msk [vmem:[#allocation2 + $0x4e] sm:$0x20] %vm1243_vm9, %v5531_v53 }
 0x2c6   : > { %1565 = vst.msk [vmem:[#allocation2 + $0x79] sm:$0x10] %vm1234_vm8, %v5593_v1 }
 0x2c7   : > { %1566 = vst.msk [vmem:[#allocation2 + $0x40] sm:$0x20] %vm1243_vm9, %v5349_v57 }
 0x2c8   : > { %1630 = vst.msk [vmem:[#allocation2 + $0x41] sm:$0x20] %vm1243_vm9, %v5533_v54 }
 0x2c9   : > { %1700 = vst.msk [vmem:[#allocation2 + $0x72] sm:$0x20] %vm1243_vm9, %v5625_v4 }
 0x2ca   : > { %1136 = vst.msk [vmem:[#allocation2 + $0x28] sm:$0xff] %vm984_vm6, %v6075_v20 }
 0x2cb   : > { %1597 = vst.msk [vmem:[#allocation2 + $0x7e] sm:$0x1] %vm1198_vm10, %v6075_v20 }
 0x2cc   : > { %1605 = vst.msk [vmem:[#allocation2 + $0x7d] sm:$0x2] %vm1207_vm14, %v6025_v48 }
 0x2cd   : > { %1613 = vst.msk [vmem:[#allocation2 + $0x7c] sm:$0x4] %vm1216_vm0, %v5773_v22 }
 0x2ce   : > { %1621 = vst.msk [vmem:[#allocation2 + $0x7b] sm:$0x8] %vm1225_vm7, %v5813_v26 }
 0x2cf   : > { %1259 = vst.msk [vmem:[#allocation2 + $0x6a] sm:$0x40] %vm1252_vm11, %v5625_v4 }
 0x2d0   : > { %1573 = vst.msk [vmem:[#allocation2 + $0x78] sm:$0x20] %vm1243_vm9, %v5437_v47 }
 0x2d1   : > { %1629 = vst.msk [vmem:[#allocation2 + $0x7a] sm:$0x10] %vm1234_vm8, %v5651_v7  ;;  %v1723_v62 = vld [vmem:[#allocation2 + $0x28] sm:$0xff] }
 0x2d2   : > { %1638 = vst.msk [vmem:[#allocation2 + $0x40] sm:$0x40] %vm1252_vm11, %v5349_v57 }
 0x2d3   : > { %1171 = vst.msk [vmem:[#allocation2 + $0x38] sm:$0xff] %vm942_vm3, %v1168_v52  ;;  %vm1261_vm3 = vcmask 1048455  }
 0x2d4   : > { %1208 = vst.msk [vmem:[#allocation2 + $0x3f] sm:$0x2] %vm1207_vm14, %v1168_v52 }
 0x2d5   : > { %1217 = vst.msk [vmem:[#allocation2 + $0x3e] sm:$0x4] %vm1216_vm0, %v5959_v29 }
 0x2d6   : > { %1226 = vst.msk [vmem:[#allocation2 + $0x3d] sm:$0x8] %vm1225_vm7, %v5849_v37 }
 0x2d7   : > { %1235 = vst.msk [vmem:[#allocation2 + $0x3c] sm:$0x10] %vm1234_vm8, %v5831_v28 }
 0x2d8   : > { %1244 = vst.msk [vmem:[#allocation2 + $0x3b] sm:$0x20] %vm1243_vm9, %v5621_v3 }
 0x2d9   : > { %1286 = vst.msk [vmem:[#allocation2 + $0x3f] sm:$0x4] %vm1216_vm0, %v1168_v52 }
 0x2da   : > { %1294 = vst.msk [vmem:[#allocation2 + $0x3e] sm:$0x8] %vm1225_vm7, %v5959_v29 }
 0x2db   : > { %1302 = vst.msk [vmem:[#allocation2 + $0x3d] sm:$0x10] %vm1234_vm8, %v5849_v37 }
 0x2dc   : > { %1310 = vst.msk [vmem:[#allocation2 + $0x3c] sm:$0x20] %vm1243_vm9, %v5831_v28 }
 0x2dd   : > { %1358 = vst.msk [vmem:[#allocation2 + $0x3f] sm:$0x8] %vm1225_vm7, %v1168_v52 }
 0x2de   : > { %1366 = vst.msk [vmem:[#allocation2 + $0x3e] sm:$0x10] %vm1234_vm8, %v5959_v29 }
 0x2df   : > { %1374 = vst.msk [vmem:[#allocation2 + $0x3d] sm:$0x20] %vm1243_vm9, %v5849_v37 }
 0x2e0   : > { %1382 = vst.msk [vmem:[#allocation2 + $0x3c] sm:$0x40] %vm1252_vm11, %v5831_v28 }
 0x2e1   : > { %1430 = vst.msk [vmem:[#allocation2 + $0x3f] sm:$0x10] %vm1234_vm8, %v1168_v52 }
 0x2e2   : > { %1438 = vst.msk [vmem:[#allocation2 + $0x3e] sm:$0x20] %vm1243_vm9, %v5959_v29 }
 0x2e3   : > { %1446 = vst.msk [vmem:[#allocation2 + $0x3d] sm:$0x40] %vm1252_vm11, %v5849_v37 }
 0x2e4   : > { %1502 = vst.msk [vmem:[#allocation2 + $0x3f] sm:$0x20] %vm1243_vm9, %v1168_v52 }
 0x2e5   : > { %1510 = vst.msk [vmem:[#allocation2 + $0x3e] sm:$0x40] %vm1252_vm11, %v5959_v29 }
 0x2e6   : > { %1518 = vst.msk [vmem:[#allocation2 + $0x3d] sm:$0x80] %vm1261_vm3, %v5849_v37 }
 0x2e7   : > { %1574 = vst.msk [vmem:[#allocation2 + $0x3f] sm:$0x40] %vm1252_vm11, %v1168_v52 }
 0x2e8   : > { %1582 = vst.msk [vmem:[#allocation2 + $0x3e] sm:$0x80] %vm1261_vm3, %v5959_v29 }
 0x2e9   : > { %1646 = vst.msk [vmem:[#allocation2 + $0x3f] sm:$0x80] %vm1261_vm3, %v1168_v52 }
 0x2ea   : > { %1654 = vst.msk [vmem:[#allocation2 + $0x47] sm:$0x1] %vm1198_vm10, %v1168_v52 }
 0x2eb   : > { %1662 = vst.msk [vmem:[#allocation2 + $0x46] sm:$0x2] %vm1207_vm14, %v5959_v29  ;;  %v4089_v29 = vld [vmem:[#allocation9 + $0x10] sm:$0xff] }
 0x2ec   : > { %1670 = vst.msk [vmem:[#allocation2 + $0x45] sm:$0x4] %vm1216_vm0, %v5849_v37  ;;  %v4092_v37 = vld [vmem:[#allocation9 + $0x28] sm:$0xff] }
 0x2ed   : > { %1678 = vst.msk [vmem:[#allocation2 + $0x44] sm:$0x8] %vm1225_vm7, %v5831_v28 }
 0x2ee   : > { %1686 = vst.msk [vmem:[#allocation2 + $0x43] sm:$0x10] %vm1234_vm8, %v5621_v3 }
 0x2ef   : > { %1175 = vst.msk [vmem:[#allocation2 + $0x38] sm:$0xff] %vm948_vm13, %v6039_v50 }
 0x2f0   : > { %1253 = vst.msk [vmem:[#allocation2 + $0x3a] sm:$0x40] %vm1252_vm11, %v5661_v8 }
 0x2f1   : > { %1318 = vst.msk [vmem:[#allocation2 + $0x3b] sm:$0x40] %vm1252_vm11, %v5621_v3 }
 0x2f2   : > { %1390 = vst.msk [vmem:[#allocation2 + $0x3b] sm:$0x80] %vm1261_vm3, %v5621_v3  ;;  %v1736_v3 = vpack.c.bf16 %v1723_v62, %v1722_v58  ;;  %v4935_v58 = vmov 64.0   ;;  %v3831_v62 = vld [vmem:[#allocation12 + $0xa8] sm:$0xf] }
 0x2f3   : > { %1454 = vst.msk [vmem:[#allocation2 + $0x3c] sm:$0x80] %vm1261_vm3, %v5831_v28  ;;  %v4094_v28 = vld [vmem:[#allocation9 + $0x38] sm:$0xff]  ;;  %4374 = vrcp.f32 %v4935_v58 }
 0x2f4   : > { %1637 = vst.msk [vmem:[#allocation2 + $0x79] sm:$0x20] %vm1243_vm9, %v5593_v1  ;;  %1824 = vmatmul.bf16.gmra.mxu0 %v1736_v3  ;;  %2055 = vmatpush.bf16.msra.mxu2 %v4094_v28  ;;  %v3819_v3 = vld [vmem:[#allocation12 + $0x90] sm:$0xf] }
 0x2f5   : > { %1694 = vst.msk [vmem:[#allocation2 + $0x42] sm:$0x20] %vm1243_vm9, %v5661_v8 }
 0x2f6   : > { %1401 = vst.msk [vmem:[#allocation2 + $0x5b] sm:$0x1] %vm1198_vm10, %v6156_v56 }
 0x2f7   : > { %1409 = vst.msk [vmem:[#allocation2 + $0x5a] sm:$0x2] %vm1207_vm14, %v5923_v46 }
 0x2f8   : > { %1417 = vst.msk [vmem:[#allocation2 + $0x59] sm:$0x4] %vm1216_vm0, %v5903_v39  ;;  %2056 = vmatpush.bf16.msra.mxu2 %v4093_v33  ;;  %v3795_v33 = vld [vmem:[#allocation12 + $0x60] sm:$0xf] }
 0x2f9   : > { %1425 = vst.msk [vmem:[#allocation2 + $0x58] sm:$0x8] %vm1225_vm7, %v5389_v31 }
 0x2fa   : > { %1262 = vst.msk [vmem:[#allocation2 + $0x39] sm:$0x80] %vm1261_vm3, %v5533_v54 }
 0x2fb   : > { %1326 = vst.msk [vmem:[#allocation2 + $0x3a] sm:$0x80] %vm1261_vm3, %v5661_v8 }
 0x2fc   : > { %1433 = vst.msk [vmem:[#allocation2 + $0x57] sm:$0x10] %vm1234_vm8, %v5711_v16  ;;  %2057 = vmatpush.bf16.msra.mxu2 %v4092_v37  ;;  %v4108_v37 = vld [vmem:[#allocation12 + $0x68] sm:$0xf0] }
 0x2fd   : > { %1645 = vst.msk [vmem:[#allocation2 + $0x78] sm:$0x40] %vm1252_vm11, %v5437_v47 }
 0x2fe   : > { %1702 = vst.msk [vmem:[#allocation2 + $0x41] sm:$0x40] %vm1252_vm11, %v5533_v54  ;;  %v1147_v54 = vpop.permute.xlu1 %1146 }
 0x2ff   : > { %1145 = vst.msk [vmem:[#allocation2 + $0x30] sm:$0xff] %vm948_vm13, %v1143_v63 }
 0x300   : > { %1227 = vst.msk [vmem:[#allocation2 + $0x45] sm:$0x8] %vm1225_vm7, %v1143_v63 }
 0x301   : > { %1236 = vst.msk [vmem:[#allocation2 + $0x44] sm:$0x10] %vm1234_vm8, %v5861_v38 }
 0x302   : > { %1245 = vst.msk [vmem:[#allocation2 + $0x43] sm:$0x20] %vm1243_vm9, %v5801_v25 }
 0x303   : > { %1254 = vst.msk [vmem:[#allocation2 + $0x42] sm:$0x40] %vm1252_vm11, %v5695_v15 }
 0x304   : > { %1303 = vst.msk [vmem:[#allocation2 + $0x45] sm:$0x10] %vm1234_vm8, %v1143_v63 }
 0x305   : > { %1311 = vst.msk [vmem:[#allocation2 + $0x44] sm:$0x20] %vm1243_vm9, %v5861_v38 }
 0x306   : > { %1319 = vst.msk [vmem:[#allocation2 + $0x43] sm:$0x40] %vm1252_vm11, %v5801_v25 }
 0x307   : > { %1375 = vst.msk [vmem:[#allocation2 + $0x45] sm:$0x20] %vm1243_vm9, %v1143_v63 }
 0x308   : > { %1383 = vst.msk [vmem:[#allocation2 + $0x44] sm:$0x40] %vm1252_vm11, %v5861_v38 }
 0x309   : > { %1391 = vst.msk [vmem:[#allocation2 + $0x43] sm:$0x80] %vm1261_vm3, %v5801_v25 }
 0x30a   : > { %1447 = vst.msk [vmem:[#allocation2 + $0x45] sm:$0x40] %vm1252_vm11, %v1143_v63 }
 0x30b   : > { %1455 = vst.msk [vmem:[#allocation2 + $0x44] sm:$0x80] %vm1261_vm3, %v5861_v38 }
 0x30c   : > { %1519 = vst.msk [vmem:[#allocation2 + $0x45] sm:$0x80] %vm1261_vm3, %v1143_v63 }
 0x30d   : > { %1527 = vst.msk [vmem:[#allocation2 + $0x4d] sm:$0x1] %vm1198_vm10, %v1143_v63 }
 0x30e   : > { %1535 = vst.msk [vmem:[#allocation2 + $0x4c] sm:$0x2] %vm1207_vm14, %v5861_v38 }
 0x30f   : > { %1543 = vst.msk [vmem:[#allocation2 + $0x4b] sm:$0x4] %vm1216_vm0, %v5801_v25 }
 0x310   : > { %1551 = vst.msk [vmem:[#allocation2 + $0x4a] sm:$0x8] %vm1225_vm7, %v5695_v15 }
 0x311   : > { %1559 = vst.msk [vmem:[#allocation2 + $0x49] sm:$0x10] %vm1234_vm8, %v5677_v10 }
 0x312   : > { %1599 = vst.msk [vmem:[#allocation2 + $0x4d] sm:$0x2] %vm1207_vm14, %v1143_v63 }
 0x313   : > { %1607 = vst.msk [vmem:[#allocation2 + $0x4c] sm:$0x4] %vm1216_vm0, %v5861_v38 }
 0x314   : > { %1615 = vst.msk [vmem:[#allocation2 + $0x4b] sm:$0x8] %vm1225_vm7, %v5801_v25 }
 0x315   : > { %1623 = vst.msk [vmem:[#allocation2 + $0x4a] sm:$0x10] %vm1234_vm8, %v5695_v15 }
 0x316   : > { %1631 = vst.msk [vmem:[#allocation2 + $0x49] sm:$0x20] %vm1243_vm9, %v5677_v10 }
 0x317   : > { %1671 = vst.msk [vmem:[#allocation2 + $0x4d] sm:$0x4] %vm1216_vm0, %v1143_v63  ;;  %v4117_v63 = vld [vmem:[#allocation12 + $0xb0] sm:$0xf0] }
 0x318   : > { %1679 = vst.msk [vmem:[#allocation2 + $0x4c] sm:$0x8] %vm1225_vm7, %v5861_v38  ;;  %v4091_v38 = vld [vmem:[#allocation9 + $0x20] sm:$0xff] }
 0x319   : > { %1687 = vst.msk [vmem:[#allocation2 + $0x4b] sm:$0x10] %vm1234_vm8, %v5801_v25  ;;  %2058 = vmatpush.bf16.msra.mxu2 %v4091_v38 }
 0x31a   : > { %1695 = vst.msk [vmem:[#allocation2 + $0x4a] sm:$0x20] %vm1243_vm9, %v5695_v15 }
 0x31b   : > { %1263 = vst.msk [vmem:[#allocation2 + $0x41] sm:$0x80] %vm1261_vm3, %v5677_v10 }
 0x31c   : > { %1327 = vst.msk [vmem:[#allocation2 + $0x42] sm:$0x80] %vm1261_vm3, %v5695_v15 }
 0x31d   : > { %1441 = vst.msk [vmem:[#allocation2 + $0x56] sm:$0x20] %vm1243_vm9, %v5563_v60 }
 0x31e   : > { %1567 = vst.msk [vmem:[#allocation2 + $0x48] sm:$0x20] %vm1243_vm9, %v5392_v32 }
 0x31f   : > { %1639 = vst.msk [vmem:[#allocation2 + $0x48] sm:$0x40] %vm1252_vm11, %v5392_v32 }
 0x320   : > { %1703 = vst.msk [vmem:[#allocation2 + $0x49] sm:$0x40] %vm1252_vm11, %v5677_v10 }
 0x321   : > { %1710 = vst.msk [vmem:[#allocation2 + $0x40] sm:$0x80] %vm1261_vm3, %v5349_v57  ;;  %v6259_v57 = vpop.permute.xlu2 %1184 }
 0x322   : > { %1449 = vst.msk [vmem:[#allocation2 + $0x55] sm:$0x40] %vm1252_vm11, %v5561_v59 }
 0x323   : > { %1575 = vst.msk [vmem:[#allocation2 + $0x47] sm:$0x40] %vm1252_vm11, %v5507_v49 }
 0x324   : > { %1647 = vst.msk [vmem:[#allocation2 + $0x47] sm:$0x80] %vm1261_vm3, %v5507_v49  ;;  %v1181_v49 = vpop.permute.xlu1 %1180 }
 0x325   : > { %1711 = vst.msk [vmem:[#allocation2 + $0x48] sm:$0x80] %vm1261_vm3, %v5392_v32  ;;  %v1177_v32 = vpop.permute.xlu0 %1176 }
 0x326   : > { %1149 = vst.msk [vmem:[#allocation2 + $0x30] sm:$0xff] %vm954_vm15, %v1147_v54 }
 0x327   : > { %1464 = vst.msk [vmem:[#allocation2 + $0x54] sm:$0x1] %vm1198_vm10, %v1147_v54 }
 0x328   : > { %1472 = vst.msk [vmem:[#allocation2 + $0x53] sm:$0x2] %vm1207_vm14, %v5845_v36 }
 0x329   : > { %1480 = vst.msk [vmem:[#allocation2 + $0x52] sm:$0x4] %vm1216_vm0, %v5885_v43 }
 0x32a   : > { %1488 = vst.msk [vmem:[#allocation2 + $0x51] sm:$0x8] %vm1225_vm7, %v5647_v6 }
 0x32b   : > { %1153 = vst.msk [vmem:[#allocation2 + $0x30] sm:$0xff] %vm960_vm1, %v6156_v56 }
 0x32c   : > { %1496 = vst.msk [vmem:[#allocation2 + $0x50] sm:$0x10] %vm1234_vm8, %v5339_v21 }
 0x32d   : > { %1583 = vst.msk [vmem:[#allocation2 + $0x46] sm:$0x80] %vm1261_vm3, %v6039_v50  ;;  %v4088_v50 = vld [vmem:[#allocation9 + $0x8] sm:$0xff] }
 0x32e   : > { %1248 = vst.msk [vmem:[#allocation2 + $0x5b] sm:$0x20] %vm1243_vm9, %v6259_v57 }
 0x32f   : > { %1322 = vst.msk [vmem:[#allocation2 + $0x5b] sm:$0x40] %vm1252_vm11, %v6259_v57 }
 0x330   : > { %1402 = vst.msk [vmem:[#allocation2 + $0x63] sm:$0x1] %vm1198_vm10, %v6259_v57 }
 0x331   : > { %1474 = vst.msk [vmem:[#allocation2 + $0x63] sm:$0x2] %vm1207_vm14, %v6259_v57 }
 0x332   : > { %1546 = vst.msk [vmem:[#allocation2 + $0x63] sm:$0x4] %vm1216_vm0, %v6259_v57 }
 0x333   : > { %1618 = vst.msk [vmem:[#allocation2 + $0x63] sm:$0x8] %vm1225_vm7, %v6259_v57 }
 0x334   : > { %1690 = vst.msk [vmem:[#allocation2 + $0x63] sm:$0x10] %vm1234_vm8, %v6259_v57 }
 0x335   : > { %1504 = vst.msk [vmem:[#allocation2 + $0x4f] sm:$0x20] %vm1243_vm9, %v5521_v51 }
 0x336   : > { %1512 = vst.msk [vmem:[#allocation2 + $0x4e] sm:$0x40] %vm1252_vm11, %v5531_v53 }
 0x337   : > { %1179 = vst.msk [vmem:[#allocation2 + $0x38] sm:$0xff] %vm954_vm15, %v1177_v32 }
 0x338   : > { %1228 = vst.msk [vmem:[#allocation2 + $0x4d] sm:$0x8] %vm1225_vm7, %v1177_v32 }
 0x339   : > { %1237 = vst.msk [vmem:[#allocation2 + $0x4c] sm:$0x10] %vm1234_vm8, %v1147_v54 }
 0x33a   : > { %1246 = vst.msk [vmem:[#allocation2 + $0x4b] sm:$0x20] %vm1243_vm9, %v5845_v36 }
 0x33b   : > { %1255 = vst.msk [vmem:[#allocation2 + $0x4a] sm:$0x40] %vm1252_vm11, %v5885_v43 }
 0x33c   : > { %1304 = vst.msk [vmem:[#allocation2 + $0x4d] sm:$0x10] %vm1234_vm8, %v1177_v32 }
 0x33d   : > { %1312 = vst.msk [vmem:[#allocation2 + $0x4c] sm:$0x20] %vm1243_vm9, %v1147_v54 }
 0x33e   : > { %1320 = vst.msk [vmem:[#allocation2 + $0x4b] sm:$0x40] %vm1252_vm11, %v5845_v36 }
 0x33f   : > { %1376 = vst.msk [vmem:[#allocation2 + $0x4d] sm:$0x20] %vm1243_vm9, %v1177_v32 }
 0x340   : > { %1384 = vst.msk [vmem:[#allocation2 + $0x4c] sm:$0x40] %vm1252_vm11, %v1147_v54 }
 0x341   : > { %1392 = vst.msk [vmem:[#allocation2 + $0x4b] sm:$0x80] %vm1261_vm3, %v5845_v36 }
 0x342   : > { %1448 = vst.msk [vmem:[#allocation2 + $0x4d] sm:$0x40] %vm1252_vm11, %v1177_v32 }
 0x343   : > { %1456 = vst.msk [vmem:[#allocation2 + $0x4c] sm:$0x80] %vm1261_vm3, %v1147_v54 }
 0x344   : > { %1520 = vst.msk [vmem:[#allocation2 + $0x4d] sm:$0x80] %vm1261_vm3, %v1177_v32 }
 0x345   : > { %1528 = vst.msk [vmem:[#allocation2 + $0x55] sm:$0x1] %vm1198_vm10, %v1177_v32 }
 0x346   : > { %1536 = vst.msk [vmem:[#allocation2 + $0x54] sm:$0x2] %vm1207_vm14, %v1147_v54 }
 0x347   : > { %1544 = vst.msk [vmem:[#allocation2 + $0x53] sm:$0x4] %vm1216_vm0, %v5845_v36 }
 0x348   : > { %1552 = vst.msk [vmem:[#allocation2 + $0x52] sm:$0x8] %vm1225_vm7, %v5885_v43 }
 0x349   : > { %1560 = vst.msk [vmem:[#allocation2 + $0x51] sm:$0x10] %vm1234_vm8, %v5647_v6 }
 0x34a   : > { %1600 = vst.msk [vmem:[#allocation2 + $0x55] sm:$0x2] %vm1207_vm14, %v1177_v32 }
 0x34b   : > { %1608 = vst.msk [vmem:[#allocation2 + $0x54] sm:$0x4] %vm1216_vm0, %v1147_v54 }
 0x34c   : > { %1616 = vst.msk [vmem:[#allocation2 + $0x53] sm:$0x8] %vm1225_vm7, %v5845_v36 }
 0x34d   : > { %1624 = vst.msk [vmem:[#allocation2 + $0x52] sm:$0x10] %vm1234_vm8, %v5885_v43 }
 0x34e   : > { %1632 = vst.msk [vmem:[#allocation2 + $0x51] sm:$0x20] %vm1243_vm9, %v5647_v6 }
 0x34f   : > { %1672 = vst.msk [vmem:[#allocation2 + $0x55] sm:$0x4] %vm1216_vm0, %v1177_v32  ;;  %v3832_v32 = vor.u32 %v4117_v63, %v3831_v62 }
 0x350   : > { %1680 = vst.msk [vmem:[#allocation2 + $0x54] sm:$0x8] %vm1225_vm7, %v1147_v54 }
 0x351   : > { %1688 = vst.msk [vmem:[#allocation2 + $0x53] sm:$0x10] %vm1234_vm8, %v5845_v36  ;;  %2246 = vmatpush.bf16.msra.mxu3 %v3832_v32 }
 0x352   : > { %1696 = vst.msk [vmem:[#allocation2 + $0x52] sm:$0x20] %vm1243_vm9, %v5885_v43 }
 0x353   : > { %1264 = vst.msk [vmem:[#allocation2 + $0x49] sm:$0x80] %vm1261_vm3, %v5647_v6 }
 0x354   : > { %1328 = vst.msk [vmem:[#allocation2 + $0x4a] sm:$0x80] %vm1261_vm3, %v5885_v43  ;;  %v4090_v43 = vld [vmem:[#allocation9 + $0x18] sm:$0xff] }
 0x355   : > { %1568 = vst.msk [vmem:[#allocation2 + $0x50] sm:$0x20] %vm1243_vm9, %v5339_v21  ;;  %2059 = vmatpush.bf16.msra.mxu2 %v4090_v43 }
 0x356   : > { %1640 = vst.msk [vmem:[#allocation2 + $0x50] sm:$0x40] %vm1252_vm11, %v5339_v21 }
 0x357   : > { %1704 = vst.msk [vmem:[#allocation2 + $0x51] sm:$0x40] %vm1252_vm11, %v5647_v6  ;;  %v6394_v6 = vpop.permute.xlu2 %1192 }
 0x358   : > { %1183 = vst.msk [vmem:[#allocation2 + $0x38] sm:$0xff] %vm960_vm1, %v1181_v49 }
 0x359   : > { %1238 = vst.msk [vmem:[#allocation2 + $0x54] sm:$0x10] %vm1234_vm8, %v1181_v49  ;;  %2060 = vmatpush.bf16.msra.mxu2 %v4089_v29 }
 0x35a   : > { %1247 = vst.msk [vmem:[#allocation2 + $0x53] sm:$0x20] %vm1243_vm9, %v6156_v56 }
 0x35b   : > { %1256 = vst.msk [vmem:[#allocation2 + $0x52] sm:$0x40] %vm1252_vm11, %v5923_v46 }
 0x35c   : > { %1313 = vst.msk [vmem:[#allocation2 + $0x54] sm:$0x20] %vm1243_vm9, %v1181_v49 }
 0x35d   : > { %1321 = vst.msk [vmem:[#allocation2 + $0x53] sm:$0x40] %vm1252_vm11, %v6156_v56  ;;  %2061 = vmatpush.bf16.msra.mxu2 %v4088_v50 }
 0x35e   : > { %1329 = vst.msk [vmem:[#allocation2 + $0x52] sm:$0x80] %vm1261_vm3, %v5923_v46 }
 0x35f   : > { %1385 = vst.msk [vmem:[#allocation2 + $0x54] sm:$0x40] %vm1252_vm11, %v1181_v49 }
 0x360   : > { %1393 = vst.msk [vmem:[#allocation2 + $0x53] sm:$0x80] %vm1261_vm3, %v6156_v56 }
 0x361   : > { %1457 = vst.msk [vmem:[#allocation2 + $0x54] sm:$0x80] %vm1261_vm3, %v1181_v49 }
 0x362   : > { %1465 = vst.msk [vmem:[#allocation2 + $0x5c] sm:$0x1] %vm1198_vm10, %v1181_v49 }
 0x363   : > { %1473 = vst.msk [vmem:[#allocation2 + $0x5b] sm:$0x2] %vm1207_vm14, %v6156_v56 }
 0x364   : > { %1481 = vst.msk [vmem:[#allocation2 + $0x5a] sm:$0x4] %vm1216_vm0, %v5923_v46 }
 0x365   : > { %1489 = vst.msk [vmem:[#allocation2 + $0x59] sm:$0x8] %vm1225_vm7, %v5903_v39 }
 0x366   : > { %1497 = vst.msk [vmem:[#allocation2 + $0x58] sm:$0x10] %vm1234_vm8, %v5389_v31 }
 0x367   : > { %1537 = vst.msk [vmem:[#allocation2 + $0x5c] sm:$0x2] %vm1207_vm14, %v1181_v49 }
 0x368   : > { %1545 = vst.msk [vmem:[#allocation2 + $0x5b] sm:$0x4] %vm1216_vm0, %v6156_v56 }
 0x369   : > { %1553 = vst.msk [vmem:[#allocation2 + $0x5a] sm:$0x8] %vm1225_vm7, %v5923_v46 }
 0x36a   : > { %1561 = vst.msk [vmem:[#allocation2 + $0x59] sm:$0x10] %vm1234_vm8, %v5903_v39 }
 0x36b   : > { %1569 = vst.msk [vmem:[#allocation2 + $0x58] sm:$0x20] %vm1243_vm9, %v5389_v31 }
 0x36c   : > { %1609 = vst.msk [vmem:[#allocation2 + $0x5c] sm:$0x4] %vm1216_vm0, %v1181_v49 }
 0x36d   : > { %1617 = vst.msk [vmem:[#allocation2 + $0x5b] sm:$0x8] %vm1225_vm7, %v6156_v56 }
 0x36e   : > { %1625 = vst.msk [vmem:[#allocation2 + $0x5a] sm:$0x10] %vm1234_vm8, %v5923_v46 }
 0x36f   : > { %1633 = vst.msk [vmem:[#allocation2 + $0x59] sm:$0x20] %vm1243_vm9, %v5903_v39 }
 0x370   : > { %1681 = vst.msk [vmem:[#allocation2 + $0x5c] sm:$0x8] %vm1225_vm7, %v1181_v49  ;;  %v4114_v49 = vld [vmem:[#allocation12 + $0x98] sm:$0xf0] }
 0x371   : > { %1689 = vst.msk [vmem:[#allocation2 + $0x5b] sm:$0x10] %vm1234_vm8, %v6156_v56 }
 0x372   : > { %1697 = vst.msk [vmem:[#allocation2 + $0x5a] sm:$0x20] %vm1243_vm9, %v5923_v46 }
 0x373   : > { %1705 = vst.msk [vmem:[#allocation2 + $0x59] sm:$0x40] %vm1252_vm11, %v5903_v39 }
 0x374   : > { %1187 = vst.msk [vmem:[#allocation2 + $0x38] sm:$0xff] %vm966_vm2, %v6259_v57 }
 0x375   : > { %1265 = vst.msk [vmem:[#allocation2 + $0x51] sm:$0x80] %vm1261_vm3, %v5903_v39 }
 0x376   : > { %1505 = vst.msk [vmem:[#allocation2 + $0x57] sm:$0x20] %vm1243_vm9, %v5711_v16 }
 0x377   : > { %1576 = vst.msk [vmem:[#allocation2 + $0x4f] sm:$0x40] %vm1252_vm11, %v5521_v51 }
 0x378   : > { %1577 = vst.msk [vmem:[#allocation2 + $0x57] sm:$0x40] %vm1252_vm11, %v5711_v16 }
 0x379   : > { %1641 = vst.msk [vmem:[#allocation2 + $0x58] sm:$0x40] %vm1252_vm11, %v5389_v31 }
 0x37a   : > { %1648 = vst.msk [vmem:[#allocation2 + $0x4f] sm:$0x80] %vm1261_vm3, %v5521_v51 }
 0x37b   : > { %1712 = vst.msk [vmem:[#allocation2 + $0x50] sm:$0x80] %vm1261_vm3, %v5339_v21  ;;  %v1155_v21 = vpop.permute.xlu0 %1154 }
 0x37c   : > { %1713 = vst.msk [vmem:[#allocation2 + $0x58] sm:$0x80] %vm1261_vm3, %v5389_v31  ;;  %v1159_v31 = vpop.permute.xlu1 %1158 }
 0x37d   : > { %1268 = vst.msk [vmem:[#allocation2 + $0x69] sm:$0x80] %vm1261_vm3, %v6394_v6 }
 0x37e   : > { %1276 = vst.msk [vmem:[#allocation2 + $0x71] sm:$0x1] %vm1198_vm10, %v6394_v6 }
 0x37f   : > { %1284 = vst.msk [vmem:[#allocation2 + $0x70] sm:$0x2] %vm1207_vm14, %v5418_v42 }
 0x380   : > { %1292 = vst.msk [vmem:[#allocation2 + $0x6f] sm:$0x4] %vm1216_vm0, %v5917_v44 }
 0x381   : > { %1300 = vst.msk [vmem:[#allocation2 + $0x6e] sm:$0x8] %vm1225_vm7, %v5971_v40 }
 0x382   : > { %1308 = vst.msk [vmem:[#allocation2 + $0x6d] sm:$0x10] %vm1234_vm8, %v5789_v24 }
 0x383   : > { %1348 = vst.msk [vmem:[#allocation2 + $0x71] sm:$0x2] %vm1207_vm14, %v6394_v6 }
 0x384   : > { %1356 = vst.msk [vmem:[#allocation2 + $0x70] sm:$0x4] %vm1216_vm0, %v5418_v42 }
 0x385   : > { %1364 = vst.msk [vmem:[#allocation2 + $0x6f] sm:$0x8] %vm1225_vm7, %v5917_v44 }
 0x386   : > { %1372 = vst.msk [vmem:[#allocation2 + $0x6e] sm:$0x10] %vm1234_vm8, %v5971_v40 }
 0x387   : > { %1380 = vst.msk [vmem:[#allocation2 + $0x6d] sm:$0x20] %vm1243_vm9, %v5789_v24 }
 0x388   : > { %1420 = vst.msk [vmem:[#allocation2 + $0x71] sm:$0x4] %vm1216_vm0, %v6394_v6 }
 0x389   : > { %1428 = vst.msk [vmem:[#allocation2 + $0x70] sm:$0x8] %vm1225_vm7, %v5418_v42 }
 0x38a   : > { %1436 = vst.msk [vmem:[#allocation2 + $0x6f] sm:$0x10] %vm1234_vm8, %v5917_v44 }
 0x38b   : > { %1444 = vst.msk [vmem:[#allocation2 + $0x6e] sm:$0x20] %vm1243_vm9, %v5971_v40 }
 0x38c   : > { %1492 = vst.msk [vmem:[#allocation2 + $0x71] sm:$0x8] %vm1225_vm7, %v6394_v6 }
 0x38d   : > { %1500 = vst.msk [vmem:[#allocation2 + $0x70] sm:$0x10] %vm1234_vm8, %v5418_v42 }
 0x38e   : > { %1508 = vst.msk [vmem:[#allocation2 + $0x6f] sm:$0x20] %vm1243_vm9, %v5917_v44 }
 0x38f   : > { %1516 = vst.msk [vmem:[#allocation2 + $0x6e] sm:$0x40] %vm1252_vm11, %v5971_v40 }
 0x390   : > { %1564 = vst.msk [vmem:[#allocation2 + $0x71] sm:$0x10] %vm1234_vm8, %v6394_v6 }
 0x391   : > { %1572 = vst.msk [vmem:[#allocation2 + $0x70] sm:$0x20] %vm1243_vm9, %v5418_v42 }
 0x392   : > { %1580 = vst.msk [vmem:[#allocation2 + $0x6f] sm:$0x40] %vm1252_vm11, %v5917_v44 }
 0x393   : > { %1636 = vst.msk [vmem:[#allocation2 + $0x71] sm:$0x20] %vm1243_vm9, %v6394_v6 }
 0x394   : > { %1644 = vst.msk [vmem:[#allocation2 + $0x70] sm:$0x40] %vm1252_vm11, %v5418_v42 }
 0x395   : > { %1652 = vst.msk [vmem:[#allocation2 + $0x6f] sm:$0x80] %vm1261_vm3, %v5917_v44 }
 0x396   : > { %1708 = vst.msk [vmem:[#allocation2 + $0x71] sm:$0x40] %vm1252_vm11, %v6394_v6 }
 0x397   : > { %1716 = vst.msk [vmem:[#allocation2 + $0x70] sm:$0x80] %vm1261_vm3, %v5418_v42 }
 0x398   : > { %1316 = vst.msk [vmem:[#allocation2 + $0x6c] sm:$0x20] %vm1243_vm9, %v5725_v17 }
 0x399   : > { %1388 = vst.msk [vmem:[#allocation2 + $0x6c] sm:$0x40] %vm1252_vm11, %v5725_v17 }
 0x39a   : > { %1452 = vst.msk [vmem:[#allocation2 + $0x6d] sm:$0x40] %vm1252_vm11, %v5789_v24 }
 0x39b   : > { %1513 = vst.msk [vmem:[#allocation2 + $0x56] sm:$0x40] %vm1252_vm11, %v5563_v60 }
 0x39c   : > { %1524 = vst.msk [vmem:[#allocation2 + $0x6d] sm:$0x80] %vm1261_vm3, %v5789_v24 }
 0x39d   : > { %1584 = vst.msk [vmem:[#allocation2 + $0x4e] sm:$0x80] %vm1261_vm3, %v5531_v53 }
 0x39e   : > { %1585 = vst.msk [vmem:[#allocation2 + $0x56] sm:$0x80] %vm1261_vm3, %v5563_v60 }
 0x39f   : > { %1588 = vst.msk [vmem:[#allocation2 + $0x6e] sm:$0x80] %vm1261_vm3, %v5971_v40 }
 0x3a0   : > { %1649 = vst.msk [vmem:[#allocation2 + $0x57] sm:$0x80] %vm1261_vm3, %v5711_v16 }
 0x3a1   : > { %1157 = vst.msk [vmem:[#allocation2 + $0x30] sm:$0xff] %vm966_vm2, %v1155_v21 }
 0x3a2   : > { %1257 = vst.msk [vmem:[#allocation2 + $0x5a] sm:$0x40] %vm1252_vm11, %v1155_v21 }
 0x3a3   : > { %1266 = vst.msk [vmem:[#allocation2 + $0x59] sm:$0x80] %vm1261_vm3, %v5875_v35 }
 0x3a4   : > { %1330 = vst.msk [vmem:[#allocation2 + $0x5a] sm:$0x80] %vm1261_vm3, %v1155_v21 }
 0x3a5   : > { %1338 = vst.msk [vmem:[#allocation2 + $0x62] sm:$0x1] %vm1198_vm10, %v1155_v21 }
 0x3a6   : > { %1346 = vst.msk [vmem:[#allocation2 + $0x61] sm:$0x2] %vm1207_vm14, %v5875_v35 }
 0x3a7   : > { %1354 = vst.msk [vmem:[#allocation2 + $0x60] sm:$0x4] %vm1216_vm0, %v5424_v41 }
 0x3a8   : > { %1362 = vst.msk [vmem:[#allocation2 + $0x5f] sm:$0x8] %vm1225_vm7, %v5689_v12 }
 0x3a9   : > { %1370 = vst.msk [vmem:[#allocation2 + $0x5e] sm:$0x10] %vm1234_vm8, %v5733_v18 }
 0x3aa   : > { %1410 = vst.msk [vmem:[#allocation2 + $0x62] sm:$0x2] %vm1207_vm14, %v1155_v21 }
 0x3ab   : > { %1418 = vst.msk [vmem:[#allocation2 + $0x61] sm:$0x4] %vm1216_vm0, %v5875_v35 }
 0x3ac   : > { %1426 = vst.msk [vmem:[#allocation2 + $0x60] sm:$0x8] %vm1225_vm7, %v5424_v41 }
 0x3ad   : > { %1434 = vst.msk [vmem:[#allocation2 + $0x5f] sm:$0x10] %vm1234_vm8, %v5689_v12 }
 0x3ae   : > { %1442 = vst.msk [vmem:[#allocation2 + $0x5e] sm:$0x20] %vm1243_vm9, %v5733_v18 }
 0x3af   : > { %1482 = vst.msk [vmem:[#allocation2 + $0x62] sm:$0x4] %vm1216_vm0, %v1155_v21 }
 0x3b0   : > { %1490 = vst.msk [vmem:[#allocation2 + $0x61] sm:$0x8] %vm1225_vm7, %v5875_v35 }
 0x3b1   : > { %1498 = vst.msk [vmem:[#allocation2 + $0x60] sm:$0x10] %vm1234_vm8, %v5424_v41 }
 0x3b2   : > { %1506 = vst.msk [vmem:[#allocation2 + $0x5f] sm:$0x20] %vm1243_vm9, %v5689_v12 }
 0x3b3   : > { %1554 = vst.msk [vmem:[#allocation2 + $0x62] sm:$0x8] %vm1225_vm7, %v1155_v21 }
 0x3b4   : > { %1562 = vst.msk [vmem:[#allocation2 + $0x61] sm:$0x10] %vm1234_vm8, %v5875_v35 }
 0x3b5   : > { %1570 = vst.msk [vmem:[#allocation2 + $0x60] sm:$0x20] %vm1243_vm9, %v5424_v41 }
 0x3b6   : > { %1578 = vst.msk [vmem:[#allocation2 + $0x5f] sm:$0x40] %vm1252_vm11, %v5689_v12 }
 0x3b7   : > { %1626 = vst.msk [vmem:[#allocation2 + $0x62] sm:$0x10] %vm1234_vm8, %v1155_v21 }
 0x3b8   : > { %1634 = vst.msk [vmem:[#allocation2 + $0x61] sm:$0x20] %vm1243_vm9, %v5875_v35 }
 0x3b9   : > { %1642 = vst.msk [vmem:[#allocation2 + $0x60] sm:$0x40] %vm1252_vm11, %v5424_v41 }
 0x3ba   : > { %1698 = vst.msk [vmem:[#allocation2 + $0x62] sm:$0x20] %vm1243_vm9, %v1155_v21 }
 0x3bb   : > { %1706 = vst.msk [vmem:[#allocation2 + $0x61] sm:$0x40] %vm1252_vm11, %v5875_v35 }
 0x3bc   : > { %1714 = vst.msk [vmem:[#allocation2 + $0x60] sm:$0x80] %vm1261_vm3, %v5424_v41  ;;  %v1189_v41 = vpop.permute.xlu0 %1188 }
 0x3bd   : > { %1324 = vst.msk [vmem:[#allocation2 + $0x6b] sm:$0x40] %vm1252_vm11, %v5631_v5 }
 0x3be   : > { %1378 = vst.msk [vmem:[#allocation2 + $0x5d] sm:$0x20] %vm1243_vm9, %v5599_v2 }
 0x3bf   : > { %1396 = vst.msk [vmem:[#allocation2 + $0x6b] sm:$0x80] %vm1261_vm3, %v5631_v5 }
 0x3c0   : > { %1450 = vst.msk [vmem:[#allocation2 + $0x5d] sm:$0x40] %vm1252_vm11, %v5599_v2 }
 0x3c1   : > { %1460 = vst.msk [vmem:[#allocation2 + $0x6c] sm:$0x80] %vm1261_vm3, %v5725_v17  ;;  %v6704_v17 = vpop.f32.mrf.mxu1 }
 0x3c2   : > { %1514 = vst.msk [vmem:[#allocation2 + $0x5e] sm:$0x40] %vm1252_vm11, %v5733_v18 }
 0x3c3   : > { %1521 = vst.msk [vmem:[#allocation2 + $0x55] sm:$0x80] %vm1261_vm3, %v5561_v59  ;;  %v1727_v59 = vld [vmem:[#allocation2 + $0x48] sm:$0xff] }
 0x3c4   : > { %1586 = vst.msk [vmem:[#allocation2 + $0x5e] sm:$0x80] %vm1261_vm3, %v5733_v18 }
 0x3c5   : > { %1650 = vst.msk [vmem:[#allocation2 + $0x5f] sm:$0x80] %vm1261_vm3, %v5689_v12 }
 0x3c6   : > { %1161 = vst.msk [vmem:[#allocation2 + $0x30] sm:$0xff] %vm972_vm4, %v1159_v31 }
 0x3c7   : > { %1275 = vst.msk [vmem:[#allocation2 + $0x69] sm:$0x1] %vm1198_vm10, %v1159_v31 }
 0x3c8   : > { %1283 = vst.msk [vmem:[#allocation2 + $0x68] sm:$0x2] %vm1207_vm14, %v5384_v13 }
 0x3c9   : > { %1291 = vst.msk [vmem:[#allocation2 + $0x67] sm:$0x4] %vm1216_vm0, %v5939_v45 }
 0x3ca   : > { %1299 = vst.msk [vmem:[#allocation2 + $0x66] sm:$0x8] %vm1225_vm7, %v5777_v23 }
 0x3cb   : > { %1162 = vst.msk [vmem:[#allocation2 + $0x30] sm:$0xff] %vm978_vm5, %v5418_v42  ;;  %v1164_v42 = vpop.permute.xlu1 %1163 }
 0x3cc   : > { %1307 = vst.msk [vmem:[#allocation2 + $0x65] sm:$0x10] %vm1234_vm8, %v5761_v19 }
 0x3cd   : > { %1332 = vst.msk [vmem:[#allocation2 + $0x6a] sm:$0x80] %vm1261_vm3, %v5625_v4 }
 0x3ce   : > { %1386 = vst.msk [vmem:[#allocation2 + $0x5c] sm:$0x40] %vm1252_vm11, %v5541_v55 }
 0x3cf   : > { %1458 = vst.msk [vmem:[#allocation2 + $0x5c] sm:$0x80] %vm1261_vm3, %v5541_v55  ;;  %v1726_v55 = vld [vmem:[#allocation2 + $0x40] sm:$0xff] }
 0x3d0   : > { %1522 = vst.msk [vmem:[#allocation2 + $0x5d] sm:$0x80] %vm1261_vm3, %v5599_v2  ;;  %v1738_v60 = vpack.c.bf16 %v1727_v59, %v1726_v55  ;;  %v1729_v2 = vld [vmem:[#allocation2 + $0x58] sm:$0xff]  ;;  %v4087_v59 = vld [vmem:[#allocation9] sm:$0xff] }
 0x3d1   : > { %1315 = vst.msk [vmem:[#allocation2 + $0x64] sm:$0x20] %vm1243_vm9, %v5569_v61  ;;  %2062 = vmatpush.bf16.msra.mxu2 %v4087_v59  ;;  %v4110_v59 = vld [vmem:[#allocation12 + $0x7c] sm:$0xf] }
 0x3d2   : > { %1323 = vst.msk [vmem:[#allocation2 + $0x63] sm:$0x40] %vm1252_vm11, %v5589_v0 }
 0x3d3   : > { %1191 = vst.msk [vmem:[#allocation2 + $0x38] sm:$0xff] %vm972_vm4, %v1189_v41 }
 0x3d4   : > { %1195 = vst.msk [vmem:[#allocation2 + $0x38] sm:$0xff] %vm978_vm5, %v6394_v6  ;;  %v1732_v10 = vld [vmem:[#allocation2 + $0x70] sm:$0xff] }
 0x3d5   : > { %1196 = vst.msk [vmem:[#allocation2 + $0x38] sm:$0xff] %vm984_vm6, %v5437_v47 }
 0x3d6   : > { %1258 = vst.msk [vmem:[#allocation2 + $0x62] sm:$0x40] %vm1252_vm11, %v1189_v41 }
 0x3d7   : > { %1267 = vst.msk [vmem:[#allocation2 + $0x61] sm:$0x80] %vm1261_vm3, %v1159_v31 }
 0x3d8   : > { %1331 = vst.msk [vmem:[#allocation2 + $0x62] sm:$0x80] %vm1261_vm3, %v1189_v41 }
 0x3d9   : > { %1339 = vst.msk [vmem:[#allocation2 + $0x6a] sm:$0x1] %vm1198_vm10, %v1189_v41 }
 0x3da   : > { %1347 = vst.msk [vmem:[#allocation2 + $0x69] sm:$0x2] %vm1207_vm14, %v1159_v31 }
 0x3db   : > { %1355 = vst.msk [vmem:[#allocation2 + $0x68] sm:$0x4] %vm1216_vm0, %v5384_v13 }
 0x3dc   : > { %1363 = vst.msk [vmem:[#allocation2 + $0x67] sm:$0x8] %vm1225_vm7, %v5939_v45  ;;  %v1725_v51 = vld [vmem:[#allocation2 + $0x38] sm:$0xff] }
 0x3dd   : > { %1371 = vst.msk [vmem:[#allocation2 + $0x66] sm:$0x10] %vm1234_vm8, %v5777_v23 }
 0x3de   : > { %1411 = vst.msk [vmem:[#allocation2 + $0x6a] sm:$0x2] %vm1207_vm14, %v1189_v41 }
 0x3df   : > { %1419 = vst.msk [vmem:[#allocation2 + $0x69] sm:$0x4] %vm1216_vm0, %v1159_v31 }
 0x3e0   : > { %1427 = vst.msk [vmem:[#allocation2 + $0x68] sm:$0x8] %vm1225_vm7, %v5384_v13 }
 0x3e1   : > { %1435 = vst.msk [vmem:[#allocation2 + $0x67] sm:$0x10] %vm1234_vm8, %v5939_v45 }
 0x3e2   : > { %1443 = vst.msk [vmem:[#allocation2 + $0x66] sm:$0x20] %vm1243_vm9, %v5777_v23 }
 0x3e3   : > { %1483 = vst.msk [vmem:[#allocation2 + $0x6a] sm:$0x4] %vm1216_vm0, %v1189_v41 }
 0x3e4   : > { %1491 = vst.msk [vmem:[#allocation2 + $0x69] sm:$0x8] %vm1225_vm7, %v1159_v31 }
 0x3e5   : > { %1499 = vst.msk [vmem:[#allocation2 + $0x68] sm:$0x10] %vm1234_vm8, %v5384_v13 }
 0x3e6   : > { %1507 = vst.msk [vmem:[#allocation2 + $0x67] sm:$0x20] %vm1243_vm9, %v5939_v45 }
 0x3e7   : > { %1555 = vst.msk [vmem:[#allocation2 + $0x6a] sm:$0x8] %vm1225_vm7, %v1189_v41 }
 0x3e8   : > { %1563 = vst.msk [vmem:[#allocation2 + $0x69] sm:$0x10] %vm1234_vm8, %v1159_v31 }
 0x3e9   : > { %1571 = vst.msk [vmem:[#allocation2 + $0x68] sm:$0x20] %vm1243_vm9, %v5384_v13 }
 0x3ea   : > { %1579 = vst.msk [vmem:[#allocation2 + $0x67] sm:$0x40] %vm1252_vm11, %v5939_v45 }
 0x3eb   : > { %1627 = vst.msk [vmem:[#allocation2 + $0x6a] sm:$0x10] %vm1234_vm8, %v1189_v41 }
 0x3ec   : > { %1635 = vst.msk [vmem:[#allocation2 + $0x69] sm:$0x20] %vm1243_vm9, %v1159_v31 }
 0x3ed   : > { %1643 = vst.msk [vmem:[#allocation2 + $0x68] sm:$0x40] %vm1252_vm11, %v5384_v13 }
 0x3ee   : > { %1699 = vst.msk [vmem:[#allocation2 + $0x6a] sm:$0x20] %vm1243_vm9, %v1189_v41  ;;  %v3820_v41 = vor.u32 %v4114_v49, %v3819_v3 }
 0x3ef   : > { %1707 = vst.msk [vmem:[#allocation2 + $0x69] sm:$0x40] %vm1252_vm11, %v1159_v31 }
 0x3f0   : > { %1715 = vst.msk [vmem:[#allocation2 + $0x68] sm:$0x80] %vm1261_vm3, %v5384_v13  ;;  %2247 = vmatpush.bf16.msra.mxu3 %v3820_v41 }
 0x3f1   : > { %1379 = vst.msk [vmem:[#allocation2 + $0x65] sm:$0x20] %vm1243_vm9, %v5761_v19 }
 0x3f2   : > { %1394 = vst.msk [vmem:[#allocation2 + $0x5b] sm:$0x80] %vm1261_vm3, %v6259_v57 }
 0x3f3   : > { %1451 = vst.msk [vmem:[#allocation2 + $0x65] sm:$0x40] %vm1252_vm11, %v5761_v19 }
 0x3f4   : > { %1515 = vst.msk [vmem:[#allocation2 + $0x66] sm:$0x40] %vm1252_vm11, %v5777_v23 }
 0x3f5   : > { %1587 = vst.msk [vmem:[#allocation2 + $0x66] sm:$0x80] %vm1261_vm3, %v5777_v23 }
 0x3f6   : > { %1651 = vst.msk [vmem:[#allocation2 + $0x67] sm:$0x80] %vm1261_vm3, %v5939_v45 }
 0x3f7   : > { %1166 = vst.msk [vmem:[#allocation2 + $0x30] sm:$0xff] %vm984_vm6, %v1164_v42 }
 0x3f8   : > { %1215 = vst.msk [vmem:[#allocation2 + $0x77] sm:$0x2] %vm1207_vm14, %v1164_v42 }
 0x3f9   : > { %1224 = vst.msk [vmem:[#allocation2 + $0x76] sm:$0x4] %vm1216_vm0, %v6075_v20  ;;  %v1730_v8 = vld [vmem:[#allocation2 + $0x60] sm:$0xff] }
 0x3fa   : > { %1233 = vst.msk [vmem:[#allocation2 + $0x75] sm:$0x8] %vm1225_vm7, %v6025_v48 }
 0x3fb   : > { %1242 = vst.msk [vmem:[#allocation2 + $0x74] sm:$0x10] %vm1234_vm8, %v5773_v22 }
 0x3fc   : > { %1251 = vst.msk [vmem:[#allocation2 + $0x73] sm:$0x20] %vm1243_vm9, %v5813_v26 }
 0x3fd   : > { %1293 = vst.msk [vmem:[#allocation2 + $0x77] sm:$0x4] %vm1216_vm0, %v1164_v42 }
 0x3fe   : > { %1301 = vst.msk [vmem:[#allocation2 + $0x76] sm:$0x8] %vm1225_vm7, %v6075_v20  ;;  %v1724_v13 = vld [vmem:[#allocation2 + $0x30] sm:$0xff] }
 0x3ff   : > { %1309 = vst.msk [vmem:[#allocation2 + $0x75] sm:$0x10] %vm1234_vm8, %v6025_v48  ;;  %v1737_v53 = vpack.c.bf16 %v1725_v51, %v1724_v13  ;;  %v3833_v13 = vld [vmem:[#allocation12 + $0xb4] sm:$0xf0] }
 0x400   : > { %1317 = vst.msk [vmem:[#allocation2 + $0x74] sm:$0x20] %vm1243_vm9, %v5773_v22 }
 0x401   : > { %1365 = vst.msk [vmem:[#allocation2 + $0x77] sm:$0x8] %vm1225_vm7, %v1164_v42  ;;  %1829 = vmatmul.bf16.gmra.mxu0 %v1737_v53 }
 0x402   : > { %1373 = vst.msk [vmem:[#allocation2 + $0x76] sm:$0x10] %vm1234_vm8, %v6075_v20 }
 0x403   : > { %1381 = vst.msk [vmem:[#allocation2 + $0x75] sm:$0x20] %vm1243_vm9, %v6025_v48 }
 0x404   : > { %1389 = vst.msk [vmem:[#allocation2 + $0x74] sm:$0x40] %vm1252_vm11, %v5773_v22 }
 0x405   : > { %1437 = vst.msk [vmem:[#allocation2 + $0x77] sm:$0x10] %vm1234_vm8, %v1164_v42 }
 0x406   : > { %1445 = vst.msk [vmem:[#allocation2 + $0x76] sm:$0x20] %vm1243_vm9, %v6075_v20 }
 0x407   : > { %1453 = vst.msk [vmem:[#allocation2 + $0x75] sm:$0x40] %vm1252_vm11, %v6025_v48 }
 0x408   : > { %1509 = vst.msk [vmem:[#allocation2 + $0x77] sm:$0x20] %vm1243_vm9, %v1164_v42 }
 0x409   : > { %1517 = vst.msk [vmem:[#allocation2 + $0x76] sm:$0x40] %vm1252_vm11, %v6075_v20 }
 0x40a   : > { %1525 = vst.msk [vmem:[#allocation2 + $0x75] sm:$0x80] %vm1261_vm3, %v6025_v48 }
 0x40b   : > { %1581 = vst.msk [vmem:[#allocation2 + $0x77] sm:$0x40] %vm1252_vm11, %v1164_v42 }
 0x40c   : > { %1589 = vst.msk [vmem:[#allocation2 + $0x76] sm:$0x80] %vm1261_vm3, %v6075_v20 }
 0x40d   : > { %1653 = vst.msk [vmem:[#allocation2 + $0x77] sm:$0x80] %vm1261_vm3, %v1164_v42 }
 0x40e   : > { %1661 = vst.msk [vmem:[#allocation2 + $0x7f] sm:$0x1] %vm1198_vm10, %v1164_v42  ;;  %v4116_v42 = vld [vmem:[#allocation12 + $0xac] sm:$0xf] }
 0x40f   : > { %1669 = vst.msk [vmem:[#allocation2 + $0x7e] sm:$0x2] %vm1207_vm14, %v6075_v20 }
 0x410   : > { %1677 = vst.msk [vmem:[#allocation2 + $0x7d] sm:$0x4] %vm1216_vm0, %v6025_v48 }
 0x411   : > { %1685 = vst.msk [vmem:[#allocation2 + $0x7c] sm:$0x8] %vm1225_vm7, %v5773_v22  ;;  %1834 = vmatmul.bf16.gmra.mxu0 %v1738_v60  ;;  %v3807_v60 = vld [vmem:[#allocation12 + $0x78] sm:$0xf] }
 0x412   : > { %1693 = vst.msk [vmem:[#allocation2 + $0x7b] sm:$0x10] %vm1234_vm8, %v5813_v26 }
 0x413   : > { %1260 = vst.msk [vmem:[#allocation2 + $0x72] sm:$0x40] %vm1252_vm11, %v5651_v7 }
 0x414   : > { %1325 = vst.msk [vmem:[#allocation2 + $0x73] sm:$0x40] %vm1252_vm11, %v5813_v26 }
 0x415   : > { %1387 = vst.msk [vmem:[#allocation2 + $0x64] sm:$0x40] %vm1252_vm11, %v5569_v61 }
 0x416   : > { %1397 = vst.msk [vmem:[#allocation2 + $0x73] sm:$0x80] %vm1261_vm3, %v5813_v26 }
 0x417   : > { %1459 = vst.msk [vmem:[#allocation2 + $0x64] sm:$0x80] %vm1261_vm3, %v5569_v61  ;;  %v1728_v61 = vld [vmem:[#allocation2 + $0x50] sm:$0xff] }
 0x418   : > { %1461 = vst.msk [vmem:[#allocation2 + $0x74] sm:$0x80] %vm1261_vm3, %v5773_v22  ;;  %v1739_v4 = vpack.c.bf16 %v1729_v2, %v1728_v61  ;;  %v4111_v2 = vld [vmem:[#allocation12 + $0x80] sm:$0xf0]  ;;  %v3836_v61 = vor.u32 %v4116_v42, %v3833_v13 }
 0x419   : > { %1523 = vst.msk [vmem:[#allocation2 + $0x65] sm:$0x80] %vm1261_vm3, %v5761_v19  ;;  %v6708_v19 = vpop.f32.mrf.mxu1 }
 0x41a   : > { %1701 = vst.msk [vmem:[#allocation2 + $0x7a] sm:$0x20] %vm1243_vm9, %v5651_v7  ;;  %2259 = vmatpush.bf16.msrb.mxu2 %v3836_v61  ;;  %v3759_v61 = vld [vmem:[#allocation12 + $0x18] sm:$0xf] }
 0x41b   : > { %1269 = vst.msk [vmem:[#allocation2 + $0x71] sm:$0x80] %vm1261_vm3, %v5593_v1 }
 0x41c   : > { %1333 = vst.msk [vmem:[#allocation2 + $0x72] sm:$0x80] %vm1261_vm3, %v5651_v7 }
 0x41d   : > { %1395 = vst.msk [vmem:[#allocation2 + $0x63] sm:$0x80] %vm1261_vm3, %v5589_v0  ;;  %v6692_v0 = vpop.f32.mrf.mxu0 }
 0x41e   : > { %1709 = vst.msk [vmem:[#allocation2 + $0x79] sm:$0x40] %vm1252_vm11, %v5593_v1 }
 0x41f   : > { %1717 = vst.msk [vmem:[#allocation2 + $0x78] sm:$0x80] %vm1261_vm3, %v5437_v47 }
 0x421   : > { %1839 = vmatmul.bf16.gmra.mxu0 %v1739_v4  ;;  %v6712_v23 = vpop.f32.mrf.mxu1  ;;  %v4375_v4 = vpop.eup %4374 }
 0x422   : > { %v1982_v43 = vmul.f32 64.0, %v4375_v4  ;;  %vm1986_vm10 = vweird.f32 %v4375_v4 }
 0x424   : > { %v1731_v5 = vld [vmem:[#allocation2 + $0x68] sm:$0xff] }
 0x425   : > { %v1740_v9 = vpack.c.bf16 %v1731_v5, %v1730_v8  ;;  %v6694_v12 = vpop.f32.mrf.mxu0 }
 0x426   : > { %v1733_v30 = vld [vmem:[#allocation2 + $0x78] sm:$0xff] }
 0x427   : > { %v1741_v7 = vpack.c.bf16 %v1733_v30, %v1732_v10  ;;  %v3821_v30 = vld [vmem:[#allocation12 + $0x9c] sm:$0xf0]  ;;  %v3808_v10 = vor.u32 %v4111_v2, %v3807_v60  ;;  %v3809_v2 = vld [vmem:[#allocation12 + $0x84] sm:$0xf0] }
 0x429   : > { %v6718_v26 = vpop.f32.mrf.mxu1  ;;  %2248 = vmatpush.bf16.msra.mxu3 %v3808_v10 }
 0x42d   : > { %v6696_v1 = vpop.f32.mrf.mxu0 }
 0x431   : > { %1844 = vmatmul.bf16.gmra.mxu0 %v1740_v9  ;;  %v6722_v34 = vpop.f32.mrf.mxu1  ;;  %v4113_v9 = vld [vmem:[#allocation12 + $0x94] sm:$0xf] }
 0x435   : > { %v6698_v15 = vpop.f32.mrf.mxu0 }
 0x439   : > { %v6726_v35 = vpop.f32.mrf.mxu1 }
 0x43d   : > { %v6700_v47 = vpop.f32.mrf.mxu0 }
 0x441   : > { %1849 = vmatmul.bf16.gmra.mxu0 %v1741_v7  ;;  %v6743_v54 = vpop.f32.mrf.mxu1 }
 0x449   : > { %v6759_v29 = vpop.f32.mrf.mxu1 }
 0x47e   : > { %v6702_v16 = vpop.f32.mrf.mxu0 }
 0x486   : > { %v6706_v18 = vpop.f32.mrf.mxu0 }
 0x48e   : > { %v6710_v22 = vpop.f32.mrf.mxu0 }
 0x48f   : > { %v1952_v46 = vadd.f32 %v6710_v22, %v6690_v11 }
 0x491   : > { %v1960_v20 = vadd.f32 %v1952_v46, %v6704_v17 }
 0x496   : > { %v6714_v24 = vpop.f32.mrf.mxu0 }
 0x497   : > { %v1953_v44 = vadd.f32 %v6714_v24, %v6692_v0 }
 0x499   : > { %v1961_v40 = vadd.f32 %v1953_v44, %v6708_v19  ;;  %v3824_v44 = vor.u32 %v4113_v9, %v3821_v30  ;;  %v4107_v9 = vld [vmem:[#allocation12 + $0x64] sm:$0xf]  ;;  %v3797_v30 = vld [vmem:[#allocation12 + $0x6c] sm:$0xf0] }
 0x49b   : > { %v1968_v6 = vadd.f32 %v1961_v40, %v1960_v20  ;;  %v3796_v40 = vor.u32 %v4108_v37, %v3795_v33  ;;  %v3783_v20 = vld [vmem:[#allocation12 + $0x48] sm:$0xf]  ;;  %2260 = vmatpush.bf16.msrb.mxu2 %v3824_v44  ;;  %v4104_v33 = vld [vmem:[#allocation12 + $0x4c] sm:$0xf]  ;;  %v3785_v37 = vld [vmem:[#allocation12 + $0x54] sm:$0xf0] }
 0x49c   : > { %v4118_v44 = vld [vmem:[#allocation12 + $0xb8] sm:$0xf0] }
 0x49d   : > { %2249 = vmatpush.bf16.msra.mxu3 %v3796_v40 }
 0x49e   : > { %v6716_v25 = vpop.f32.mrf.mxu0 }
 0x49f   : > { %v1954_v45 = vadd.f32 %v6716_v25, %v6694_v12 }
 0x4a1   : > { %v1962_v52 = vadd.f32 %v1954_v45, %v6712_v23 }
 0x4a3   : > { %v1969_v51 = vadd.f32 %v1968_v6, %v1962_v52  ;;  %v4105_v52 = vld [vmem:[#allocation12 + $0x50] sm:$0xf0] }
 0x4a4   : > { %v3784_v62 = vor.u32 %v4105_v52, %v3783_v20  ;;  %v3827_v20 = vld [vmem:[#allocation12 + $0x98] sm:$0xf]  ;;  %v4115_v52 = vld [vmem:[#allocation12 + $0xa0] sm:$0xf0] }
 0x4a6   : > { %v6720_v27 = vpop.f32.mrf.mxu0  ;;  %2250 = vmatpush.bf16.msra.mxu3 %v3784_v62  ;;  %v4098_v62 = vld [vmem:[#allocation12 + $0x1c] sm:$0xf] }
 0x4a7   : > { %v1955_v48 = vadd.f32 %v6720_v27, %v6696_v1 }
 0x4a9   : > { %v1963_v21 = vadd.f32 %v1955_v48, %v6718_v26 }
 0x4ab   : > { %v1970_v5 = vadd.f32 %v1969_v51, %v1963_v21 }
 0x4ae   : > { %v6724_v36 = vpop.f32.mrf.mxu0 }
 0x4af   : > { %v1956_v56 = vadd.f32 %v6724_v36, %v6698_v15 }
 0x4b1   : > { %v1964_v53 = vadd.f32 %v1956_v56, %v6722_v34  ;;  %v1983_v56 = vsub.f32 1.0, %v1982_v43  ;;  %v3839_v43 = vld [vmem:[#allocation12 + $0xb0] sm:$0xf] }
 0x4b2   : > { %v3840_v40 = vor.u32 %v4118_v44, %v3839_v43 }
 0x4b3   : > { %v1971_v7 = vadd.f32 %v1970_v5, %v1964_v53  ;;  %v1984_v3 = vmul.f32 %v4375_v4, %v1983_v56  ;;  %v3771_v53 = vld [vmem:[#allocation12 + $0x30] sm:$0xf]  ;;  %v4099_v5 = vld [vmem:[#allocation12 + $0x20] sm:$0xf0] }
 0x4b4   : > { %v3760_v10 = vor.u32 %v4099_v5, %v3759_v61  ;;  %v4103_v61 = vld [vmem:[#allocation12 + $0x40] sm:$0xf0] }
 0x4b5   : > { %v1985_v6 = vadd.f32 %v4375_v4, %v1984_v3  ;;  %v3815_v3 = vld [vmem:[#allocation12 + $0x80] sm:$0xf] }
 0x4b6   : > { %v6728_v39 = vpop.f32.mrf.mxu0 }
 0x4b7   : > { %v1957_v31 = vadd.f32 %v6728_v39, %v6700_v47  ;;  %v1987_v41 = vsel %vm1986_vm10, %v4375_v4, %v1985_v6  ;;  %v4096_v4 = vld [vmem:[#allocation12 + $0x8] sm:$0xf0] }
 0x4b9   : > { %v1965_v8 = vadd.f32 %v1957_v31, %v6726_v35 }
 0x4bb   : > { %v1972_v46 = vadd.f32 %v1971_v7, %v1965_v8  ;;  %v3812_v8 = vor.u32 %v4110_v59, %v3809_v2  ;;  %v3800_v7 = vor.u32 %v4107_v9, %v3797_v30  ;;  %v3779_v2 = vld [vmem:[#allocation12 + $0x38] sm:$0xf]  ;;  %v3767_v30 = vld [vmem:[#allocation12 + $0x20] sm:$0xf] }
 0x4bc   : > { %v3780_v9 = vor.u32 %v4103_v61, %v3779_v2 }
 0x4bd   : > { %2261 = vmatpush.bf16.msrb.mxu2 %v3812_v8 }
 0x4be   : > { %v6745_v57 = vpop.f32.mrf.mxu0 }
 0x4bf   : > { %v1958_v55 = vadd.f32 %v6745_v57, %v6702_v16 }
 0x4c1   : > { %v1966_v28 = vadd.f32 %v1958_v55, %v6743_v54  ;;  %v4102_v55 = vld [vmem:[#allocation12 + $0x38] sm:$0xf0]  ;;  %2262 = vmatpush.bf16.msrb.mxu2 %v3800_v7 }
 0x4c2   : > { %v3772_v60 = vor.u32 %v4102_v55, %v3771_v53  ;;  %v3791_v53 = vld [vmem:[#allocation12 + $0x50] sm:$0xf]  ;;  %v4106_v55 = vld [vmem:[#allocation12 + $0x58] sm:$0xf0] }
 0x4c3   : > { %v1973_v48 = vadd.f32 %v1972_v46, %v1966_v28  ;;  %v3747_v28 = vld [vmem:[#allocation12] sm:$0xf]  ;;  %v3792_v59 = vor.u32 %v4106_v55, %v3791_v53  ;;  %v4122_v55 = vld [vmem:[#allocation14 + $0x18] sm:$0xff] }
 0x4c4   : > { %2251 = vmatpush.bf16.msra.mxu3 %v3772_v60  ;;  %v3748_v46 = vor.u32 %v4096_v4, %v3747_v28  ;;  %v2006_v60 = vld [vmem:[#allocation11] sm:$0x1] }
 0x4c6   : > { %v6755_v38 = vpop.f32.mrf.mxu0 }
 0x4c7   : > { %v1959_v45 = vadd.f32 %v6755_v38, %v6706_v18 }
 0x4c8   : > { %2252 = vmatpush.bf16.msra.mxu3 %v3760_v10  ;;  %v4100_v10 = vld [vmem:[#allocation12 + $0x28] sm:$0xf0] }
 0x4c9   : > { %v1967_v50 = vadd.f32 %v1959_v45, %v6759_v29  ;;  %v3788_v45 = vor.u32 %v4104_v33, %v3785_v37  ;;  %v3768_v4 = vor.u32 %v4100_v10, %v3767_v30  ;;  %v3755_v33 = vld [vmem:[#allocation12 + $0x8] sm:$0xf]  ;;  %v4097_v37 = vld [vmem:[#allocation12 + $0x10] sm:$0xf0] }
 0x4cb   : > { %v1974_v58 = vadd.f32 %v1973_v48, %v1967_v50  ;;  %v4101_v48 = vld [vmem:[#allocation12 + $0x34] sm:$0xf]  ;;  %v3773_v50 = vld [vmem:[#allocation12 + $0x3c] sm:$0xf0]  ;;  %2263 = vmatpush.bf16.msrb.mxu2 %v3788_v45  ;;  %v3756_v45 = vor.u32 %v4097_v37, %v3755_v33 }
 0x4cc   : > { %2253 = vmatpush.bf16.msra.mxu3 %v3748_v46  ;;  %v3776_v56 = vor.u32 %v4101_v48, %v3773_v50  ;;  %v4125_v50 = vld [vmem:[#allocation14 + $0x30] sm:$0xff]  ;;  %v4119_v37 = vld [vmem:[#allocation14] sm:$0xff] }
 0x4cd   : > { %v1975_v63 = vrot.slane %v1974_v58, 4 }
 0x4cf   : > { %v1976_v32 = vadd.f32 %v1975_v63, %v1974_v58  ;;  %v3828_v58 = vor.u32 %v4115_v52, %v3827_v20  ;;  %v3761_v63 = vld [vmem:[#allocation12 + $0x24] sm:$0xf0]  ;;  %2264 = vmatpush.bf16.msrb.mxu2 %v3776_v56 }
 0x4d0   : > { %2272 = vmatpush.bf16.msrb.mxu3 %v3840_v40  ;;  %v4126_v40 = vld [vmem:[#allocation14 + $0x38] sm:$0xff] }
 0x4d1   : > { %v1977_v49 = vrot.slane %v1976_v32, 2  ;;  %2417 = vmatpush.bf16.msrb.mxu1 %v4126_v40 }
 0x4d3   : > { %v1978_v21 = vadd.f32 %v1977_v49, %v1976_v32  ;;  %v4112_v32 = vld [vmem:[#allocation12 + $0x88] sm:$0xf0]  ;;  %v3764_v49 = vor.u32 %v4098_v62, %v3761_v63 }
 0x4d4   : > { %2273 = vmatpush.bf16.msrb.mxu3 %v3828_v58  ;;  %v3816_v6 = vor.u32 %v4112_v32, %v3815_v3  ;;  %v4124_v63 = vld [vmem:[#allocation14 + $0x28] sm:$0xff]  ;;  %v4123_v3 = vld [vmem:[#allocation14 + $0x20] sm:$0xff] }
 0x4d5   : > { %v1979_v31 = vrot.slane %v1978_v21, 1  ;;  %2265 = vmatpush.bf16.msrb.mxu2 %v3764_v49  ;;  %2418 = vmatpush.bf16.msrb.mxu1 %v4125_v50 }
 0x4d7   : > { %v1980_v42 = vadd.f32 %v1979_v31, %v1978_v21  ;;  %v4095_v21 = vld [vmem:[#allocation12 + $0x4] sm:$0xf]  ;;  %v3749_v31 = vld [vmem:[#allocation12 + $0xc] sm:$0xf0] }
 0x4d8   : > { %2274 = vmatpush.bf16.msrb.mxu3 %v3816_v6  ;;  %v2110_v6 = vld [vmem:[%s7189_s6] sm:$0x7]  ;;  %s4832_s6 = sshra.s32 %s3440_s4, 4  ;;  %s4833_s6 = int_to_ptr.hbm [resolvable:$true] %s4832_s6 }
 0x4d9   : > { %v1988_v13 = vmul.f32 %v1987_v41, %v1980_v42  ;;  %v3803_v41 = vld [vmem:[#allocation12 + $0x68] sm:$0xf]  ;;  %v4109_v42 = vld [vmem:[#allocation12 + $0x70] sm:$0xf0]  ;;  %2419 = vmatpush.bf16.msrb.mxu1 %v4124_v63  ;;  %v2242_v53 = vperm.slane %v2110_v6, 2  ;;  %p4839_p13 = scmp.lt.s32.totalorder %s4833_s6, %s7194_s11 }
 0x4db   : > { %v1989_v51 = vpack.c.bf16 %v1988_v13, %v1988_v13  ;;  %v3752_v13 = vor.u32 %v4095_v21, %v3749_v31 }
 0x4dd   : > { %2063 = vmatmul.bf16.vlgmr.msra.gmra.mxu2 %v1989_v51  ;;  %v3804_v51 = vor.u32 %v4109_v42, %v3803_v41  ;;  %2420 = vmatpush.bf16.msrb.mxu1 %v4123_v3  ;;  %v2240_v41 = vperm.slane %v2110_v6, 0  ;;  %v2241_v42 = vperm.slane %v2110_v6, 1 }
 0x4de   : > { %2266 = vmatpush.bf16.msrb.mxu2 %v3752_v13 }
 0x4df   : > { %2275 = vmatpush.bf16.msrb.mxu3 %v3804_v51 }
 0x4e1   : > { %2421 = vmatpush.bf16.msrb.mxu1 %v4122_v55 }
 0x4e3   : > { %2276 = vmatpush.bf16.msrb.mxu3 %v3792_v59 }
 0x4e7   : > { %2277 = vmatpush.bf16.msrb.mxu3 %v3780_v9 }
 0x4eb   : > { %2278 = vmatpush.bf16.msrb.mxu3 %v3768_v4 }
 0x4ef   : > { %2279 = vmatpush.bf16.msrb.mxu3 %v3756_v45 }
 0x560   : > { %v2064_v5 = vpop.f32.mrf.mxu2 }
 0x561   : > { %v2065_v8 = vadd.f32 %v2064_v5, %v2006_v60  ;;  %v4121_v60 = vld [vmem:[#allocation14 + $0x10] sm:$0xff] }
 0x562   : > { %2422 = vmatpush.bf16.msrb.mxu1 %v4121_v60 }
 0x563   : > { %v2069_v7 = vmul.f32 0.044715, %v2065_v8  ;;  %v2068_v52 = vmul.f32 0.5, %v2065_v8 }
 0x565   : > { %v2070_v28 = vmul.f32 %v2069_v7, %v2065_v8 }
 0x567   : > { %v2071_v43 = vmul.f32 %v2070_v28, %v2065_v8 }
 0x568   : > { %v2066_v44 = vpop.f32.mrf.mxu2 }
 0x569   : > { %v2072_v46 = vadd.f32 %v2071_v43, %v2065_v8  ;;  %v4120_v8 = vld [vmem:[#allocation14 + $0x8] sm:$0xff] }
 0x56a   : > { %2423 = vmatpush.bf16.msrb.mxu1 %v4120_v8 }
 0x56b   : > { %v2073_v48 = vmul.f32 0.7978846, %v2072_v46 }
 0x56d   : > { %4376 = vtanh.f32 %v2073_v48 }
 0x56e   : > { %2424 = vmatpush.bf16.msrb.mxu1 %v4119_v37  ;;  %v4352_v37 = vld [vmem:[#allocation15] ss:$0 sm:$0xff] }
 0x573   : > { %v4377_v20 = vpop.eup %4376 }
 0x574   : > { %v2075_v56 = vadd.f32 1.0, %v4377_v20 }
 0x576   : > { %v2076_v58 = vmul.f32 %v2075_v56, %v2068_v52 }
 0x578   : > { %v2077_v62 = vpack.c.bf16 %v2076_v58, %v2076_v58 }
 0x57a   : > { %2254 = vmatmul.bf16.vlgmr.msra.gmra.mxu3 %v2077_v62  ;;  %2267 = vmatmul.bf16.vlgmr.msrb.gmra.mxu2 %v2077_v62 }
 0x58a   : > { %2280 = vmatmul.bf16.vlgmr.msrb.gmra.mxu3 %v2077_v62 }
 0x5fd   : > { %v2255_v32 = vpop.f32.mrf.mxu3  ;;  %v2268_v49 = vpop.f32.mrf.mxu2 }
 0x5fe   : > { %v2256_v13 = vadd.f32 %v2255_v32, %v2240_v41  ;;  %v2269_v51 = vadd.f32 %v2268_v49, %v2241_v42 }
 0x600   : > { %v2285_v2 = vmax.f32 %v2256_v13, %v2269_v51 }
 0x605   : > { %v2257_v21 = vpop.f32.mrf.mxu3  ;;  %v2270_v31 = vpop.f32.mrf.mxu2 }
 0x60d   : > { %v2281_v59 = vpop.f32.mrf.mxu3 }
 0x60e   : > { %v2282_v61 = vadd.f32 %v2281_v59, %v2242_v53 }
 0x610   : > { %v2286_v5 = vmax.f32 %v2285_v2, %v2282_v61 }
 0x612   : > { %v2287_v9 = vsub.f32 %v2256_v13, %v2286_v5  ;;  %v2290_v30 = vsub.f32 %v2269_v51, %v2286_v5  ;;  %v2293_v10 = vsub.f32 %v2282_v61, %v2286_v5 }
 0x614   : > { %v2288_v7 = vmul.f32 1.442695, %v2287_v9  ;;  %v2291_v28 = vmul.f32 1.442695, %v2290_v30  ;;  %v2294_v4 = vmul.f32 1.442695, %v2293_v10 }
 0x615   : > { %v2283_v33 = vpop.f32.mrf.mxu3 }
 0x616   : > { %4378 = vpow2.f32 %v2288_v7 }
 0x617   : > { %4380 = vpow2.f32 %v2291_v28 }
 0x618   : > { %4382 = vpow2.f32 %v2294_v4 }
 0x61c   : > { %v4379_v43 = vpop.eup %4378 }
 0x61d   : > { %v4381_v44 = vpop.eup %4380 }
 0x61e   : > { %v2296_v46 = vadd.f32 %v4381_v44, %v4379_v43  ;;  %v4383_v45 = vpop.eup %4382 }
 0x620   : > { %v2297_v40 = vadd.f32 %v4383_v45, %v2296_v46 }
 0x622   : > { %4384 = vrcp.f32 %v2297_v40  ;;  %v4452_v40 = vld [vmem:[%s5208_s19 + $0x10] sm:$0xff] }
 0x628   : > { %v4385_v48 = vpop.eup %4384 }
 0x629   : > { %v2299_v50 = vmul.f32 %v4385_v48, %v4379_v43  ;;  %v2300_v20 = vmul.f32 %v4385_v48, %v4381_v44  ;;  %v2301_v52 = vmul.f32 %v4385_v48, %v4383_v45 }
 0x62b   : > { %v2302_v56 = vperm.slane %v2299_v50, 0  ;;  %v2311_v58 = vperm.slane %v2300_v20, 0  ;;  %v2328_v62 = vperm.slane %v2301_v52, 0  ;;  %v4453_v52 = vld [vmem:[%s5208_s19 + $0x18] sm:$0xff] }
 0x62d   : > { %v2303_v63 = vmul.f32 %v2302_v56, %v6690_v11  ;;  %v2304_v3 = vmul.f32 %v2302_v56, %v6692_v0  ;;  %v2312_v32 = vmul.f32 %v2311_v58, %v6710_v22  ;;  %v2313_v49 = vmul.f32 %v2311_v58, %v6714_v24 }
 0x62e   : > { %v2329_v31 = vmul.f32 %v2328_v62, %v6704_v17  ;;  %v2330_v41 = vmul.f32 %v2328_v62, %v6708_v19  ;;  %v2305_v53 = vmul.f32 %v2302_v56, %v6694_v12  ;;  %v2306_v11 = vmul.f32 %v2302_v56, %v6696_v1 }
 0x62f   : > { %v2320_v6 = vadd.f32 %v2312_v32, %v2303_v63  ;;  %v2321_v21 = vadd.f32 %v2313_v49, %v2304_v3  ;;  %v2314_v0 = vmul.f32 %v2311_v58, %v6716_v25  ;;  %v2315_v22 = vmul.f32 %v2311_v58, %v6720_v27  ;;  %v4454_v63 = vld [vmem:[%s5208_s19 + $0x20] sm:$0xff] }
 0x630   : > { %v2331_v59 = vmul.f32 %v2328_v62, %v6712_v23  ;;  %v2332_v17 = vmul.f32 %v2328_v62, %v6718_v26  ;;  %v2307_v61 = vmul.f32 %v2302_v56, %v6698_v15  ;;  %v2308_v12 = vmul.f32 %v2302_v56, %v6700_v47 }
 0x631   : > { %v2337_v42 = vadd.f32 %v2329_v31, %v2320_v6  ;;  %v2338_v13 = vadd.f32 %v2330_v41, %v2321_v21  ;;  %v2322_v55 = vadd.f32 %v2314_v0, %v2305_v53  ;;  %v2323_v24 = vadd.f32 %v2315_v22, %v2306_v11  ;;  %v4455_v6 = vld [vmem:[%s5208_s19 + $0x28] sm:$0xff] }
 0x632   : > { %v2316_v1 = vmul.f32 %v2311_v58, %v6724_v36  ;;  %v2317_v25 = vmul.f32 %v2311_v58, %v6728_v39  ;;  %v2333_v8 = vmul.f32 %v2328_v62, %v6722_v34  ;;  %v2334_v23 = vmul.f32 %v2328_v62, %v6726_v35 }
 0x633   : > { %v2345_v51 = vpack.c.bf16 %v2338_v13, %v2337_v42  ;;  %v2339_v60 = vadd.f32 %v2331_v59, %v2322_v55  ;;  %v2340_v19 = vadd.f32 %v2332_v17, %v2323_v24  ;;  %v2309_v10 = vmul.f32 %v2302_v56, %v6702_v16  ;;  %v4456_v42 = vld [vmem:[%s5208_s19 + $0x30] sm:$0xff] }
 0x634   : > { %v2324_v5 = vadd.f32 %v2316_v1, %v2307_v61  ;;  %v2325_v27 = vadd.f32 %v2317_v25, %v2308_v12  ;;  %v2310_v15 = vmul.f32 %v2302_v56, %v6706_v18  ;;  %v2318_v47 = vmul.f32 %v2311_v58, %v6745_v57  ;;  %v4450_v18 = vld [vmem:[%s5208_s19] sm:$0xff] }
 0x635   : > { %2425 = vmatmul.bf16.vlgmr.msrb.gmra.mxu1 %v2345_v51  ;;  %v2346_v2 = vpack.c.bf16 %v2340_v19, %v2339_v60  ;;  %v2319_v36 = vmul.f32 %v2311_v58, %v6755_v38  ;;  %v2335_v34 = vmul.f32 %v2328_v62, %v6743_v54  ;;  %v2336_v35 = vmul.f32 %v2328_v62, %v6759_v29  ;;  %v4451_v54 = vld [vmem:[%s5208_s19 + $0x8] sm:$0xff]  ;;  %v4457_v60 = vld [vmem:[%s5208_s19 + $0x38] sm:$0xff]  ;;  %s4834_s19 = scalar_lea.hbm %s4833_s6, 64 }
 0x636   : > { %v2341_v9 = vadd.f32 %v2333_v8, %v2324_v5  ;;  %v2342_v26 = vadd.f32 %v2334_v23, %v2325_v27  ;;  %v2326_v39 = vadd.f32 %v2318_v47, %v2309_v10  ;;  %v3967_v5 = vld [vmem:[#allocation17 + $0xb0] sm:$0xf]  ;;  %v4150_v27 = vld [vmem:[#allocation17 + $0xb8] sm:$0xf0]  ;;  %p4835_p1 = scmp.ne.s32.totalorder %s4833_s6, %s4834_s19  ;;  %p4840_p7 = scmp.lt.s32.totalorder %s4838_s20, %s4834_s19 }
 0x637   : > { %v2327_v7 = vadd.f32 %v2319_v36, %v2310_v15  ;;  %v3968_v23 = vor.u32 %v4150_v27, %v3967_v5  ;;  %v3925_v5 = vld [vmem:[#allocation17 + $0x6c] sm:$0xf0]  ;;  %v3931_v27 = vld [vmem:[#allocation17 + $0x68] sm:$0xf] }
 0x638   : > { %v2347_v30 = vpack.c.bf16 %v2342_v26, %v2341_v9  ;;  %v2343_v28 = vadd.f32 %v2335_v34, %v2326_v39  ;;  %p4836_p3 = pnand %p4835_p1, %p5169_p0  ;;  %p4841_p8 = por %p4840_p7, %p4839_p13 }
 0x639   : > { %v2344_v4 = vadd.f32 %v2336_v35, %v2327_v7  ;;  %2868 = vmatpush.bf16.msrb.mxu0 %v3968_v23 }
 0x63a   : > { %p4837_p5 = pneg %p4836_p3 }
 0x63b   : > { %v2348_v33 = vpack.c.bf16 %v2344_v4, %v2343_v28 }
 0x63c   : > { %p4842_p9 = pnand %p4841_p8, %p4837_p5 }
 0x645   : > { %2430 = vmatmul.bf16.gmra.mxu1 %v2346_v2 }
 0x655   : > { %2435 = vmatmul.bf16.gmra.mxu1 %v2347_v30 }
 0x665   : > { %2440 = vmatmul.bf16.gmra.mxu1 %v2348_v33 }
 0x6b2   : > { %v2426_v16 = vpop.f32.mrf.mxu1 }
 0x6b3   : > { %v2427_v43 = vadd.f32 %v4352_v37, %v2426_v16  ;;  %v3959_v16 = vld [vmem:[#allocation17 + $0xa8] sm:$0xf] }
 0x6b5   : > { %v6790_v57 = vadd.f32 %v4450_v18, %v2427_v43  ;;  %v4149_v43 = vld [vmem:[#allocation17 + $0xb0] sm:$0xf0]  ;;  %v4148_v18 = vld [vmem:[#allocation17 + $0xac] sm:$0xf] }
 0x6b7   : > { %2456 = vadd.xlane.f32.xlu0 %v6790_v57 }
 0x6ba   : > { %v2428_v38 = vpop.f32.mrf.mxu1 }
 0x6bb   : > { %v2429_v44 = vadd.f32 %v4352_v37, %v2428_v38  ;;  %v3960_v38 = vor.u32 %v4149_v43, %v3959_v16 }
 0x6bd   : > { %v6794_v46 = vadd.f32 %v4451_v54, %v2429_v44  ;;  %v3961_v44 = vld [vmem:[#allocation17 + $0xb4] sm:$0xf0]  ;;  %2810 = vmatpush.bf16.msra.mxu2 %v3960_v38 }
 0x6be   : > { %v3964_v54 = vor.u32 %v4148_v18, %v3961_v44 }
 0x6bf   : > { %2458 = vadd.xlane.f32.xlu2 %v6794_v46 }
 0x6c0   : > { %2839 = vmatpush.bf16.msra.mxu3 %v3964_v54 }
 0x6c2   : > { %v2431_v29 = vpop.f32.mrf.mxu1 }
 0x6c3   : > { %v2432_v45 = vadd.f32 %v4352_v37, %v2431_v29  ;;  %v3955_v29 = vld [vmem:[#allocation17 + $0x98] sm:$0xf] }
 0x6c5   : > { %v6798_v48 = vadd.f32 %v4452_v40, %v2432_v45  ;;  %v4147_v45 = vld [vmem:[#allocation17 + $0xa0] sm:$0xf0]  ;;  %v3947_v40 = vld [vmem:[#allocation17 + $0x90] sm:$0xf] }
 0x6c7   : > { %2460 = vadd.xlane.f32.xlu1 %v6798_v48 }
 0x6ca   : > { %v2433_v50 = vpop.f32.mrf.mxu1 }
 0x6cb   : > { %v2434_v20 = vadd.f32 %v4352_v37, %v2433_v50 }
 0x6cd   : > { %v6802_v56 = vadd.f32 %v4453_v52, %v2434_v20  ;;  %v3956_v20 = vor.u32 %v4147_v45, %v3955_v29  ;;  %v4146_v52 = vld [vmem:[#allocation17 + $0x98] sm:$0xf0]  ;;  %v3899_v45 = vld [vmem:[#allocation17 + $0x30] sm:$0xf] }
 0x6cf   : > { %2462 = vadd.xlane.f32.xlu0 %v6802_v56  ;;  %2869 = vmatpush.bf16.msrb.mxu0 %v3956_v20 }
 0x6d2   : > { %v2436_v58 = vpop.f32.mrf.mxu1 }
 0x6d3   : > { %v2437_v62 = vadd.f32 %v4352_v37, %v2436_v58  ;;  %v4145_v58 = vld [vmem:[#allocation17 + $0x94] sm:$0xf] }
 0x6d5   : > { %v6806_v3 = vadd.f32 %v4454_v63, %v2437_v62  ;;  %v3949_v62 = vld [vmem:[#allocation17 + $0x9c] sm:$0xf0] }
 0x6d7   : > { %2464 = vadd.xlane.f32.xlu2 %v6806_v3 }
 0x6da   : > { %v2438_v32 = vpop.f32.mrf.mxu1 }
 0x6db   : > { %v2439_v49 = vadd.f32 %v4352_v37, %v2438_v32  ;;  %v3948_v32 = vor.u32 %v4146_v52, %v3947_v40  ;;  %v4134_v40 = vld [vmem:[#allocation17 + $0x38] sm:$0xf0] }
 0x6dd   : > { %v6810_v21 = vadd.f32 %v4455_v6, %v2439_v49  ;;  %v3952_v49 = vor.u32 %v4145_v58, %v3949_v62  ;;  %v3935_v6 = vld [vmem:[#allocation17 + $0x78] sm:$0xf]  ;;  %2811 = vmatpush.bf16.msra.mxu2 %v3948_v32  ;;  %v3900_v58 = vor.u32 %v4134_v40, %v3899_v45  ;;  %v3901_v62 = vld [vmem:[#allocation17 + $0x3c] sm:$0xf0] }
 0x6df   : > { %2466 = vadd.xlane.f32.xlu1 %v6810_v21  ;;  %2840 = vmatpush.bf16.msra.mxu3 %v3952_v49 }
 0x6e2   : > { %v2441_v31 = vpop.f32.mrf.mxu1 }
 0x6e3   : > { %v2442_v41 = vadd.f32 %v4352_v37, %v2441_v31  ;;  %v4143_v31 = vld [vmem:[#allocation17 + $0x80] sm:$0xf0] }
 0x6e5   : > { %v6814_v13 = vadd.f32 %v4456_v42, %v2442_v41  ;;  %v4142_v41 = vld [vmem:[#allocation17 + $0x7c] sm:$0xf]  ;;  %v3937_v42 = vld [vmem:[#allocation17 + $0x84] sm:$0xf0] }
 0x6e7   : > { %2468 = vadd.xlane.f32.xlu1 %v6814_v13 }
 0x6ea   : > { %v2443_v22 = vpop.f32.mrf.mxu1 }
 0x6eb   : > { %v2444_v24 = vadd.f32 %v4352_v37, %v2443_v22  ;;  %v3936_v22 = vor.u32 %v4143_v31, %v3935_v6  ;;  %v4135_v6 = vld [vmem:[#allocation17 + $0x40] sm:$0xf0]  ;;  %v3887_v31 = vld [vmem:[#allocation17 + $0x18] sm:$0xf] }
 0x6ed   : > { %v6828_v19 = vadd.f32 %v4457_v60, %v2444_v24  ;;  %2812 = vmatpush.bf16.msra.mxu2 %v3936_v22  ;;  %v4140_v60 = vld [vmem:[#allocation17 + $0x68] sm:$0xf0]  ;;  %v3889_v22 = vld [vmem:[#allocation17 + $0x24] sm:$0xf0] }
 0x72a   : > { %v2457_v51 = vpop.xlane.xlu0 %2456 }
 0x72b   : > { %v2472_v53 = vmul.f32 %v2457_v51, %v5246_v14  ;;  %v3943_v51 = vld [vmem:[#allocation17 + $0x80] sm:$0xf] }
 0x72d   : > { %v6819_v11 = vsub.f32 %v6790_v57, %v2472_v53  ;;  %v4144_v53 = vld [vmem:[#allocation17 + $0x88] sm:$0xf0] }
 0x72e   : > { %v3944_v24 = vor.u32 %v4144_v53, %v3943_v51  ;;  %v4130_v53 = vld [vmem:[#allocation17 + $0x1c] sm:$0xf] }
 0x72f   : > { %v2488_v0 = vmul.f32 %v6819_v11, %v6819_v11 }
 0x730   : > { %2870 = vmatpush.bf16.msrb.mxu0 %v3944_v24 }
 0x731   : > { %2496 = vadd.xlane.f32.xlu0 %v2488_v0 }
 0x732   : > { %v2459_v55 = vpop.xlane.xlu2 %2458 }
 0x733   : > { %v2473_v59 = vmul.f32 %v2459_v55, %v5246_v14  ;;  %v3940_v55 = vor.u32 %v4142_v41, %v3937_v42  ;;  %v4131_v41 = vld [vmem:[#allocation17 + $0x20] sm:$0xf0] }
 0x735   : > { %v6825_v17 = vsub.f32 %v6794_v46, %v2473_v59  ;;  %2841 = vmatpush.bf16.msra.mxu3 %v3940_v55  ;;  %v3923_v59 = vld [vmem:[#allocation17 + $0x60] sm:$0xf] }
 0x737   : > { %v2489_v2 = vmul.f32 %v6825_v17, %v6825_v17 }
 0x739   : > { %2498 = vadd.xlane.f32.xlu2 %v2489_v2  ;;  %2470 = vadd.xlane.f32.xlu0 %v6828_v19  ;;  %v4139_v2 = vld [vmem:[#allocation17 + $0x64] sm:$0xf] }
 0x73a   : > { %v2461_v61 = vpop.xlane.xlu1 %2460 }
 0x73b   : > { %v2474_v12 = vmul.f32 %v2461_v61, %v5246_v14 }
 0x73d   : > { %v6835_v1 = vsub.f32 %v6798_v48, %v2474_v12 }
 0x73f   : > { %v2490_v25 = vmul.f32 %v6835_v1, %v6835_v1 }
 0x741   : > { %2500 = vadd.xlane.f32.xlu2 %v2490_v25  ;;  %v3924_v25 = vor.u32 %v4140_v60, %v3923_v59  ;;  %v3888_v59 = vor.u32 %v4131_v41, %v3887_v31  ;;  %v3892_v60 = vor.u32 %v4130_v53, %v3889_v22 }
 0x742   : > { %v2463_v8 = vpop.xlane.xlu0 %2462 }
 0x743   : > { %v2475_v9 = vmul.f32 %v2463_v8, %v5246_v14  ;;  %v4141_v8 = vld [vmem:[#allocation17 + $0x70] sm:$0xf0]  ;;  %2813 = vmatpush.bf16.msra.mxu2 %v3924_v25 }
 0x745   : > { %v6841_v26 = vsub.f32 %v6802_v56, %v2475_v9 }
 0x747   : > { %v2491_v30 = vmul.f32 %v6841_v26, %v6841_v26 }
 0x749   : > { %2502 = vadd.xlane.f32.xlu1 %v2491_v30  ;;  %v3928_v30 = vor.u32 %v4139_v2, %v3925_v5  ;;  %v3895_v2 = vld [vmem:[#allocation17 + $0x20] sm:$0xf] }
 0x74a   : > { %v2465_v10 = vpop.xlane.xlu2 %2464 }
 0x74b   : > { %v2476_v15 = vmul.f32 %v2465_v10, %v5246_v14  ;;  %v3932_v10 = vor.u32 %v4141_v8, %v3931_v27  ;;  %2842 = vmatpush.bf16.msra.mxu3 %v3928_v30  ;;  %v4127_v30 = vld [vmem:[#allocation17 + $0x4] sm:$0xf] }
 0x74d   : > { %v6847_v47 = vsub.f32 %v6806_v3, %v2476_v15  ;;  %v3911_v15 = vld [vmem:[#allocation17 + $0x48] sm:$0xf]  ;;  %2871 = vmatpush.bf16.msrb.mxu0 %v3932_v10 }
 0x74f   : > { %v2492_v36 = vmul.f32 %v6847_v47, %v6847_v47 }
 0x751   : > { %2504 = vadd.xlane.f32.xlu0 %v2492_v36  ;;  %v4137_v36 = vld [vmem:[#allocation17 + $0x50] sm:$0xf0] }
 0x752   : > { %v2467_v39 = vpop.xlane.xlu1 %2466  ;;  %v3912_v43 = vor.u32 %v4137_v36, %v3911_v15 }
 0x753   : > { %v2477_v7 = vmul.f32 %v2467_v39, %v5246_v14  ;;  %v4136_v39 = vld [vmem:[#allocation17 + $0x4c] sm:$0xf] }
 0x754   : > { %2814 = vmatpush.bf16.msra.mxu2 %v3912_v43  ;;  %v4129_v43 = vld [vmem:[#allocation17 + $0x10] sm:$0xf0] }
 0x755   : > { %v6853_v34 = vsub.f32 %v6810_v21, %v2477_v7  ;;  %v3913_v7 = vld [vmem:[#allocation17 + $0x54] sm:$0xf0] }
 0x756   : > { %v3916_v38 = vor.u32 %v4136_v39, %v3913_v7  ;;  %v3877_v39 = vld [vmem:[#allocation17 + $0xc] sm:$0xf0]  ;;  %v3883_v7 = vld [vmem:[#allocation17 + $0x8] sm:$0xf] }
 0x757   : > { %v2493_v35 = vmul.f32 %v6853_v34, %v6853_v34 }
 0x758   : > { %2843 = vmatpush.bf16.msra.mxu3 %v3916_v38  ;;  %2815 = vmatpush.bf16.msra.mxu2 %v3900_v58  ;;  %v3884_v38 = vor.u32 %v4129_v43, %v3883_v7  ;;  %v6911_v58 = vld [vmem:[%s7193_s22] ss:$0 sm:$0xff] }
 0x759   : > { %2506 = vadd.xlane.f32.xlu2 %v2493_v35  ;;  %v3919_v35 = vld [vmem:[#allocation17 + $0x50] sm:$0xf] }
 0x75a   : > { %v2469_v28 = vpop.xlane.xlu1 %2468 }
 0x75b   : > { %v2478_v4 = vmul.f32 %v2469_v28, %v5246_v14  ;;  %v4138_v28 = vld [vmem:[#allocation17 + $0x58] sm:$0xf0] }
 0x75c   : > { %v3920_v44 = vor.u32 %v4138_v28, %v3919_v35  ;;  %2816 = vmatpush.bf16.msra.mxu2 %v3888_v59  ;;  %v3880_v28 = vor.u32 %v4127_v30, %v3877_v39 }
 0x75d   : > { %v6859_v33 = vsub.f32 %v6814_v13, %v2478_v4 }
 0x75e   : > { %2872 = vmatpush.bf16.msrb.mxu0 %v3920_v44 }
 0x75f   : > { %v2494_v37 = vmul.f32 %v6859_v33, %v6859_v33 }
 0x761   : > { %2508 = vadd.xlane.f32.xlu1 %v2494_v37 }
 0x7a4   : > { %v2497_v50 = vpop.xlane.xlu0 %2496 }
 0x7a5   : > { %v2512_v63 = vmul.f32 %v2497_v50, %v5246_v14  ;;  %v4133_v50 = vld [vmem:[#allocation17 + $0x34] sm:$0xf] }
 0x7a6   : > { %v3904_v49 = vor.u32 %v4133_v50, %v3901_v62 }
 0x7a7   : > { %v6864_v0 = vadd.f32 1e-05, %v2512_v63  ;;  %v3907_v63 = vld [vmem:[#allocation17 + $0x38] sm:$0xf] }
 0x7a8   : > { %v3908_v51 = vor.u32 %v4135_v6, %v3907_v63  ;;  %2844 = vmatpush.bf16.msra.mxu3 %v3904_v49 }
 0x7a9   : > { %4386 = vrsqrt.f32 %v6864_v0  ;;  %vm2534_vm13 = vweird.f32 %v6864_v0 }
 0x7aa   : > { %2873 = vmatpush.bf16.msrb.mxu0 %v3908_v51 }
 0x7ac   : > { %v2499_v61 = vpop.xlane.xlu2 %2498  ;;  %v2471_v12 = vpop.xlane.xlu0 %2470  ;;  %2845 = vmatpush.bf16.msra.mxu3 %v3892_v60 }
 0x7ad   : > { %v2513_v23 = vmul.f32 %v2499_v61, %v5246_v14  ;;  %v2479_v9 = vmul.f32 %v2471_v12, %v5246_v14  ;;  %v4132_v61 = vld [vmem:[#allocation17 + $0x28] sm:$0xf0] }
 0x7ae   : > { %v3896_v5 = vor.u32 %v4132_v61, %v3895_v2 }
 0x7af   : > { %v6869_v4 = vpop.eup %4386  ;;  %v6871_v37 = vadd.f32 1e-05, %v2513_v23  ;;  %v6874_v16 = vsub.f32 %v6828_v19, %v2479_v9  ;;  %v3875_v23 = vld [vmem:[#allocation17] sm:$0xf]  ;;  %v4128_v9 = vld [vmem:[#allocation17 + $0x8] sm:$0xf0] }
 0x7b0   : > { %v2529_v18 = vmul.f32 %v6869_v4, %v6864_v0  ;;  %vm2535_vm12 = vweird.f32 %v6869_v4  ;;  %2874 = vmatpush.bf16.msrb.mxu0 %v3896_v5  ;;  %v3876_v0 = vor.u32 %v4128_v9, %v3875_v23  ;;  %2846 = vmatpush.bf16.msra.mxu3 %v3880_v28 }
 0x7b1   : > { %4388 = vrsqrt.f32 %v6871_v37  ;;  %v2495_v54 = vmul.f32 %v6874_v16, %v6874_v16  ;;  %vm6890_vm14 = vmor %vm2534_vm13, %vm2535_vm12  ;;  %vm2544_vm0 = vweird.f32 %v6871_v37 }
 0x7b2   : > { %v2530_v29 = vmul.f32 %v6869_v4, %v2529_v18  ;;  %2817 = vmatpush.bf16.msra.mxu2 %v3876_v0 }
 0x7b3   : > { %2510 = vadd.xlane.f32.xlu0 %v2495_v54 }
 0x7b4   : > { %v2531_v20 = vmul.f32 0.5, %v2530_v29  ;;  %v2501_v52 = vpop.xlane.xlu2 %2500  ;;  %2875 = vmatpush.bf16.msrb.mxu0 %v3884_v38 }
 0x7b5   : > { %v2514_v32 = vmul.f32 %v2501_v52, %v5246_v14 }
 0x7b6   : > { %v2532_v42 = vsub.f32 1.5, %v2531_v20 }
 0x7b7   : > { %v4389_v55 = vpop.eup %4388  ;;  %v6884_v24 = vadd.f32 1e-05, %v2514_v32 }
 0x7b8   : > { %v2533_v12 = vmul.f32 %v6869_v4, %v2532_v42  ;;  %v2539_v25 = vmul.f32 %v4389_v55, %v6871_v37  ;;  %vm2545_vm15 = vweird.f32 %v4389_v55 }
 0x7b9   : > { %4390 = vrsqrt.f32 %v6884_v24  ;;  %vm2546_vm1 = vmor %vm2544_vm0, %vm2545_vm15  ;;  %vm2554_vm4 = vweird.f32 %v6884_v24 }
 0x7ba   : > { %v2540_v8 = vmul.f32 %v4389_v55, %v2539_v25  ;;  %v2537_v10 = vsel %vm6890_vm14, %v6869_v4, %v2533_v12  ;;  %v6902_v4 = vld [vmem:[%s7192_s23] ss:$0 sm:$0xff] }
 0x7bb   : > { %v2608_v54 = vmul.f32 %v2537_v10, %v6819_v11 }
 0x7bc   : > { %v2541_v15 = vmul.f32 0.5, %v2540_v8  ;;  %v2503_v36 = vpop.xlane.xlu1 %2502 }
 0x7bd   : > { %v2515_v35 = vmul.f32 %v2503_v36, %v5246_v14  ;;  %v2619_v52 = vmul.f32 %v6902_v4, %v2608_v54 }
 0x7be   : > { %v2542_v18 = vsub.f32 1.5, %v2541_v15 }
 0x7bf   : > { %v4391_v44 = vpop.eup %4390  ;;  %v2523_v29 = vadd.f32 1e-05, %v2515_v35  ;;  %v2630_v41 = vadd.f32 %v6911_v58, %v2619_v52 }
 0x7c0   : > { %v2543_v45 = vmul.f32 %v4389_v55, %v2542_v18  ;;  %v2549_v40 = vmul.f32 %v4391_v44, %v6884_v24  ;;  %vm2555_vm2 = vweird.f32 %v4391_v44 }
 0x7c1   : > { %4392 = vrsqrt.f32 %v2523_v29  ;;  %vm2556_vm5 = vmor %vm2554_vm4, %vm2555_vm2  ;;  %vm2564_vm7 = vweird.f32 %v2523_v29 }
 0x7c2   : > { %v2547_v50 = vsel %vm2546_vm1, %v4389_v55, %v2543_v45  ;;  %v2550_v20 = vmul.f32 %v4391_v44, %v2549_v40 }
 0x7c3   : > { %v2609_v11 = vmul.f32 %v2547_v50, %v6825_v17 }
 0x7c4   : > { %v2551_v62 = vmul.f32 0.5, %v2550_v20  ;;  %v2505_v63 = vpop.xlane.xlu0 %2504 }
 0x7c5   : > { %v2516_v37 = vmul.f32 %v2505_v63, %v5246_v14  ;;  %v2620_v32 = vmul.f32 %v6902_v4, %v2609_v11 }
 0x7c6   : > { %v2552_v49 = vsub.f32 1.5, %v2551_v62 }
 0x7c7   : > { %v4393_v6 = vpop.eup %4392  ;;  %v2524_v31 = vadd.f32 1e-05, %v2516_v37  ;;  %v2631_v17 = vadd.f32 %v6911_v58, %v2620_v32 }
 0x7c8   : > { %v2553_v42 = vmul.f32 %v4391_v44, %v2552_v49  ;;  %v2559_v51 = vmul.f32 %v4393_v6, %v2523_v29  ;;  %vm2565_vm6 = vweird.f32 %v4393_v6 }
 0x7c9   : > { %4394 = vrsqrt.f32 %v2524_v31  ;;  %v2638_v53 = vpack.c.bf16 %v2631_v17, %v2630_v41  ;;  %vm2566_vm8 = vmor %vm2564_vm7, %vm2565_vm6  ;;  %vm2574_vm11 = vweird.f32 %v2524_v31 }
 0x7ca   : > { %v2560_v22 = vmul.f32 %v4393_v6, %v2559_v51  ;;  %v2557_v55 = vsel %vm2556_vm5, %v4391_v44, %v2553_v42 }
 0x7cb   : > { %2818 = vmatmul.bf16.vlgmr.msra.gmra.mxu2 %v2638_v53  ;;  %2847 = vmatmul.bf16.vlgmr.msra.gmra.mxu3 %v2638_v53  ;;  %v2610_v25 = vmul.f32 %v2557_v55, %v6835_v1  ;;  %v4174_v55 = vld [vmem:[#allocation20 + $0xb8] sm:$0xff] }
 0x7cc   : > { %v2561_v59 = vmul.f32 0.5, %v2560_v22  ;;  %2876 = vmatmul.bf16.vlgmr.msrb.gmra.mxu0 %v2638_v53  ;;  %v2507_v60 = vpop.xlane.xlu2 %2506  ;;  %3379 = vmatpush.bf16.msrb.mxu3 %v4174_v55 }
 0x7cd   : > { %v2517_v2 = vmul.f32 %v2507_v60, %v5246_v14  ;;  %v2621_v30 = vmul.f32 %v6902_v4, %v2610_v25 }
 0x7ce   : > { %v2562_v61 = vsub.f32 1.5, %v2561_v59 }
 0x7cf   : > { %v4395_v12 = vpop.eup %4394  ;;  %v2525_v5 = vadd.f32 1e-05, %v2517_v2  ;;  %v2632_v39 = vadd.f32 %v6911_v58, %v2621_v30  ;;  %v4165_v30 = vld [vmem:[#allocation20 + $0x70] sm:$0xff] }
 0x7d0   : > { %v2563_v27 = vmul.f32 %v4393_v6, %v2562_v61  ;;  %v2569_v8 = vmul.f32 %v4395_v12, %v2524_v31  ;;  %vm2575_vm9 = vweird.f32 %v4395_v12 }
 0x7d1   : > { %4396 = vrsqrt.f32 %v2525_v5  ;;  %vm2576_vm3 = vmor %vm2574_vm11, %vm2575_vm9  ;;  %vm2584_vm12 = vweird.f32 %v2525_v5 }
 0x7d2   : > { %v2567_v24 = vsel %vm2566_vm8, %v4393_v6, %v2563_v27  ;;  %v2570_v23 = vmul.f32 %v4395_v12, %v2569_v8  ;;  %v4166_v27 = vld [vmem:[#allocation20 + $0x78] sm:$0xff]  ;;  %v4172_v8 = vld [vmem:[#allocation20 + $0xa8] sm:$0xff] }
 0x7d3   : > { %v2611_v9 = vmul.f32 %v2567_v24, %v6841_v26  ;;  %3350 = vmatpush.bf16.msrb.mxu2 %v4166_v27 }
 0x7d4   : > { %v2571_v10 = vmul.f32 0.5, %v2570_v23  ;;  %v2509_v62 = vpop.xlane.xlu1 %2508 }
 0x7d5   : > { %v2622_v15 = vmul.f32 %v6902_v4, %v2611_v9  ;;  %v4157_v9 = vld [vmem:[#allocation20 + $0x30] sm:$0xff] }
 0x7d6   : > { %v2572_v36 = vsub.f32 1.5, %v2571_v10 }
 0x7d7   : > { %v4397_v0 = vpop.eup %4396  ;;  %v2633_v1 = vadd.f32 %v6911_v58, %v2622_v15  ;;  %3351 = vmatpush.bf16.msrb.mxu2 %v4165_v30 }
 0x7d8   : > { %v2573_v7 = vmul.f32 %v4395_v12, %v2572_v36  ;;  %v2579_v35 = vmul.f32 %v4397_v0, %v2525_v5  ;;  %vm2585_vm10 = vweird.f32 %v4397_v0  ;;  %v4158_v5 = vld [vmem:[#allocation20 + $0x38] sm:$0xff]  ;;  %v4171_v36 = vld [vmem:[#allocation20 + $0xa0] sm:$0xff] }
 0x7d9   : > { %v2639_v28 = vpack.c.bf16 %v2633_v1, %v2632_v39  ;;  %vm2586_vm13 = vmor %vm2584_vm12, %vm2585_vm10  ;;  %3321 = vmatpush.bf16.msra.mxu1 %v4158_v5  ;;  %v2674_v1 = vld [vmem:[#allocation18] sm:$0x7] }
 0x7da   : > { %v2580_v43 = vmul.f32 %v4397_v0, %v2579_v35  ;;  %v2577_v26 = vsel %vm2576_vm3, %v4395_v12, %v2573_v7  ;;  %v4170_v7 = vld [vmem:[#allocation20 + $0x98] sm:$0xff]  ;;  %v6939_v35 = vperm.slane %v2674_v1, 2 }
 0x7db   : > { %2823 = vmatmul.bf16.gmra.mxu2 %v2639_v28  ;;  %2852 = vmatmul.bf16.gmra.mxu3 %v2639_v28  ;;  %v2612_v44 = vmul.f32 %v2577_v26, %v6847_v47  ;;  %v2518_v47 = vmul.f32 %v2509_v62, %v5246_v14 }
 0x7dc   : > { %v2581_v18 = vmul.f32 0.5, %v2580_v43  ;;  %2881 = vmatmul.bf16.gmra.mxu0 %v2639_v28  ;;  %v4163_v28 = vld [vmem:[#allocation20 + $0x60] sm:$0xff] }
 0x7dd   : > { %v2623_v40 = vmul.f32 %v6902_v4, %v2612_v44  ;;  %v2526_v63 = vadd.f32 1e-05, %v2518_v47  ;;  %3322 = vmatpush.bf16.msra.mxu1 %v4157_v9  ;;  %v6946_v44 = vperm.slane %v2674_v1, 1  ;;  %v4161_v47 = vld [vmem:[#allocation20 + $0x50] sm:$0xff] }
 0x7de   : > { %v2582_v38 = vsub.f32 1.5, %v2581_v18  ;;  %v4154_v18 = vld [vmem:[#allocation20 + $0x18] sm:$0xff] }
 0x7df   : > { %v2634_v20 = vadd.f32 %v6911_v58, %v2623_v40  ;;  %4398 = vrsqrt.f32 %v2526_v63  ;;  %vm2594_vm15 = vweird.f32 %v2526_v63 }
 0x7e0   : > { %v2583_v54 = vmul.f32 %v4397_v0, %v2582_v38  ;;  %v6944_v38 = vperm.slane %v2674_v1, 0 }
 0x7e2   : > { %v2587_v29 = vsel %vm2586_vm13, %v4397_v0, %v2583_v54  ;;  %v4156_v0 = vld [vmem:[#allocation20 + $0x28] sm:$0xff]  ;;  %v4162_v54 = vld [vmem:[#allocation20 + $0x58] sm:$0xff] }
 0x7e3   : > { %v2613_v45 = vmul.f32 %v2587_v29, %v6853_v34  ;;  %3323 = vmatpush.bf16.msra.mxu1 %v4156_v0 }
 0x7e5   : > { %v2624_v50 = vmul.f32 %v6902_v4, %v2613_v45  ;;  %v4399_v37 = vpop.eup %4398  ;;  %v4168_v45 = vld [vmem:[#allocation20 + $0x88] sm:$0xff] }
 0x7e6   : > { %v2589_v32 = vmul.f32 %v4399_v37, %v2526_v63  ;;  %vm2595_vm14 = vweird.f32 %v4399_v37 }
 0x7e7   : > { %v2635_v11 = vadd.f32 %v6911_v58, %v2624_v50  ;;  %vm2596_vm0 = vmor %vm2594_vm15, %vm2595_vm14 }
 0x7e8   : > { %v2590_v34 = vmul.f32 %v4399_v37, %v2589_v32 }
 0x7e9   : > { %v2640_v52 = vpack.c.bf16 %v2635_v11, %v2634_v20  ;;  %v4153_v11 = vld [vmem:[#allocation20 + $0x10] sm:$0xff] }
 0x7ea   : > { %v2591_v41 = vmul.f32 0.5, %v2590_v34 }
 0x7eb   : > { %2828 = vmatmul.bf16.gmra.mxu2 %v2640_v52  ;;  %2857 = vmatmul.bf16.gmra.mxu3 %v2640_v52 }
 0x7ec   : > { %2886 = vmatmul.bf16.gmra.mxu0 %v2640_v52  ;;  %v2592_v17 = vsub.f32 1.5, %v2591_v41  ;;  %v4152_v41 = vld [vmem:[#allocation20 + $0x8] sm:$0xff] }
 0x7ee   : > { %v2593_v51 = vmul.f32 %v4399_v37, %v2592_v17 }
 0x7f0   : > { %v2597_v59 = vsel %vm2596_vm0, %v4399_v37, %v2593_v51  ;;  %v4167_v37 = vld [vmem:[#allocation20 + $0x80] sm:$0xff]  ;;  %v4160_v51 = vld [vmem:[#allocation20 + $0x48] sm:$0xff] }
 0x7f1   : > { %v2614_v61 = vmul.f32 %v2597_v59, %v6859_v33 }
 0x7f3   : > { %v2625_v23 = vmul.f32 %v6902_v4, %v2614_v61 }
 0x7f5   : > { %v2636_v33 = vadd.f32 %v6911_v58, %v2625_v23 }
 0x826   : > { %v2511_v49 = vpop.xlane.xlu0 %2510 }
 0x827   : > { %v2519_v6 = vmul.f32 %v2511_v49, %v5246_v14  ;;  %v4173_v14 = vld [vmem:[#allocation20 + $0xb0] sm:$0xff] }
 0x828   : > { %3380 = vmatpush.bf16.msrb.mxu3 %v4173_v14  ;;  %v4151_v14 = vld [vmem:[#allocation20] sm:$0xff] }
 0x829   : > { %v2527_v31 = vadd.f32 1e-05, %v2519_v6 }
 0x82b   : > { %4400 = vrsqrt.f32 %v2527_v31  ;;  %vm2604_vm2 = vweird.f32 %v2527_v31 }
 0x82c   : > { %3381 = vmatpush.bf16.msrb.mxu3 %v4172_v8  ;;  %v4159_v8 = vld [vmem:[#allocation20 + $0x40] sm:$0xff] }
 0x830   : > { %3382 = vmatpush.bf16.msrb.mxu3 %v4171_v36 }
 0x831   : > { %v4401_v42 = vpop.eup %4400 }
 0x832   : > { %v2599_v53 = vmul.f32 %v4401_v42, %v2527_v31  ;;  %vm2605_vm1 = vweird.f32 %v4401_v42 }
 0x833   : > { %vm2606_vm4 = vmor %vm2604_vm2, %vm2605_vm1 }
 0x834   : > { %v2600_v22 = vmul.f32 %v4401_v42, %v2599_v53  ;;  %3383 = vmatpush.bf16.msrb.mxu3 %v4170_v7 }
 0x836   : > { %v2601_v60 = vmul.f32 0.5, %v2600_v22 }
 0x838   : > { %v2602_v2 = vsub.f32 1.5, %v2601_v60 }
 0x83a   : > { %v2603_v12 = vmul.f32 %v4401_v42, %v2602_v2 }
 0x83c   : > { %v2607_v25 = vsel %vm2606_vm4, %v4401_v42, %v2603_v12 }
 0x83d   : > { %v2615_v24 = vmul.f32 %v2607_v25, %v6874_v16  ;;  %v4164_v16 = vld [vmem:[#allocation20 + $0x68] sm:$0xff] }
 0x83e   : > { %3352 = vmatpush.bf16.msrb.mxu2 %v4164_v16 }
 0x83f   : > { %v2626_v10 = vmul.f32 %v6902_v4, %v2615_v24  ;;  %v4155_v4 = vld [vmem:[#allocation20 + $0x20] sm:$0xff] }
 0x840   : > { %3324 = vmatpush.bf16.msra.mxu1 %v4155_v4 }
 0x841   : > { %v2637_v15 = vadd.f32 %v6911_v58, %v2626_v10  ;;  %v4169_v58 = vld [vmem:[#allocation20 + $0x90] sm:$0xff] }
 0x842   : > { %3353 = vmatpush.bf16.msrb.mxu2 %v4163_v28  ;;  %3384 = vmatpush.bf16.msrb.mxu3 %v4169_v58 }
 0x843   : > { %v2641_v39 = vpack.c.bf16 %v2637_v15, %v2636_v33 }
 0x844   : > { %3325 = vmatpush.bf16.msra.mxu1 %v4154_v18 }
 0x845   : > { %2833 = vmatmul.bf16.gmra.mxu2 %v2641_v39  ;;  %2862 = vmatmul.bf16.gmra.mxu3 %v2641_v39 }
 0x846   : > { %2891 = vmatmul.bf16.gmra.mxu0 %v2641_v39  ;;  %3354 = vmatpush.bf16.msrb.mxu2 %v4162_v54 }
 0x847   : > { %3385 = vmatpush.bf16.msrb.mxu3 %v4168_v45 }
 0x848   : > { %3326 = vmatpush.bf16.msra.mxu1 %v4153_v11 }
 0x849   : > { %v2877_v43 = vpop.f32.mrf.mxu0 }
 0x84a   : > { %v6942_v26 = vadd.f32 %v2877_v43, %v6939_v35  ;;  %3355 = vmatpush.bf16.msrb.mxu2 %v4161_v47 }
 0x84b   : > { %3386 = vmatpush.bf16.msrb.mxu3 %v4167_v37 }
 0x84c   : > { %v2923_v29 = vmul.f32 0.044715, %v6942_v26  ;;  %3327 = vmatpush.bf16.msra.mxu1 %v4152_v41  ;;  %v2899_v37 = vmul.f32 0.5, %v6942_v26 }
 0x84e   : > { %v2947_v40 = vmul.f32 %v2923_v29, %v6942_v26  ;;  %v2819_v50 = vpop.f32.mrf.mxu2  ;;  %v2848_v20 = vpop.f32.mrf.mxu3  ;;  %3356 = vmatpush.bf16.msrb.mxu2 %v4160_v51 }
 0x84f   : > { %v6951_v52 = vadd.f32 %v2819_v50, %v6944_v38  ;;  %v6954_v62 = vadd.f32 %v2848_v20, %v6946_v44 }
 0x850   : > { %v2971_v63 = vmul.f32 %v2947_v40, %v6942_v26  ;;  %3328 = vmatpush.bf16.msra.mxu1 %v4151_v14 }
 0x851   : > { %v2921_v32 = vmul.f32 0.044715, %v6951_v52  ;;  %v2922_v34 = vmul.f32 0.044715, %v6954_v62  ;;  %v2879_v49 = vpop.f32.mrf.mxu0  ;;  %v2897_v51 = vmul.f32 0.5, %v6951_v52 }
 0x852   : > { %v2995_v6 = vadd.f32 %v2971_v63, %v6942_v26  ;;  %v2880_v31 = vadd.f32 %v2879_v49, %v6939_v35  ;;  %3357 = vmatpush.bf16.msrb.mxu2 %v4159_v8 }
 0x853   : > { %v2945_v17 = vmul.f32 %v2921_v32, %v6951_v52  ;;  %v2946_v42 = vmul.f32 %v2922_v34, %v6954_v62 }
 0x854   : > { %v3019_v53 = vmul.f32 0.7978846, %v2995_v6  ;;  %v2926_v22 = vmul.f32 0.044715, %v2880_v31 }
 0x855   : > { %v2969_v55 = vmul.f32 %v2945_v17, %v6951_v52  ;;  %v2970_v59 = vmul.f32 %v2946_v42, %v6954_v62  ;;  %v2902_v42 = vmul.f32 0.5, %v2880_v31 }
 0x856   : > { %v2950_v60 = vmul.f32 %v2926_v22, %v2880_v31  ;;  %v2821_v2 = vpop.f32.mrf.mxu2  ;;  %v2850_v61 = vpop.f32.mrf.mxu3  ;;  %4402 = vtanh.f32 %v3019_v53 }
 0x857   : > { %v2993_v12 = vadd.f32 %v2969_v55, %v6951_v52  ;;  %v2994_v25 = vadd.f32 %v2970_v59, %v6954_v62  ;;  %v2822_v5 = vadd.f32 %v2821_v2, %v6944_v38  ;;  %v6969_v27 = vadd.f32 %v2850_v61, %v6946_v44 }
 0x858   : > { %v2974_v24 = vmul.f32 %v2950_v60, %v2880_v31  ;;  %v2898_v59 = vmul.f32 0.5, %v6954_v62 }
 0x859   : > { %v3017_v23 = vmul.f32 0.7978846, %v2993_v12  ;;  %v3018_v9 = vmul.f32 0.7978846, %v2994_v25  ;;  %v2924_v30 = vmul.f32 0.044715, %v2822_v5  ;;  %v2882_v10 = vpop.f32.mrf.mxu0 }
 0x85a   : > { %v2998_v33 = vadd.f32 %v2974_v24, %v2880_v31  ;;  %v2925_v15 = vmul.f32 0.044715, %v6969_v27  ;;  %v6973_v36 = vadd.f32 %v2882_v10, %v6939_v35  ;;  %v2900_v2 = vmul.f32 0.5, %v2822_v5 }
 0x85b   : > { %v2948_v0 = vmul.f32 %v2924_v30, %v2822_v5  ;;  %4404 = vtanh.f32 %v3017_v23  ;;  %v2901_v30 = vmul.f32 0.5, %v6969_v27 }
 0x85c   : > { %v3022_v39 = vmul.f32 0.7978846, %v2998_v33  ;;  %v2949_v1 = vmul.f32 %v2925_v15, %v6969_v27  ;;  %v2929_v16 = vmul.f32 0.044715, %v6973_v36  ;;  %4406 = vtanh.f32 %v3018_v9  ;;  %v4403_v4 = vpop.eup %4402 }
 0x85d   : > { %v2972_v7 = vmul.f32 %v2948_v0, %v2822_v5  ;;  %v3067_v32 = vadd.f32 1.0, %v4403_v4 }
 0x85e   : > { %v2973_v28 = vmul.f32 %v2949_v1, %v6969_v27  ;;  %v2824_v58 = vpop.f32.mrf.mxu2  ;;  %v2853_v43 = vpop.f32.mrf.mxu3  ;;  %4408 = vtanh.f32 %v3022_v39  ;;  %v2953_v18 = vmul.f32 %v2929_v16, %v6973_v36 }
 0x85f   : > { %v2996_v54 = vadd.f32 %v2972_v7, %v2822_v5  ;;  %v6980_v29 = vadd.f32 %v2824_v58, %v6944_v38  ;;  %v6983_v45 = vadd.f32 %v2853_v43, %v6946_v44  ;;  %v3091_v31 = vmul.f32 %v3067_v32, %v2899_v37 }
 0x860   : > { %v2997_v40 = vadd.f32 %v2973_v28, %v6969_v27  ;;  %v2977_v50 = vmul.f32 %v2953_v18, %v6973_v36 }
 0x861   : > { %v4405_v20 = vpop.eup %4404  ;;  %v3020_v11 = vmul.f32 0.7978846, %v2996_v54  ;;  %v2927_v47 = vmul.f32 0.044715, %v6980_v29  ;;  %v2884_v63 = vpop.f32.mrf.mxu0  ;;  %v2928_v49 = vmul.f32 0.044715, %v6983_v45 }
 0x862   : > { %v3021_v34 = vmul.f32 0.7978846, %v2997_v40  ;;  %v6991_v6 = vadd.f32 %v2884_v63, %v6939_v35  ;;  %v3001_v41 = vadd.f32 %v2977_v50, %v6973_v36  ;;  %v4407_v17 = vpop.eup %4406  ;;  %v3065_v26 = vadd.f32 1.0, %v4405_v20 }
 0x863   : > { %4410 = vtanh.f32 %v3020_v11  ;;  %v2951_v53 = vmul.f32 %v2927_v47, %v6980_v29  ;;  %v3066_v8 = vadd.f32 1.0, %v4407_v17  ;;  %v2952_v24 = vmul.f32 %v2928_v49, %v6983_v45 }
 0x864   : > { %v4409_v22 = vpop.eup %4408  ;;  %v2932_v55 = vmul.f32 0.044715, %v6991_v6  ;;  %4412 = vtanh.f32 %v3021_v34  ;;  %v3025_v61 = vmul.f32 0.7978846, %v3001_v41  ;;  %v3089_v5 = vmul.f32 %v3065_v26, %v2897_v51 }
 0x865   : > { %v3070_v60 = vadd.f32 1.0, %v4409_v22  ;;  %v2975_v14 = vmul.f32 %v2951_v53, %v6980_v29  ;;  %v2976_v7 = vmul.f32 %v2952_v24, %v6983_v45  ;;  %v3090_v54 = vmul.f32 %v3066_v8, %v2898_v59 }
 0x866   : > { %v2826_v12 = vpop.f32.mrf.mxu2  ;;  %v2855_v25 = vpop.f32.mrf.mxu3  ;;  %v2956_v52 = vmul.f32 %v2932_v55, %v6991_v6  ;;  %4414 = vtanh.f32 %v3025_v61 }
 0x867   : > { %v7002_v23 = vadd.f32 %v2826_v12, %v6944_v38  ;;  %v7005_v9 = vadd.f32 %v2855_v25, %v6946_v44  ;;  %v3094_v62 = vmul.f32 %v3070_v60, %v2902_v42  ;;  %v2999_v33 = vadd.f32 %v2975_v14, %v6980_v29 }
 0x868   : > { %v2980_v10 = vmul.f32 %v2956_v52, %v6991_v6  ;;  %v3000_v49 = vadd.f32 %v2976_v7, %v6983_v45 }
 0x869   : > { %v4411_v15 = vpop.eup %4410  ;;  %v2930_v0 = vmul.f32 0.044715, %v7002_v23  ;;  %v2931_v39 = vmul.f32 0.044715, %v7005_v9  ;;  %v2887_v1 = vpop.f32.mrf.mxu0  ;;  %v3115_v16 = vpack.c.bf16 %v3094_v62, %v3091_v31  ;;  %v3023_v43 = vmul.f32 0.7978846, %v2999_v33 }
 0x86a   : > { %v4413_v4 = vpop.eup %4412  ;;  %v7014_v28 = vadd.f32 %v2887_v1, %v6939_v35  ;;  %v3068_v58 = vadd.f32 1.0, %v4411_v15  ;;  %v3004_v27 = vadd.f32 %v2980_v10, %v6991_v6  ;;  %v3024_v60 = vmul.f32 0.7978846, %v3000_v49 }
 0x86b   : > { %3387 = vmatmul.bf16.vlgmr.msrb.gmra.mxu3 %v3115_v16  ;;  %v3069_v18 = vadd.f32 1.0, %v4413_v4  ;;  %v2954_v40 = vmul.f32 %v2930_v0, %v7002_v23  ;;  %v2955_v50 = vmul.f32 %v2931_v39, %v7005_v9  ;;  %4416 = vtanh.f32 %v3023_v43 }
 0x86c   : > { %v2935_v20 = vmul.f32 0.044715, %v7014_v28  ;;  %v3092_v11 = vmul.f32 %v3068_v58, %v2900_v2  ;;  %v3028_v47 = vmul.f32 0.7978846, %v3004_v27  ;;  %v4415_v63 = vpop.eup %4414  ;;  %v2905_v10 = vmul.f32 0.5, %v6973_v36 }
 0x86d   : > { %v3093_v37 = vmul.f32 %v3069_v18, %v2901_v30  ;;  %v2978_v32 = vmul.f32 %v2954_v40, %v7002_v23  ;;  %v2979_v34 = vmul.f32 %v2955_v50, %v7005_v9  ;;  %v3073_v26 = vadd.f32 1.0, %v4415_v63 }
 0x86e   : > { %v2829_v41 = vpop.f32.mrf.mxu2  ;;  %v2858_v17 = vpop.f32.mrf.mxu3  ;;  %v3113_v42 = vpack.c.bf16 %v3092_v11, %v3089_v5  ;;  %4418 = vtanh.f32 %v3028_v47  ;;  %v2959_v2 = vmul.f32 %v2935_v20, %v7014_v28  ;;  %v2908_v15 = vmul.f32 0.5, %v6991_v6 }
 0x86f   : > { %v7024_v51 = vadd.f32 %v2829_v41, %v6944_v38  ;;  %v7027_v53 = vadd.f32 %v2858_v17, %v6946_v44  ;;  %v3114_v22 = vpack.c.bf16 %v3093_v37, %v3090_v54  ;;  %v3002_v55 = vadd.f32 %v2978_v32, %v7002_v23 }
 0x870   : > { %3329 = vmatmul.bf16.vlgmr.msra.gmra.mxu1 %v3113_v42  ;;  %v3003_v59 = vadd.f32 %v2979_v34, %v7005_v9  ;;  %4420 = vtanh.f32 %v3024_v60  ;;  %v2983_v24 = vmul.f32 %v2959_v2, %v7014_v28  ;;  %v2903_v39 = vmul.f32 0.5, %v6980_v29 }
 0x871   : > { %v2933_v61 = vmul.f32 0.044715, %v7024_v51  ;;  %v2934_v14 = vmul.f32 0.044715, %v7027_v53  ;;  %v2889_v12 = vpop.f32.mrf.mxu0  ;;  %3358 = vmatmul.bf16.vlgmr.msrb.gmra.mxu2 %v3114_v22  ;;  %v3026_v25 = vmul.f32 0.7978846, %v3002_v55  ;;  %v4417_v31 = vpop.eup %4416  ;;  %v3097_v4 = vmul.f32 %v3073_v26, %v2905_v10 }
 0x872   : > { %v7035_v8 = vadd.f32 %v2889_v12, %v6939_v35  ;;  %v3027_v52 = vmul.f32 0.7978846, %v3003_v59  ;;  %v3007_v33 = vadd.f32 %v2983_v24, %v7014_v28  ;;  %v3071_v29 = vadd.f32 1.0, %v4417_v31 }
 0x873   : > { %4422 = vtanh.f32 %v3026_v25  ;;  %v2957_v62 = vmul.f32 %v2933_v61, %v7024_v51  ;;  %v2958_v43 = vmul.f32 %v2934_v14, %v7027_v53  ;;  %v2904_v50 = vmul.f32 0.5, %v6983_v45 }
 0x874   : > { %v4419_v5 = vpop.eup %4418  ;;  %v2938_v30 = vmul.f32 0.044715, %v7035_v8  ;;  %4424 = vtanh.f32 %v3027_v52  ;;  %v3031_v27 = vmul.f32 0.7978846, %v3007_v33  ;;  %v2906_v41 = vmul.f32 0.5, %v7002_v23 }
 0x875   : > { %v3076_v0 = vadd.f32 1.0, %v4419_v5  ;;  %v2981_v1 = vmul.f32 %v2957_v62, %v7024_v51  ;;  %v2982_v11 = vmul.f32 %v2958_v43, %v7027_v53  ;;  %v2907_v45 = vmul.f32 0.5, %v7005_v9 }
 0x876   : > { %v2831_v16 = vpop.f32.mrf.mxu2  ;;  %v2860_v7 = vpop.f32.mrf.mxu3  ;;  %v2962_v58 = vmul.f32 %v2938_v30, %v7035_v8  ;;  %4426 = vtanh.f32 %v3031_v27  ;;  %v3095_v59 = vmul.f32 %v3071_v29, %v2903_v39 }
 0x877   : > { %v2832_v36 = vadd.f32 %v2831_v16, %v6944_v38  ;;  %v7049_v18 = vadd.f32 %v2860_v7, %v6946_v44  ;;  %v3100_v54 = vmul.f32 %v3076_v0, %v2908_v15  ;;  %v3005_v6 = vadd.f32 %v2981_v1, %v7024_v51  ;;  %v4421_v40 = vpop.eup %4420 }
 0x878   : > { %v2986_v20 = vmul.f32 %v2962_v58, %v7035_v8  ;;  %v3072_v34 = vadd.f32 1.0, %v4421_v40  ;;  %v3006_v23 = vadd.f32 %v2982_v11, %v7027_v53  ;;  %v2911_v1 = vmul.f32 0.5, %v7014_v28 }
 0x879   : > { %v4423_v47 = vpop.eup %4422  ;;  %v2936_v63 = vmul.f32 0.044715, %v2832_v36  ;;  %v2937_v37 = vmul.f32 0.044715, %v7049_v18  ;;  %v3118_v32 = vpack.c.bf16 %v3100_v54, %v3097_v4  ;;  %v3029_v26 = vmul.f32 0.7978846, %v3005_v6 }
 0x87a   : > { %v4425_v49 = vpop.eup %4424  ;;  %v3074_v17 = vadd.f32 1.0, %v4423_v47  ;;  %v3010_v42 = vadd.f32 %v2986_v20, %v7035_v8  ;;  %v3096_v14 = vmul.f32 %v3072_v34, %v2904_v50  ;;  %v3030_v9 = vmul.f32 0.7978846, %v3006_v23 }
 0x87b   : > { %3392 = vmatmul.bf16.gmra.mxu3 %v3118_v32  ;;  %v3075_v22 = vadd.f32 1.0, %v4425_v49  ;;  %v2960_v55 = vmul.f32 %v2936_v63, %v2832_v36  ;;  %v2961_v61 = vmul.f32 %v2937_v37, %v7049_v18  ;;  %v2914_v16 = vmul.f32 0.5, %v7035_v8 }
 0x87c   : > { %v3098_v60 = vmul.f32 %v3074_v17, %v2906_v41  ;;  %v3034_v2 = vmul.f32 0.7978846, %v3010_v42  ;;  %v4427_v5 = vpop.eup %4426  ;;  %v2909_v50 = vmul.f32 0.5, %v7024_v51  ;;  %v2912_v20 = vmul.f32 0.5, %v2832_v36 }
 0x87d   : > { %v3099_v12 = vmul.f32 %v3075_v22, %v2907_v45  ;;  %v2984_v25 = vmul.f32 %v2960_v55, %v2832_v36  ;;  %v2985_v52 = vmul.f32 %v2961_v61, %v7049_v18  ;;  %v3079_v15 = vadd.f32 1.0, %v4427_v5 }
 0x87e   : > { %v3116_v31 = vpack.c.bf16 %v3098_v60, %v3095_v59  ;;  %4428 = vtanh.f32 %v3034_v2  ;;  %v2910_v47 = vmul.f32 0.5, %v7027_v53  ;;  %v2913_v28 = vmul.f32 0.5, %v7049_v18 }
 0x87f   : > { %v3117_v24 = vpack.c.bf16 %v3099_v12, %v3096_v14  ;;  %v3008_v62 = vadd.f32 %v2984_v25, %v2832_v36  ;;  %4430 = vtanh.f32 %v3029_v26  ;;  %v3009_v30 = vadd.f32 %v2985_v52, %v7049_v18 }
 0x880   : > { %3334 = vmatmul.bf16.gmra.mxu1 %v3116_v31  ;;  %4432 = vtanh.f32 %v3030_v9  ;;  %v3103_v58 = vmul.f32 %v3079_v15, %v2911_v1 }
 0x881   : > { %3363 = vmatmul.bf16.gmra.mxu2 %v3117_v24  ;;  %v3032_v10 = vmul.f32 0.7978846, %v3008_v62  ;;  %v3033_v33 = vmul.f32 0.7978846, %v3009_v30 }
 0x883   : > { %4434 = vtanh.f32 %v3032_v10 }
 0x884   : > { %v4429_v0 = vpop.eup %4428  ;;  %4436 = vtanh.f32 %v3033_v33 }
 0x885   : > { %v4431_v39 = vpop.eup %4430  ;;  %v3082_v7 = vadd.f32 1.0, %v4429_v0 }
 0x886   : > { %v4433_v4 = vpop.eup %4432  ;;  %v3077_v43 = vadd.f32 1.0, %v4431_v39 }
 0x887   : > { %v3106_v27 = vmul.f32 %v3082_v7, %v2914_v16  ;;  %v3078_v40 = vadd.f32 1.0, %v4433_v4 }
 0x888   : > { %v3101_v8 = vmul.f32 %v3077_v43, %v2909_v50 }
 0x889   : > { %v4435_v54 = vpop.eup %4434  ;;  %v3121_v6 = vpack.c.bf16 %v3106_v27, %v3103_v58  ;;  %v3102_v32 = vmul.f32 %v3078_v40, %v2910_v47 }
 0x88a   : > { %v4437_v29 = vpop.eup %4436  ;;  %v3080_v11 = vadd.f32 1.0, %v4435_v54 }
 0x88b   : > { %3397 = vmatmul.bf16.gmra.mxu3 %v3121_v6  ;;  %v3081_v63 = vadd.f32 1.0, %v4437_v29 }
 0x88c   : > { %v3104_v37 = vmul.f32 %v3080_v11, %v2912_v20 }
 0x88d   : > { %v3105_v34 = vmul.f32 %v3081_v63, %v2913_v28 }
 0x88e   : > { %v3119_v49 = vpack.c.bf16 %v3104_v37, %v3101_v8 }
 0x88f   : > { %v3120_v41 = vpack.c.bf16 %v3105_v34, %v3102_v32 }
 0x890   : > { %3339 = vmatmul.bf16.gmra.mxu1 %v3119_v49 }
 0x891   : > { %3368 = vmatmul.bf16.gmra.mxu2 %v3120_v41 }
 0x8c3   : > { %v2892_v17 = vpop.f32.mrf.mxu0 }
 0x8c4   : > { %v2893_v42 = vadd.f32 %v2892_v17, %v6939_v35 }
 0x8c6   : > { %v2941_v51 = vmul.f32 0.044715, %v2893_v42  ;;  %v2917_v11 = vmul.f32 0.5, %v2893_v42 }
 0x8c8   : > { %v2834_v36 = vpop.f32.mrf.mxu2  ;;  %v2863_v45 = vpop.f32.mrf.mxu3  ;;  %v2965_v22 = vmul.f32 %v2941_v51, %v2893_v42 }
 0x8c9   : > { %v2835_v53 = vadd.f32 %v2834_v36, %v6944_v38  ;;  %v2864_v18 = vadd.f32 %v2863_v45, %v6946_v44 }
 0x8ca   : > { %v2989_v55 = vmul.f32 %v2965_v22, %v2893_v42 }
 0x8cb   : > { %v2939_v26 = vmul.f32 0.044715, %v2835_v53  ;;  %v2940_v59 = vmul.f32 0.044715, %v2864_v18  ;;  %v2894_v60 = vpop.f32.mrf.mxu0  ;;  %v2915_v51 = vmul.f32 0.5, %v2835_v53  ;;  %v2916_v22 = vmul.f32 0.5, %v2864_v18 }
 0x8cc   : > { %v2895_v2 = vadd.f32 %v2894_v60, %v6939_v35  ;;  %v3013_v61 = vadd.f32 %v2989_v55, %v2893_v42 }
 0x8cd   : > { %v2963_v14 = vmul.f32 %v2939_v26, %v2835_v53  ;;  %v2964_v12 = vmul.f32 %v2940_v59, %v2864_v18 }
 0x8ce   : > { %v2944_v25 = vmul.f32 0.044715, %v2895_v2  ;;  %v3037_v9 = vmul.f32 0.7978846, %v3013_v61  ;;  %v2920_v47 = vmul.f32 0.5, %v2895_v2 }
 0x8cf   : > { %v2987_v23 = vmul.f32 %v2963_v14, %v2835_v53  ;;  %v2988_v31 = vmul.f32 %v2964_v12, %v2864_v18 }
 0x8d0   : > { %v2836_v52 = vpop.f32.mrf.mxu2  ;;  %v2865_v24 = vpop.f32.mrf.mxu3  ;;  %v2968_v62 = vmul.f32 %v2944_v25, %v2895_v2  ;;  %4438 = vtanh.f32 %v3037_v9 }
 0x8d1   : > { %v2837_v5 = vadd.f32 %v2836_v52, %v6944_v38  ;;  %v2866_v30 = vadd.f32 %v2865_v24, %v6946_v44  ;;  %v3011_v10 = vadd.f32 %v2987_v23, %v2835_v53  ;;  %v3012_v15 = vadd.f32 %v2988_v31, %v2864_v18  ;;  %v4355_v23 = vld [vmem:[#allocation21] ss:$0 sm:$0xff] }
 0x8d2   : > { %v2992_v33 = vmul.f32 %v2968_v62, %v2895_v2 }
 0x8d3   : > { %v2942_v0 = vmul.f32 0.044715, %v2837_v5  ;;  %v2943_v39 = vmul.f32 0.044715, %v2866_v30  ;;  %v3035_v16 = vmul.f32 0.7978846, %v3011_v10 }
 0x8d4   : > { %v3016_v35 = vadd.f32 %v2992_v33, %v2895_v2  ;;  %v3036_v58 = vmul.f32 0.7978846, %v3012_v15  ;;  %v2918_v36 = vmul.f32 0.5, %v2837_v5  ;;  %v2919_v55 = vmul.f32 0.5, %v2866_v30 }
 0x8d5   : > { %v2966_v1 = vmul.f32 %v2942_v0, %v2837_v5  ;;  %v2967_v7 = vmul.f32 %v2943_v39, %v2866_v30 }
 0x8d6   : > { %v3040_v4 = vmul.f32 0.7978846, %v3016_v35  ;;  %v4439_v6 = vpop.eup %4438 }
 0x8d7   : > { %v2990_v27 = vmul.f32 %v2966_v1, %v2837_v5  ;;  %v2991_v43 = vmul.f32 %v2967_v7, %v2866_v30  ;;  %v3085_v29 = vadd.f32 1.0, %v4439_v6 }
 0x8d8   : > { %4440 = vtanh.f32 %v3040_v4 }
 0x8d9   : > { %v3014_v54 = vadd.f32 %v2990_v27, %v2837_v5  ;;  %4442 = vtanh.f32 %v3035_v16  ;;  %v3015_v38 = vadd.f32 %v2991_v43, %v2866_v30  ;;  %v3109_v8 = vmul.f32 %v3085_v29, %v2917_v11 }
 0x8da   : > { %4444 = vtanh.f32 %v3036_v58 }
 0x8db   : > { %v3038_v44 = vmul.f32 0.7978846, %v3014_v54  ;;  %v3039_v40 = vmul.f32 0.7978846, %v3015_v38 }
 0x8dd   : > { %4446 = vtanh.f32 %v3038_v44 }
 0x8de   : > { %v4441_v50 = vpop.eup %4440  ;;  %4448 = vtanh.f32 %v3039_v40 }
 0x8df   : > { %v4443_v20 = vpop.eup %4442  ;;  %v3088_v28 = vadd.f32 1.0, %v4441_v50 }
 0x8e0   : > { %v4445_v63 = vpop.eup %4444  ;;  %v3083_v32 = vadd.f32 1.0, %v4443_v20 }
 0x8e1   : > { %v3112_v37 = vmul.f32 %v3088_v28, %v2920_v47  ;;  %v3084_v41 = vadd.f32 1.0, %v4445_v63 }
 0x8e2   : > { %v3107_v59 = vmul.f32 %v3083_v32, %v2915_v51 }
 0x8e3   : > { %v4447_v34 = vpop.eup %4446  ;;  %v3124_v49 = vpack.c.bf16 %v3112_v37, %v3109_v8  ;;  %v3108_v42 = vmul.f32 %v3084_v41, %v2916_v22 }
 0x8e4   : > { %v4449_v17 = vpop.eup %4448  ;;  %v3086_v45 = vadd.f32 1.0, %v4447_v34 }
 0x8e5   : > { %3402 = vmatmul.bf16.gmra.mxu3 %v3124_v49  ;;  %v3087_v26 = vadd.f32 1.0, %v4449_v17 }
 0x8e6   : > { %v3110_v60 = vmul.f32 %v3086_v45, %v2918_v36 }
 0x8e7   : > { %v3111_v2 = vmul.f32 %v3087_v26, %v2919_v55 }
 0x8e8   : > { %v3122_v61 = vpack.c.bf16 %v3110_v60, %v3107_v59 }
 0x8e9   : > { %v3123_v14 = vpack.c.bf16 %v3111_v2, %v3108_v42 }
 0x8ea   : > { %3344 = vmatmul.bf16.gmra.mxu1 %v3122_v61 }
 0x8eb   : > { %3373 = vmatmul.bf16.gmra.mxu2 %v3123_v14 }
 0x8ed   : > { %v3330_v12 = vpop.f32.mrf.mxu1 }
 0x8ee   : > { %v3388_v25 = vpop.f32.mrf.mxu3  ;;  %v3331_v31 = vadd.f32 %v4355_v23, %v3330_v12 }
 0x8f4   : > { %v3359_v53 = vpop.f32.mrf.mxu2 }
 0x8f5   : > { %v3360_v52 = vadd.f32 %v3359_v53, %v3331_v31  ;;  %v3332_v24 = vpop.f32.mrf.mxu1 }
 0x8f6   : > { %v3390_v62 = vpop.f32.mrf.mxu3  ;;  %v3333_v5 = vadd.f32 %v4355_v23, %v3332_v24 }
 0x8f7   : > { %v3389_v18 = vadd.f32 %v3388_v25, %v3360_v52 }
 0x8f9   : > { %v3408_v9 = vadd.f32 %v3389_v18, %v6790_v57 }
 0x8fb   : > { %3416 = vst [vmem:[%s7077_s8] sm:$0xff] %v3408_v9 }
 0x8fc   : > { %v3361_v30 = vpop.f32.mrf.mxu2 }
 0x8fd   : > { %v3362_v10 = vadd.f32 %v3361_v30, %v3333_v5  ;;  %v3335_v33 = vpop.f32.mrf.mxu1 }
 0x8fe   : > { %v3393_v0 = vpop.f32.mrf.mxu3  ;;  %v3336_v35 = vadd.f32 %v4355_v23, %v3335_v33 }
 0x8ff   : > { %v3391_v15 = vadd.f32 %v3390_v62, %v3362_v10 }
 0x901   : > { %v3409_v39 = vadd.f32 %v3391_v15, %v6794_v46 }
 0x903   : > { %3417 = vst [vmem:[%s7077_s8 + $0x8] sm:$0xff] %v3409_v39 }
 0x904   : > { %v3364_v1 = vpop.f32.mrf.mxu2 }
 0x905   : > { %v3365_v57 = vadd.f32 %v3364_v1, %v3336_v35  ;;  %v3337_v16 = vpop.f32.mrf.mxu1 }
 0x906   : > { %v3395_v58 = vpop.f32.mrf.mxu3  ;;  %v3338_v27 = vadd.f32 %v4355_v23, %v3337_v16 }
 0x907   : > { %v3394_v7 = vadd.f32 %v3393_v0, %v3365_v57 }
 0x909   : > { %v3410_v4 = vadd.f32 %v3394_v7, %v6798_v48 }
 0x90b   : > { %3418 = vst [vmem:[%s7077_s8 + $0x10] sm:$0xff] %v3410_v4 }
 0x90c   : > { %v3366_v43 = vpop.f32.mrf.mxu2 }
 0x90d   : > { %v3367_v54 = vadd.f32 %v3366_v43, %v3338_v27  ;;  %v3340_v38 = vpop.f32.mrf.mxu1 }
 0x90e   : > { %v3341_v46 = vadd.f32 %v4355_v23, %v3340_v38  ;;  %v3398_v40 = vpop.f32.mrf.mxu3 }
 0x90f   : > { %v3396_v6 = vadd.f32 %v3395_v58, %v3367_v54 }
 0x911   : > { %v3411_v44 = vadd.f32 %v3396_v6, %v6802_v56 }
 0x913   : > { %3419 = vst [vmem:[%s7077_s8 + $0x18] sm:$0xff] %v3411_v44 }
 0x914   : > { %v3369_v29 = vpop.f32.mrf.mxu2 }
 0x915   : > { %v3370_v50 = vadd.f32 %v3369_v29, %v3341_v46  ;;  %v3342_v11 = vpop.f32.mrf.mxu1 }
 0x916   : > { %v3343_v47 = vadd.f32 %v4355_v23, %v3342_v11  ;;  %v3400_v8 = vpop.f32.mrf.mxu3 }
 0x917   : > { %v3399_v20 = vadd.f32 %v3398_v40, %v3370_v50 }
 0x919   : > { %v3412_v48 = vadd.f32 %v3399_v20, %v6806_v3 }
 0x91b   : > { %3420 = vst [vmem:[%s7077_s8 + $0x20] sm:$0xff] %v3412_v48 }
 0x91c   : > { %v3371_v28 = vpop.f32.mrf.mxu2 }
 0x91d   : > { %v3372_v63 = vadd.f32 %v3371_v28, %v3343_v47 }
 0x91f   : > { %v3401_v37 = vadd.f32 %v3400_v8, %v3372_v63 }
 0x921   : > { %v3413_v56 = vadd.f32 %v3401_v37, %v6810_v21 }
 0x923   : > { %3421 = vst [vmem:[%s7077_s8 + $0x28] sm:$0xff] %v3413_v56 }
 0x967   : > { %v3345_v32 = vpop.f32.mrf.mxu1 }
 0x968   : > { %v3346_v34 = vadd.f32 %v4355_v23, %v3345_v32  ;;  %v3403_v49 = vpop.f32.mrf.mxu3 }
 0x96e   : > { %v3374_v41 = vpop.f32.mrf.mxu2 }
 0x96f   : > { %v3375_v17 = vadd.f32 %v3374_v41, %v3346_v34  ;;  %v3347_v3 = vpop.f32.mrf.mxu1 }
 0x970   : > { %v3348_v21 = vadd.f32 %v4355_v23, %v3347_v3  ;;  %v3405_v55 = vpop.f32.mrf.mxu3 }
 0x971   : > { %v3404_v51 = vadd.f32 %v3403_v49, %v3375_v17 }
 0x973   : > { %v3414_v36 = vadd.f32 %v3404_v51, %v6814_v13 }
 0x975   : > { %3422 = vst [vmem:[%s7077_s8 + $0x30] sm:$0xff] %v3414_v36 }
 0x976   : > { %v3376_v45 = vpop.f32.mrf.mxu2 }
 0x977   : > { %v3377_v22 = vadd.f32 %v3376_v45, %v3348_v21 }
 0x979   : > { %v3406_v26 = vadd.f32 %v3405_v55, %v3377_v22 }
 0x97b   : > { %v3415_v59 = vadd.f32 %v3406_v26, %v6828_v19 }
 0x97d   : > { %3423 = vst [vmem:[%s7077_s8 + $0x38] sm:$0xff] %v3415_v59 }
 0x97e   : > { %4845 = shalt.err (!%p4842_p9)
}
 0x97f   : > { %s4936_s12 = smov 128   ;;  %s4937_s8 = smov 8  }
 0x980   : > { %4222 = dma.vmem_to_hbm [thread:$0]  (%p5169_p0), %s3438_s10, 1024, %s3440_s4, %s3425_s30, %s4936_s12, %s4936_s12, %s4937_s8  }
 0x981 PF: > { %s3454_s9 = sand.u32 1, %s4896_s24   ;;  %p7195_p10 = scmp.ge.s32.totalorder %s4908_s27, 2 }
 0x982   : > { %s3455_s0 = scalar_lea.sflag [#allocation5], %s3454_s9 }
 0x983   : > { %p4263_p11 = pnand %p7195_p10, %p5175_p6 }
 0x985   : > { %p4264_p12 = pneg %p4263_p11 }
 0x987   : > { %4891 = dma.done.wait (%p4264_p12), %s3455_s0, 1024  }
 0x988   : > { %4893 = vsyncadd (%p4264_p12), %s3455_s0, 4294966272  ;;  %p36_p2 = scmp.ge.s32.totalorder %s5145_s17, 4   ;;  %s7196_s24 = smov %s4900_s25 }
 0x989   : > { %s7197_s25 = smov %s4904_s26  ;;  %s7198_s26 = smov %s5157_s29 }
 0x98a   : > { %s7199_s27 = smov %s5145_s17  ;;  %38 = sbr.rel (!%p36_p2) target bundleno = 25 (0x19), region = 185 }
 0x98f   :  { %3461 = vsyncpa [#allocation4], 1 }
 0x990   :  { %3463 = vsyncpa [#allocation4 + $0x1], 1 }
 0x991   :  { %3464 = vsyncpa [#allocation7], 1 }
 0x992   :  { %3465 = vsyncpa [#allocation10], 1 }
 0x993   :  { %3466 = vsyncpa [#allocation13], 1 }
 0x994   :  { %3467 = vsyncpa [#allocation16], 1 }
 0x995   :  { %3468 = vsyncpa [#allocation19], 1 }
 0x996   :  { %3469 = vsyncpa [#allocation22], 1 }
 0x997   :  { %3470 = vsyncpa [#allocation5], 1 }
 0x998   :  { %3472 = vsyncpa [#allocation5 + $0x1], 1 }

</bundles_post_ra>
